<compile_context>
chip_gen: v7x
topology: tpu7x:2x2x1
jax: 0.10.0
libtpu: 0.0.40
codegen_flags: <defaults>
</compile_context>

<pallas_src>
import functools
import math

import jax
import jax.numpy as jnp
from jax import lax
from jax.experimental import pallas as pl
from jax.experimental.pallas import tpu as pltpu


# --------------------------------- kernel ------------------------------------

def cae_kernel(x_ref,
               w1_ref, b1_ref, w2_ref, b2_ref, w3_ref, b3_ref,
               wu1_ref, bu1_ref, wu2_ref, bu2_ref, wl_ref, bl_ref,
               o_ref, *, h4):
    rows = x_ref.shape[0]

    # Hoisted H-block boundary masks (single phase granularity, reused everywhere).
    hpos = lax.broadcasted_iota(jnp.int32, (rows, 1), 0) % h4
    first = hpos == 0              # first phase-row of its H-block
    last = hpos == (h4 - 1)        # last phase-row of its H-block

    def shift_down(y):             # out[r] = y[r-1], zero at block start
        z = jnp.zeros((1, y.shape[1]), jnp.float32)
        s = jnp.concatenate([z, y[:-1, :]], axis=0)
        return jnp.where(first, 0.0, s)

    def shift_up(y):               # out[r] = y[r+1], zero at block end
        z = jnp.zeros((1, y.shape[1]), jnp.float32)
        s = jnp.concatenate([y[1:, :], z], axis=0)
        return jnp.where(last, 0.0, s)

    def conv3(phases, wcat, b):
        # Conv2d(cin, cout, (3,1), stride 1, padding (1,0)) in phase representation.
        # wcat: (cin, 3*cout) = [W0 | W1 | W2]; one fused matmul per input phase.
        cout = wcat.shape[1] // 3
        if wcat.shape[0] == 1:     # cin == 1 -> outer-product broadcast, no matmul
            taps = [ph * wcat for ph in phases]
        else:
            taps = [jnp.dot(ph, wcat, preferred_element_type=jnp.float32)
                    for ph in phases]

        def t(g, k):
            return g[:, k * cout:(k + 1) * cout]

        P = len(phases)
        outs = []
        for k in range(P):
            prev = t(taps[k - 1], 0) if k > 0 else shift_down(t(taps[P - 1], 0))
            nxt = t(taps[k + 1], 2) if k < P - 1 else shift_up(t(taps[0], 2))
            outs.append(prev + t(taps[k], 1) + nxt + b)
        return tuple(outs)

    def convT3_up(phases, wcat, b):
        # ConvTranspose2d(32,32,(3,1),stride=(2,1),padding=(1,0),output_padding=(1,0)):
        # P phases -> 2P phases.  wcat: (32, 96) = [W0 | W1 | W2].
        cout = wcat.shape[1] // 3
        taps = [jnp.dot(ph, wcat, preferred_element_type=jnp.float32)
                for ph in phases]

        def t(g, k):
            return g[:, k * cout:(k + 1) * cout]

        P = len(phases)
        outs = []
        for j in range(P):
            outs.append(t(taps[j], 1) + b)                                  # out[2m]
            w0n = t(taps[j + 1], 0) if j < P - 1 else shift_up(t(taps[0], 0))
            outs.append(w0n + t(taps[j], 2) + b)                            # out[2m+1]
        return tuple(outs)

    def pool2(phases):             # MaxPool2d((2,1),(2,1)): pairwise max of phases
        return tuple(jnp.maximum(phases[2 * j], phases[2 * j + 1])
                     for j in range(len(phases) // 2))

    def leaky(phases):
        return tuple(jnp.where(p >= 0, p, 0.1 * p) for p in phases)

    def sigmoid(phases):
        return tuple(pl.reciprocal(1.0 + jnp.exp(-p)) for p in phases)

    w1, b1 = w1_ref[...], b1_ref[...]
    w2, b2 = w2_ref[...], b2_ref[...]
    w3, b3 = w3_ref[...], b3_ref[...]
    wu1, bu1 = wu1_ref[...], bu1_ref[...]
    wu2, bu2 = wu2_ref[...], bu2_ref[...]
    wl, bl = wl_ref[...], bl_ref[...]

    def seq(phases):                          # the shared 12-layer stack
        h = leaky(conv3(phases, w1, b1))      # conv1 + leaky_relu1   (4 phases)
        h = pool2(h)                          # pool1     H   -> H/2  (2 phases)
        h = leaky(conv3(h, w2, b2))           # conv2 + leaky_relu2
        h = pool2(h)                          # encoding  H/2 -> H/4  (1 phase)
        h = leaky(conv3(h, w3, b3))           # conv3 + leaky_relu3
        h = convT3_up(h, wu1, bu1)            # upsample1 H/4 -> H/2  (2 phases)
        h = convT3_up(h, wu2, bu2)            # upsample2 H/2 -> H    (4 phases)
        h = conv3(h, wl, bl)                  # logits
        return sigmoid(h)                     # recon

    x = x_ref[...]
    phases = tuple(x[:, k:k + 1] for k in range(4))
    # encoder == decoder (shared stack, list aliasing in __init__): apply twice.
    out = seq(seq(phases))
    for k in range(4):
        o_ref[:, k:k + 1] = out[k]


# -------------------------------- wrapper -------------------------------------

def _pick_tile_b(B, H, target_rows=512):
    best = B
    for t in range(1, B + 1):
        if B % t:
            continue
        rows = t * H // 4
        if rows % 8 == 0 and rows <= target_rows:
            best = t
    return best


def cae_forward(x, p, tile_b=None):
    N, C, H, W = x.shape
    assert C == 1 and H % 4 == 0
    B = N * W
    if tile_b is None:
        tile_b = _pick_tile_b(B, H)
    assert B % tile_b == 0
    rows_total = B * H // 4
    rows = tile_b * H // 4
    assert rows % 8 == 0 or tile_b == B, "tile rows must be a multiple of 8"

    # flat row index r = (n*W + w)*H + h ; pack 4 consecutive h into lanes (phases)
    xp = jnp.transpose(x[:, 0, :, :], (0, 2, 1)).reshape(rows_total, 4)

    def conv_cat(w):   # Conv2d (cout, cin, 3, 1)      -> (cin, 3*cout) = [W0|W1|W2]
        cout, cin = w.shape[0], w.shape[1]
        return jnp.transpose(w[:, :, :, 0], (1, 2, 0)).reshape(cin, 3 * cout)

    def convT_cat(w):  # ConvTranspose2d (cin, cout, 3, 1) -> (cin, 3*cout)
        cin, cout = w.shape[0], w.shape[1]
        return jnp.transpose(w[:, :, :, 0], (0, 2, 1)).reshape(cin, 3 * cout)

    def b2d(b):
        return b.reshape(1, -1)

    weights = (conv_cat(p['w1']), b2d(p['b1']),
               conv_cat(p['w2']), b2d(p['b2']),
               conv_cat(p['w3']), b2d(p['b3']),
               convT_cat(p['wu1']), b2d(p['bu1']),
               convT_cat(p['wu2']), b2d(p['bu2']),
               conv_cat(p['wl']), b2d(p['bl']))

    grid = (B // tile_b,)
    x_spec = pl.BlockSpec((rows, 4), lambda i: (i, 0))
    w_specs = [pl.BlockSpec(w.shape, lambda i: (0, 0)) for w in weights]

    out = pl.pallas_call(
        functools.partial(cae_kernel, h4=H // 4),
        out_shape=jax.ShapeDtypeStruct((rows_total, 4), jnp.float32),
        grid=grid,
        in_specs=[x_spec] + w_specs,
        out_specs=pl.BlockSpec((rows, 4), lambda i: (i, 0)),
        compiler_params=pltpu.CompilerParams(dimension_semantics=("parallel",)),
    )(xp, *weights)

    return jnp.transpose(out.reshape(N, W, H), (0, 2, 1))[:, None, :, :]


# --------------------------- params & XLA reference ---------------------------

def init_params(key):
    ks = jax.random.split(key, 12)

    def u(k, shape, fan_in):
        bound = 1.0 / math.sqrt(fan_in)
        return jax.random.uniform(k, shape, jnp.float32, -bound, bound)

    p = {}
    p['w1'], p['b1'] = u(ks[0], (32, 1, 3, 1), 3),     u(ks[1], (32,), 3)
    p['w2'], p['b2'] = u(ks[2], (32, 32, 3, 1), 96),   u(ks[3], (32,), 96)
    p['w3'], p['b3'] = u(ks[4], (32, 32, 3, 1), 96),   u(ks[5], (32,), 96)
    p['wu1'], p['bu1'] = u(ks[6], (32, 32, 3, 1), 96), u(ks[7], (32,), 96)
    p['wu2'], p['bu2'] = u(ks[8], (32, 32, 3, 1), 96), u(ks[9], (32,), 96)
    p['wl'], p['bl'] = u(ks[10], (1, 32, 3, 1), 96),   u(ks[11], (1,), 96)
    return p


def cae_reference(x, p):
    dn = ('NCHW', 'OIHW', 'NCHW')

    def conv(h, w, b):
        y = lax.conv_general_dilated(h, w, (1, 1), ((1, 1), (0, 0)),
                                     dimension_numbers=dn,
                                     precision=lax.Precision.HIGHEST)
        return y + b[None, :, None, None]

    def convT(h, w, b):  # stride (2,1), padding (1,0), output_padding (1,0)
        wf = jnp.flip(jnp.transpose(w, (1, 0, 2, 3)), axis=2)
        y = lax.conv_general_dilated(h, wf, (1, 1), ((1, 2), (0, 0)),
                                     lhs_dilation=(2, 1),
                                     dimension_numbers=dn,
                                     precision=lax.Precision.HIGHEST)
        return y + b[None, :, None, None]

    def pool(h):
        n, c, hh, w = h.shape
        return h.reshape(n, c, hh // 2, 2, w).max(axis=3)

    def leaky(h):
        return jnp.where(h >= 0, h, 0.1 * h)

    def seq(h):
        h = pool(leaky(conv(h, p['w1'], p['b1'])))
        h = pool(leaky(conv(h, p['w2'], p['b2'])))
        h = leaky(conv(h, p['w3'], p['b3']))
        h = convT(h, p['wu1'], p['bu1'])
        h = convT(h, p['wu2'], p['bu2'])
        return jax.nn.sigmoid(conv(h, p['wl'], p['bl']))

    return seq(seq(x))


# ----------------------------------- main --------------------------------------

if __name__ == "__main__":
    key = jax.random.PRNGKey(0)
    k_x, k_p = jax.random.split(key)

    N, H, W = 2, 16, 16
    x = jax.random.uniform(k_x, (N, 1, H, W), jnp.float32)   # MNIST-like input in [0,1]
    params = init_params(k_p)

    fwd = jax.jit(functools.partial(cae_forward, tile_b=8))  # 4 grid steps of 8 blocks
    y = jax.block_until_ready(fwd(x, params))
    assert y.shape == (N, 1, H, W), y.shape

    y_ref = cae_reference(x, params)
    err = float(jnp.max(jnp.abs(y - y_ref)))
    if not (err < 2e-3):
        raise AssertionError(f"mismatch vs XLA reference: max abs err = {err}")

    print("KERNEL_OK")
</pallas_src>

<mosaic_0001>
module attributes {stable_mosaic.version = 11 : i64} {
  func.func @cae_kernel(%arg0: i32, %arg1: memref<32x4xf32, #tpu.memory_space<vmem>>, %arg2: memref<1x96xf32, #tpu.memory_space<vmem>>, %arg3: memref<1x32xf32, #tpu.memory_space<vmem>>, %arg4: memref<32x96xf32, #tpu.memory_space<vmem>>, %arg5: memref<1x32xf32, #tpu.memory_space<vmem>>, %arg6: memref<32x96xf32, #tpu.memory_space<vmem>>, %arg7: memref<1x32xf32, #tpu.memory_space<vmem>>, %arg8: memref<32x96xf32, #tpu.memory_space<vmem>>, %arg9: memref<1x32xf32, #tpu.memory_space<vmem>>, %arg10: memref<32x96xf32, #tpu.memory_space<vmem>>, %arg11: memref<1x32xf32, #tpu.memory_space<vmem>>, %arg12: memref<32x3xf32, #tpu.memory_space<vmem>>, %arg13: memref<1x1xf32, #tpu.memory_space<vmem>>, %arg14: memref<32x4xf32, #tpu.memory_space<vmem>>) attributes {dimension_semantics = [#tpu.dimension_semantics<parallel>], iteration_bounds = array<i64: 4>, scalar_prefetch = 0 : i64, scratch_operands = 0 : i64, tpu.core_type = #tpu.core_type<tc>, window_params = [{transform_indices = @transform_0, window_bounds = array<i64: 32, 4>}, {pipeline_mode = #tpu.pipeline_mode<synchronous>, transform_indices = @transform_1, window_bounds = array<i64: 1, 96>}, {pipeline_mode = #tpu.pipeline_mode<synchronous>, transform_indices = @transform_2, window_bounds = array<i64: 1, 32>}, {pipeline_mode = #tpu.pipeline_mode<synchronous>, transform_indices = @transform_3, window_bounds = array<i64: 32, 96>}, {pipeline_mode = #tpu.pipeline_mode<synchronous>, transform_indices = @transform_4, window_bounds = array<i64: 1, 32>}, {pipeline_mode = #tpu.pipeline_mode<synchronous>, transform_indices = @transform_5, window_bounds = array<i64: 32, 96>}, {pipeline_mode = #tpu.pipeline_mode<synchronous>, transform_indices = @transform_6, window_bounds = array<i64: 1, 32>}, {pipeline_mode = #tpu.pipeline_mode<synchronous>, transform_indices = @transform_7, window_bounds = array<i64: 32, 96>}, {pipeline_mode = #tpu.pipeline_mode<synchronous>, transform_indices = @transform_8, window_bounds = array<i64: 1, 32>}, {pipeline_mode = #tpu.pipeline_mode<synchronous>, transform_indices = @transform_9, window_bounds = array<i64: 32, 96>}, {pipeline_mode = #tpu.pipeline_mode<synchronous>, transform_indices = @transform_10, window_bounds = array<i64: 1, 32>}, {pipeline_mode = #tpu.pipeline_mode<synchronous>, transform_indices = @transform_11, window_bounds = array<i64: 32, 3>}, {pipeline_mode = #tpu.pipeline_mode<synchronous>, transform_indices = @transform_12, window_bounds = array<i64: 1, 1>}, {transform_indices = @transform_13, window_bounds = array<i64: 32, 4>}]} {
    %0 = tpu.iota {dimensions = array<i32: 0>} : vector<32x1xi32>
    %c4_i32 = arith.constant 4 : i32
    %c0_i32 = arith.constant 0 : i32
    %1 = arith.cmpi eq, %c4_i32, %c0_i32 : i32
    %c1_i32 = arith.constant 1 : i32
    %2 = arith.select %1, %c1_i32, %c4_i32 : i32
    %3 = vector.broadcast %2 : i32 to vector<32x1xi32>
    %4 = arith.remsi %0, %3 : vector<32x1xi32>
    %c0_i32_0 = arith.constant 0 : i32
    %5 = vector.broadcast %c0_i32_0 : i32 to vector<32x1xi32>
    %6 = arith.cmpi ne, %4, %5 : vector<32x1xi32>
    %c0_i32_1 = arith.constant 0 : i32
    %7 = vector.broadcast %c0_i32_1 : i32 to vector<32x1xi32>
    %8 = arith.cmpi slt, %4, %7 : vector<32x1xi32>
    %c0_i32_2 = arith.constant 0 : i32
    %9 = arith.cmpi slt, %2, %c0_i32_2 : i32
    %10 = vector.broadcast %9 : i1 to vector<32x1xi1>
    %11 = vector.broadcast %10 : vector<32x1xi1> to vector<32x1xi1>
    %12 = arith.xori %8, %11 : vector<32x1xi1>
    %13 = arith.andi %12, %6 : vector<32x1xi1>
    %14 = vector.broadcast %2 : i32 to vector<32x1xi32>
    %15 = arith.addi %4, %14 : vector<32x1xi32>
    %16 = arith.select %13, %15, %4 : vector<32x1xi1>, vector<32x1xi32>
    %c0_i32_3 = arith.constant 0 : i32
    %17 = vector.broadcast %c0_i32_3 : i32 to vector<32x1xi32>
    %18 = arith.cmpi eq, %16, %17 : vector<32x1xi32>
    %c3_i32 = arith.constant 3 : i32
    %19 = vector.broadcast %c3_i32 : i32 to vector<32x1xi32>
    %20 = arith.cmpi eq, %16, %19 : vector<32x1xi32>
    %c0 = arith.constant 0 : index
    %c0_4 = arith.constant 0 : index
    %21 = vector.load %arg2[%c0, %c0_4] : memref<1x96xf32, #tpu.memory_space<vmem>>, vector<1x96xf32>
    %c0_5 = arith.constant 0 : index
    %c0_6 = arith.constant 0 : index
    %22 = vector.load %arg3[%c0_5, %c0_6] : memref<1x32xf32, #tpu.memory_space<vmem>>, vector<1x32xf32>
    %c0_7 = arith.constant 0 : index
    %c0_8 = arith.constant 0 : index
    %23 = vector.load %arg4[%c0_7, %c0_8] : memref<32x96xf32, #tpu.memory_space<vmem>>, vector<32x96xf32>
    %c0_9 = arith.constant 0 : index
    %c0_10 = arith.constant 0 : index
    %24 = vector.load %arg5[%c0_9, %c0_10] : memref<1x32xf32, #tpu.memory_space<vmem>>, vector<1x32xf32>
    %c0_11 = arith.constant 0 : index
    %c0_12 = arith.constant 0 : index
    %25 = vector.load %arg6[%c0_11, %c0_12] : memref<32x96xf32, #tpu.memory_space<vmem>>, vector<32x96xf32>
    %c0_13 = arith.constant 0 : index
    %c0_14 = arith.constant 0 : index
    %26 = vector.load %arg7[%c0_13, %c0_14] : memref<1x32xf32, #tpu.memory_space<vmem>>, vector<1x32xf32>
    %c0_15 = arith.constant 0 : index
    %c0_16 = arith.constant 0 : index
    %27 = vector.load %arg8[%c0_15, %c0_16] : memref<32x96xf32, #tpu.memory_space<vmem>>, vector<32x96xf32>
    %c0_17 = arith.constant 0 : index
    %c0_18 = arith.constant 0 : index
    %28 = vector.load %arg9[%c0_17, %c0_18] : memref<1x32xf32, #tpu.memory_space<vmem>>, vector<1x32xf32>
    %c0_19 = arith.constant 0 : index
    %c0_20 = arith.constant 0 : index
    %29 = vector.load %arg10[%c0_19, %c0_20] : memref<32x96xf32, #tpu.memory_space<vmem>>, vector<32x96xf32>
    %c0_21 = arith.constant 0 : index
    %c0_22 = arith.constant 0 : index
    %30 = vector.load %arg11[%c0_21, %c0_22] : memref<1x32xf32, #tpu.memory_space<vmem>>, vector<1x32xf32>
    %c0_23 = arith.constant 0 : index
    %c0_24 = arith.constant 0 : index
    %31 = vector.load %arg12[%c0_23, %c0_24] : memref<32x3xf32, #tpu.memory_space<vmem>>, vector<32x3xf32>
    %c0_25 = arith.constant 0 : index
    %c0_26 = arith.constant 0 : index
    %32 = vector.load %arg13[%c0_25, %c0_26] : memref<1x1xf32, #tpu.memory_space<vmem>>, vector<1x1xf32>
    %c0_27 = arith.constant 0 : index
    %c0_28 = arith.constant 0 : index
    %33 = vector.load %arg1[%c0_27, %c0_28] : memref<32x4xf32, #tpu.memory_space<vmem>>, vector<32x4xf32>
    %34 = vector.extract_strided_slice %33 {offsets = [0, 0], sizes = [32, 1], strides = [1, 1]} : vector<32x4xf32> to vector<32x1xf32>
    %35 = vector.extract_strided_slice %33 {offsets = [0, 1], sizes = [32, 1], strides = [1, 1]} : vector<32x4xf32> to vector<32x1xf32>
    %36 = vector.extract_strided_slice %33 {offsets = [0, 2], sizes = [32, 1], strides = [1, 1]} : vector<32x4xf32> to vector<32x1xf32>
    %37 = vector.extract_strided_slice %33 {offsets = [0, 3], sizes = [32, 1], strides = [1, 1]} : vector<32x4xf32> to vector<32x1xf32>
    %38 = vector.broadcast %34 : vector<32x1xf32> to vector<32x96xf32>
    %39 = vector.broadcast %21 : vector<1x96xf32> to vector<32x96xf32>
    %40 = arith.mulf %38, %39 : vector<32x96xf32>
    %41 = vector.broadcast %35 : vector<32x1xf32> to vector<32x96xf32>
    %42 = vector.broadcast %21 : vector<1x96xf32> to vector<32x96xf32>
    %43 = arith.mulf %41, %42 : vector<32x96xf32>
    %44 = vector.broadcast %36 : vector<32x1xf32> to vector<32x96xf32>
    %45 = vector.broadcast %21 : vector<1x96xf32> to vector<32x96xf32>
    %46 = arith.mulf %44, %45 : vector<32x96xf32>
    %47 = vector.broadcast %37 : vector<32x1xf32> to vector<32x96xf32>
    %48 = vector.broadcast %21 : vector<1x96xf32> to vector<32x96xf32>
    %49 = arith.mulf %47, %48 : vector<32x96xf32>
    %50 = vector.extract_strided_slice %49 {offsets = [0, 0], sizes = [32, 32], strides = [1, 1]} : vector<32x96xf32> to vector<32x32xf32>
    %cst = arith.constant 0.000000e+00 : f32
    %51 = vector.broadcast %cst : f32 to vector<1x32xf32>
    %52 = vector.extract_strided_slice %50 {offsets = [0, 0], sizes = [31, 32], strides = [1, 1]} : vector<32x32xf32> to vector<31x32xf32>
    %53 = tpu.concatenate %51, %52 in 0 : vector<1x32xf32>, vector<31x32xf32> -> vector<32x32xf32>
    %cst_29 = arith.constant 0.000000e+00 : f32
    %54 = vector.shape_cast %18 : vector<32x1xi1> to vector<32x1xi1>
    %55 = vector.broadcast %54 : vector<32x1xi1> to vector<32x32xi1>
    %56 = vector.broadcast %cst_29 : f32 to vector<32x32xf32>
    %57 = arith.select %55, %56, %53 : vector<32x32xi1>, vector<32x32xf32>
    %58 = vector.extract_strided_slice %43 {offsets = [0, 64], sizes = [32, 32], strides = [1, 1]} : vector<32x96xf32> to vector<32x32xf32>
    %59 = vector.extract_strided_slice %40 {offsets = [0, 32], sizes = [32, 32], strides = [1, 1]} : vector<32x96xf32> to vector<32x32xf32>
    %60 = arith.addf %57, %59 : vector<32x32xf32>
    %61 = arith.addf %60, %58 : vector<32x32xf32>
    %62 = vector.broadcast %22 : vector<1x32xf32> to vector<32x32xf32>
    %63 = arith.addf %61, %62 : vector<32x32xf32>
    %64 = vector.extract_strided_slice %40 {offsets = [0, 0], sizes = [32, 32], strides = [1, 1]} : vector<32x96xf32> to vector<32x32xf32>
    %65 = vector.extract_strided_slice %46 {offsets = [0, 64], sizes = [32, 32], strides = [1, 1]} : vector<32x96xf32> to vector<32x32xf32>
    %66 = vector.extract_strided_slice %43 {offsets = [0, 32], sizes = [32, 32], strides = [1, 1]} : vector<32x96xf32> to vector<32x32xf32>
    %67 = arith.addf %64, %66 : vector<32x32xf32>
    %68 = arith.addf %67, %65 : vector<32x32xf32>
    %69 = vector.broadcast %22 : vector<1x32xf32> to vector<32x32xf32>
    %70 = arith.addf %68, %69 : vector<32x32xf32>
    %71 = vector.extract_strided_slice %43 {offsets = [0, 0], sizes = [32, 32], strides = [1, 1]} : vector<32x96xf32> to vector<32x32xf32>
    %72 = vector.extract_strided_slice %49 {offsets = [0, 64], sizes = [32, 32], strides = [1, 1]} : vector<32x96xf32> to vector<32x32xf32>
    %73 = vector.extract_strided_slice %46 {offsets = [0, 32], sizes = [32, 32], strides = [1, 1]} : vector<32x96xf32> to vector<32x32xf32>
    %74 = arith.addf %71, %73 : vector<32x32xf32>
    %75 = arith.addf %74, %72 : vector<32x32xf32>
    %76 = vector.broadcast %22 : vector<1x32xf32> to vector<32x32xf32>
    %77 = arith.addf %75, %76 : vector<32x32xf32>
    %78 = vector.extract_strided_slice %46 {offsets = [0, 0], sizes = [32, 32], strides = [1, 1]} : vector<32x96xf32> to vector<32x32xf32>
    %79 = vector.extract_strided_slice %40 {offsets = [0, 64], sizes = [32, 32], strides = [1, 1]} : vector<32x96xf32> to vector<32x32xf32>
    %cst_30 = arith.constant 0.000000e+00 : f32
    %80 = vector.broadcast %cst_30 : f32 to vector<1x32xf32>
    %81 = vector.extract_strided_slice %79 {offsets = [1, 0], sizes = [31, 32], strides = [1, 1]} : vector<32x32xf32> to vector<31x32xf32>
    %82 = tpu.concatenate %81, %80 in 0 : vector<31x32xf32>, vector<1x32xf32> -> vector<32x32xf32>
    %cst_31 = arith.constant 0.000000e+00 : f32
    %83 = vector.shape_cast %20 : vector<32x1xi1> to vector<32x1xi1>
    %84 = vector.broadcast %83 : vector<32x1xi1> to vector<32x32xi1>
    %85 = vector.broadcast %cst_31 : f32 to vector<32x32xf32>
    %86 = arith.select %84, %85, %82 : vector<32x32xi1>, vector<32x32xf32>
    %87 = vector.extract_strided_slice %49 {offsets = [0, 32], sizes = [32, 32], strides = [1, 1]} : vector<32x96xf32> to vector<32x32xf32>
    %88 = arith.addf %78, %87 : vector<32x32xf32>
    %89 = arith.addf %88, %86 : vector<32x32xf32>
    %90 = vector.broadcast %22 : vector<1x32xf32> to vector<32x32xf32>
    %91 = arith.addf %89, %90 : vector<32x32xf32>
    %cst_32 = arith.constant 0.000000e+00 : f32
    %92 = vector.broadcast %cst_32 : f32 to vector<32x32xf32>
    %93 = arith.cmpf oge, %63, %92 : vector<32x32xf32>
    %cst_33 = arith.constant 1.000000e-01 : f32
    %94 = vector.broadcast %cst_33 : f32 to vector<32x32xf32>
    %95 = arith.mulf %94, %63 : vector<32x32xf32>
    %96 = arith.select %93, %63, %95 : vector<32x32xi1>, vector<32x32xf32>
    %cst_34 = arith.constant 0.000000e+00 : f32
    %97 = vector.broadcast %cst_34 : f32 to vector<32x32xf32>
    %98 = arith.cmpf oge, %70, %97 : vector<32x32xf32>
    %cst_35 = arith.constant 1.000000e-01 : f32
    %99 = vector.broadcast %cst_35 : f32 to vector<32x32xf32>
    %100 = arith.mulf %99, %70 : vector<32x32xf32>
    %101 = arith.select %98, %70, %100 : vector<32x32xi1>, vector<32x32xf32>
    %cst_36 = arith.constant 0.000000e+00 : f32
    %102 = vector.broadcast %cst_36 : f32 to vector<32x32xf32>
    %103 = arith.cmpf oge, %77, %102 : vector<32x32xf32>
    %cst_37 = arith.constant 1.000000e-01 : f32
    %104 = vector.broadcast %cst_37 : f32 to vector<32x32xf32>
    %105 = arith.mulf %104, %77 : vector<32x32xf32>
    %106 = arith.select %103, %77, %105 : vector<32x32xi1>, vector<32x32xf32>
    %cst_38 = arith.constant 0.000000e+00 : f32
    %107 = vector.broadcast %cst_38 : f32 to vector<32x32xf32>
    %108 = arith.cmpf oge, %91, %107 : vector<32x32xf32>
    %cst_39 = arith.constant 1.000000e-01 : f32
    %109 = vector.broadcast %cst_39 : f32 to vector<32x32xf32>
    %110 = arith.mulf %109, %91 : vector<32x32xf32>
    %111 = arith.select %108, %91, %110 : vector<32x32xi1>, vector<32x32xf32>
    %112 = arith.maximumf %96, %101 : vector<32x32xf32>
    %113 = arith.maximumf %106, %111 : vector<32x32xf32>
    %cst_40 = arith.constant dense<0.000000e+00> : vector<32x96xf32>
    %114 = tpu.matmul %112, %23, %cst_40 {dimension_numbers = #tpu.dot_dimension_numbers<[1], [0], [0], [1], [0, 0, 1, 1], [], []>} : vector<32x32xf32>, vector<32x96xf32>, vector<32x96xf32> -> vector<32x96xf32>
    %cst_41 = arith.constant dense<0.000000e+00> : vector<32x96xf32>
    %115 = tpu.matmul %113, %23, %cst_41 {dimension_numbers = #tpu.dot_dimension_numbers<[1], [0], [0], [1], [0, 0, 1, 1], [], []>} : vector<32x32xf32>, vector<32x96xf32>, vector<32x96xf32> -> vector<32x96xf32>
    %116 = vector.extract_strided_slice %115 {offsets = [0, 0], sizes = [32, 32], strides = [1, 1]} : vector<32x96xf32> to vector<32x32xf32>
    %cst_42 = arith.constant 0.000000e+00 : f32
    %117 = vector.broadcast %cst_42 : f32 to vector<1x32xf32>
    %118 = vector.extract_strided_slice %116 {offsets = [0, 0], sizes = [31, 32], strides = [1, 1]} : vector<32x32xf32> to vector<31x32xf32>
    %119 = tpu.concatenate %117, %118 in 0 : vector<1x32xf32>, vector<31x32xf32> -> vector<32x32xf32>
    %cst_43 = arith.constant 0.000000e+00 : f32
    %120 = vector.shape_cast %18 : vector<32x1xi1> to vector<32x1xi1>
    %121 = vector.broadcast %120 : vector<32x1xi1> to vector<32x32xi1>
    %122 = vector.broadcast %cst_43 : f32 to vector<32x32xf32>
    %123 = arith.select %121, %122, %119 : vector<32x32xi1>, vector<32x32xf32>
    %124 = vector.extract_strided_slice %115 {offsets = [0, 64], sizes = [32, 32], strides = [1, 1]} : vector<32x96xf32> to vector<32x32xf32>
    %125 = vector.extract_strided_slice %114 {offsets = [0, 32], sizes = [32, 32], strides = [1, 1]} : vector<32x96xf32> to vector<32x32xf32>
    %126 = arith.addf %123, %125 : vector<32x32xf32>
    %127 = arith.addf %126, %124 : vector<32x32xf32>
    %128 = vector.broadcast %24 : vector<1x32xf32> to vector<32x32xf32>
    %129 = arith.addf %127, %128 : vector<32x32xf32>
    %130 = vector.extract_strided_slice %114 {offsets = [0, 0], sizes = [32, 32], strides = [1, 1]} : vector<32x96xf32> to vector<32x32xf32>
    %131 = vector.extract_strided_slice %114 {offsets = [0, 64], sizes = [32, 32], strides = [1, 1]} : vector<32x96xf32> to vector<32x32xf32>
    %cst_44 = arith.constant 0.000000e+00 : f32
    %132 = vector.broadcast %cst_44 : f32 to vector<1x32xf32>
    %133 = vector.extract_strided_slice %131 {offsets = [1, 0], sizes = [31, 32], strides = [1, 1]} : vector<32x32xf32> to vector<31x32xf32>
    %134 = tpu.concatenate %133, %132 in 0 : vector<31x32xf32>, vector<1x32xf32> -> vector<32x32xf32>
    %cst_45 = arith.constant 0.000000e+00 : f32
    %135 = vector.shape_cast %20 : vector<32x1xi1> to vector<32x1xi1>
    %136 = vector.broadcast %135 : vector<32x1xi1> to vector<32x32xi1>
    %137 = vector.broadcast %cst_45 : f32 to vector<32x32xf32>
    %138 = arith.select %136, %137, %134 : vector<32x32xi1>, vector<32x32xf32>
    %139 = vector.extract_strided_slice %115 {offsets = [0, 32], sizes = [32, 32], strides = [1, 1]} : vector<32x96xf32> to vector<32x32xf32>
    %140 = arith.addf %130, %139 : vector<32x32xf32>
    %141 = arith.addf %140, %138 : vector<32x32xf32>
    %142 = vector.broadcast %24 : vector<1x32xf32> to vector<32x32xf32>
    %143 = arith.addf %141, %142 : vector<32x32xf32>
    %cst_46 = arith.constant 0.000000e+00 : f32
    %144 = vector.broadcast %cst_46 : f32 to vector<32x32xf32>
    %145 = arith.cmpf oge, %129, %144 : vector<32x32xf32>
    %cst_47 = arith.constant 1.000000e-01 : f32
    %146 = vector.broadcast %cst_47 : f32 to vector<32x32xf32>
    %147 = arith.mulf %146, %129 : vector<32x32xf32>
    %148 = arith.select %145, %129, %147 : vector<32x32xi1>, vector<32x32xf32>
    %cst_48 = arith.constant 0.000000e+00 : f32
    %149 = vector.broadcast %cst_48 : f32 to vector<32x32xf32>
    %150 = arith.cmpf oge, %143, %149 : vector<32x32xf32>
    %cst_49 = arith.constant 1.000000e-01 : f32
    %151 = vector.broadcast %cst_49 : f32 to vector<32x32xf32>
    %152 = arith.mulf %151, %143 : vector<32x32xf32>
    %153 = arith.select %150, %143, %152 : vector<32x32xi1>, vector<32x32xf32>
    %154 = arith.maximumf %148, %153 : vector<32x32xf32>
    %cst_50 = arith.constant dense<0.000000e+00> : vector<32x96xf32>
    %155 = tpu.matmul %154, %25, %cst_50 {dimension_numbers = #tpu.dot_dimension_numbers<[1], [0], [0], [1], [0, 0, 1, 1], [], []>} : vector<32x32xf32>, vector<32x96xf32>, vector<32x96xf32> -> vector<32x96xf32>
    %156 = vector.extract_strided_slice %155 {offsets = [0, 0], sizes = [32, 32], strides = [1, 1]} : vector<32x96xf32> to vector<32x32xf32>
    %cst_51 = arith.constant 0.000000e+00 : f32
    %157 = vector.broadcast %cst_51 : f32 to vector<1x32xf32>
    %158 = vector.extract_strided_slice %156 {offsets = [0, 0], sizes = [31, 32], strides = [1, 1]} : vector<32x32xf32> to vector<31x32xf32>
    %159 = tpu.concatenate %157, %158 in 0 : vector<1x32xf32>, vector<31x32xf32> -> vector<32x32xf32>
    %cst_52 = arith.constant 0.000000e+00 : f32
    %160 = vector.shape_cast %18 : vector<32x1xi1> to vector<32x1xi1>
    %161 = vector.broadcast %160 : vector<32x1xi1> to vector<32x32xi1>
    %162 = vector.broadcast %cst_52 : f32 to vector<32x32xf32>
    %163 = arith.select %161, %162, %159 : vector<32x32xi1>, vector<32x32xf32>
    %164 = vector.extract_strided_slice %155 {offsets = [0, 64], sizes = [32, 32], strides = [1, 1]} : vector<32x96xf32> to vector<32x32xf32>
    %cst_53 = arith.constant 0.000000e+00 : f32
    %165 = vector.broadcast %cst_53 : f32 to vector<1x32xf32>
    %166 = vector.extract_strided_slice %164 {offsets = [1, 0], sizes = [31, 32], strides = [1, 1]} : vector<32x32xf32> to vector<31x32xf32>
    %167 = tpu.concatenate %166, %165 in 0 : vector<31x32xf32>, vector<1x32xf32> -> vector<32x32xf32>
    %cst_54 = arith.constant 0.000000e+00 : f32
    %168 = vector.shape_cast %20 : vector<32x1xi1> to vector<32x1xi1>
    %169 = vector.broadcast %168 : vector<32x1xi1> to vector<32x32xi1>
    %170 = vector.broadcast %cst_54 : f32 to vector<32x32xf32>
    %171 = arith.select %169, %170, %167 : vector<32x32xi1>, vector<32x32xf32>
    %172 = vector.extract_strided_slice %155 {offsets = [0, 32], sizes = [32, 32], strides = [1, 1]} : vector<32x96xf32> to vector<32x32xf32>
    %173 = arith.addf %163, %172 : vector<32x32xf32>
    %174 = arith.addf %173, %171 : vector<32x32xf32>
    %175 = vector.broadcast %26 : vector<1x32xf32> to vector<32x32xf32>
    %176 = arith.addf %174, %175 : vector<32x32xf32>
    %cst_55 = arith.constant 0.000000e+00 : f32
    %177 = vector.broadcast %cst_55 : f32 to vector<32x32xf32>
    %178 = arith.cmpf oge, %176, %177 : vector<32x32xf32>
    %cst_56 = arith.constant 1.000000e-01 : f32
    %179 = vector.broadcast %cst_56 : f32 to vector<32x32xf32>
    %180 = arith.mulf %179, %176 : vector<32x32xf32>
    %181 = arith.select %178, %176, %180 : vector<32x32xi1>, vector<32x32xf32>
    %cst_57 = arith.constant dense<0.000000e+00> : vector<32x96xf32>
    %182 = tpu.matmul %181, %27, %cst_57 {dimension_numbers = #tpu.dot_dimension_numbers<[1], [0], [0], [1], [0, 0, 1, 1], [], []>} : vector<32x32xf32>, vector<32x96xf32>, vector<32x96xf32> -> vector<32x96xf32>
    %183 = vector.extract_strided_slice %182 {offsets = [0, 32], sizes = [32, 32], strides = [1, 1]} : vector<32x96xf32> to vector<32x32xf32>
    %184 = vector.broadcast %28 : vector<1x32xf32> to vector<32x32xf32>
    %185 = arith.addf %183, %184 : vector<32x32xf32>
    %186 = vector.extract_strided_slice %182 {offsets = [0, 0], sizes = [32, 32], strides = [1, 1]} : vector<32x96xf32> to vector<32x32xf32>
    %cst_58 = arith.constant 0.000000e+00 : f32
    %187 = vector.broadcast %cst_58 : f32 to vector<1x32xf32>
    %188 = vector.extract_strided_slice %186 {offsets = [1, 0], sizes = [31, 32], strides = [1, 1]} : vector<32x32xf32> to vector<31x32xf32>
    %189 = tpu.concatenate %188, %187 in 0 : vector<31x32xf32>, vector<1x32xf32> -> vector<32x32xf32>
    %cst_59 = arith.constant 0.000000e+00 : f32
    %190 = vector.shape_cast %20 : vector<32x1xi1> to vector<32x1xi1>
    %191 = vector.broadcast %190 : vector<32x1xi1> to vector<32x32xi1>
    %192 = vector.broadcast %cst_59 : f32 to vector<32x32xf32>
    %193 = arith.select %191, %192, %189 : vector<32x32xi1>, vector<32x32xf32>
    %194 = vector.extract_strided_slice %182 {offsets = [0, 64], sizes = [32, 32], strides = [1, 1]} : vector<32x96xf32> to vector<32x32xf32>
    %195 = arith.addf %193, %194 : vector<32x32xf32>
    %196 = vector.broadcast %28 : vector<1x32xf32> to vector<32x32xf32>
    %197 = arith.addf %195, %196 : vector<32x32xf32>
    %cst_60 = arith.constant dense<0.000000e+00> : vector<32x96xf32>
    %198 = tpu.matmul %185, %29, %cst_60 {dimension_numbers = #tpu.dot_dimension_numbers<[1], [0], [0], [1], [0, 0, 1, 1], [], []>} : vector<32x32xf32>, vector<32x96xf32>, vector<32x96xf32> -> vector<32x96xf32>
    %cst_61 = arith.constant dense<0.000000e+00> : vector<32x96xf32>
    %199 = tpu.matmul %197, %29, %cst_61 {dimension_numbers = #tpu.dot_dimension_numbers<[1], [0], [0], [1], [0, 0, 1, 1], [], []>} : vector<32x32xf32>, vector<32x96xf32>, vector<32x96xf32> -> vector<32x96xf32>
    %200 = vector.extract_strided_slice %198 {offsets = [0, 32], sizes = [32, 32], strides = [1, 1]} : vector<32x96xf32> to vector<32x32xf32>
    %201 = vector.broadcast %30 : vector<1x32xf32> to vector<32x32xf32>
    %202 = arith.addf %200, %201 : vector<32x32xf32>
    %203 = vector.extract_strided_slice %199 {offsets = [0, 0], sizes = [32, 32], strides = [1, 1]} : vector<32x96xf32> to vector<32x32xf32>
    %204 = vector.extract_strided_slice %198 {offsets = [0, 64], sizes = [32, 32], strides = [1, 1]} : vector<32x96xf32> to vector<32x32xf32>
    %205 = arith.addf %203, %204 : vector<32x32xf32>
    %206 = vector.broadcast %30 : vector<1x32xf32> to vector<32x32xf32>
    %207 = arith.addf %205, %206 : vector<32x32xf32>
    %208 = vector.extract_strided_slice %199 {offsets = [0, 32], sizes = [32, 32], strides = [1, 1]} : vector<32x96xf32> to vector<32x32xf32>
    %209 = vector.broadcast %30 : vector<1x32xf32> to vector<32x32xf32>
    %210 = arith.addf %208, %209 : vector<32x32xf32>
    %211 = vector.extract_strided_slice %198 {offsets = [0, 0], sizes = [32, 32], strides = [1, 1]} : vector<32x96xf32> to vector<32x32xf32>
    %cst_62 = arith.constant 0.000000e+00 : f32
    %212 = vector.broadcast %cst_62 : f32 to vector<1x32xf32>
    %213 = vector.extract_strided_slice %211 {offsets = [1, 0], sizes = [31, 32], strides = [1, 1]} : vector<32x32xf32> to vector<31x32xf32>
    %214 = tpu.concatenate %213, %212 in 0 : vector<31x32xf32>, vector<1x32xf32> -> vector<32x32xf32>
    %cst_63 = arith.constant 0.000000e+00 : f32
    %215 = vector.shape_cast %20 : vector<32x1xi1> to vector<32x1xi1>
    %216 = vector.broadcast %215 : vector<32x1xi1> to vector<32x32xi1>
    %217 = vector.broadcast %cst_63 : f32 to vector<32x32xf32>
    %218 = arith.select %216, %217, %214 : vector<32x32xi1>, vector<32x32xf32>
    %219 = vector.extract_strided_slice %199 {offsets = [0, 64], sizes = [32, 32], strides = [1, 1]} : vector<32x96xf32> to vector<32x32xf32>
    %220 = arith.addf %218, %219 : vector<32x32xf32>
    %221 = vector.broadcast %30 : vector<1x32xf32> to vector<32x32xf32>
    %222 = arith.addf %220, %221 : vector<32x32xf32>
    %cst_64 = arith.constant dense<0.000000e+00> : vector<32x3xf32>
    %223 = tpu.matmul %202, %31, %cst_64 {dimension_numbers = #tpu.dot_dimension_numbers<[1], [0], [0], [1], [0, 0, 1, 1], [], []>} : vector<32x32xf32>, vector<32x3xf32>, vector<32x3xf32> -> vector<32x3xf32>
    %cst_65 = arith.constant dense<0.000000e+00> : vector<32x3xf32>
    %224 = tpu.matmul %207, %31, %cst_65 {dimension_numbers = #tpu.dot_dimension_numbers<[1], [0], [0], [1], [0, 0, 1, 1], [], []>} : vector<32x32xf32>, vector<32x3xf32>, vector<32x3xf32> -> vector<32x3xf32>
    %cst_66 = arith.constant dense<0.000000e+00> : vector<32x3xf32>
    %225 = tpu.matmul %210, %31, %cst_66 {dimension_numbers = #tpu.dot_dimension_numbers<[1], [0], [0], [1], [0, 0, 1, 1], [], []>} : vector<32x32xf32>, vector<32x3xf32>, vector<32x3xf32> -> vector<32x3xf32>
    %cst_67 = arith.constant dense<0.000000e+00> : vector<32x3xf32>
    %226 = tpu.matmul %222, %31, %cst_67 {dimension_numbers = #tpu.dot_dimension_numbers<[1], [0], [0], [1], [0, 0, 1, 1], [], []>} : vector<32x32xf32>, vector<32x3xf32>, vector<32x3xf32> -> vector<32x3xf32>
    %227 = vector.extract_strided_slice %226 {offsets = [0, 0], sizes = [32, 1], strides = [1, 1]} : vector<32x3xf32> to vector<32x1xf32>
    %cst_68 = arith.constant 0.000000e+00 : f32
    %228 = vector.broadcast %cst_68 : f32 to vector<1x1xf32>
    %229 = vector.extract_strided_slice %227 {offsets = [0, 0], sizes = [31, 1], strides = [1, 1]} : vector<32x1xf32> to vector<31x1xf32>
    %230 = tpu.concatenate %228, %229 in 0 : vector<1x1xf32>, vector<31x1xf32> -> vector<32x1xf32>
    %cst_69 = arith.constant 0.000000e+00 : f32
    %231 = vector.broadcast %cst_69 : f32 to vector<32x1xf32>
    %232 = arith.select %18, %231, %230 : vector<32x1xi1>, vector<32x1xf32>
    %233 = vector.extract_strided_slice %224 {offsets = [0, 2], sizes = [32, 1], strides = [1, 1]} : vector<32x3xf32> to vector<32x1xf32>
    %234 = vector.extract_strided_slice %223 {offsets = [0, 1], sizes = [32, 1], strides = [1, 1]} : vector<32x3xf32> to vector<32x1xf32>
    %235 = arith.addf %232, %234 : vector<32x1xf32>
    %236 = arith.addf %235, %233 : vector<32x1xf32>
    %237 = vector.broadcast %32 : vector<1x1xf32> to vector<32x1xf32>
    %238 = arith.addf %236, %237 : vector<32x1xf32>
    %239 = vector.extract_strided_slice %223 {offsets = [0, 0], sizes = [32, 1], strides = [1, 1]} : vector<32x3xf32> to vector<32x1xf32>
    %240 = vector.extract_strided_slice %225 {offsets = [0, 2], sizes = [32, 1], strides = [1, 1]} : vector<32x3xf32> to vector<32x1xf32>
    %241 = vector.extract_strided_slice %224 {offsets = [0, 1], sizes = [32, 1], strides = [1, 1]} : vector<32x3xf32> to vector<32x1xf32>
    %242 = arith.addf %239, %241 : vector<32x1xf32>
    %243 = arith.addf %242, %240 : vector<32x1xf32>
    %244 = vector.broadcast %32 : vector<1x1xf32> to vector<32x1xf32>
    %245 = arith.addf %243, %244 : vector<32x1xf32>
    %246 = vector.extract_strided_slice %224 {offsets = [0, 0], sizes = [32, 1], strides = [1, 1]} : vector<32x3xf32> to vector<32x1xf32>
    %247 = vector.extract_strided_slice %226 {offsets = [0, 2], sizes = [32, 1], strides = [1, 1]} : vector<32x3xf32> to vector<32x1xf32>
    %248 = vector.extract_strided_slice %225 {offsets = [0, 1], sizes = [32, 1], strides = [1, 1]} : vector<32x3xf32> to vector<32x1xf32>
    %249 = arith.addf %246, %248 : vector<32x1xf32>
    %250 = arith.addf %249, %247 : vector<32x1xf32>
    %251 = vector.broadcast %32 : vector<1x1xf32> to vector<32x1xf32>
    %252 = arith.addf %250, %251 : vector<32x1xf32>
    %253 = vector.extract_strided_slice %225 {offsets = [0, 0], sizes = [32, 1], strides = [1, 1]} : vector<32x3xf32> to vector<32x1xf32>
    %254 = vector.extract_strided_slice %223 {offsets = [0, 2], sizes = [32, 1], strides = [1, 1]} : vector<32x3xf32> to vector<32x1xf32>
    %cst_70 = arith.constant 0.000000e+00 : f32
    %255 = vector.broadcast %cst_70 : f32 to vector<1x1xf32>
    %256 = vector.extract_strided_slice %254 {offsets = [1, 0], sizes = [31, 1], strides = [1, 1]} : vector<32x1xf32> to vector<31x1xf32>
    %257 = tpu.concatenate %256, %255 in 0 : vector<31x1xf32>, vector<1x1xf32> -> vector<32x1xf32>
    %cst_71 = arith.constant 0.000000e+00 : f32
    %258 = vector.broadcast %cst_71 : f32 to vector<32x1xf32>
    %259 = arith.select %20, %258, %257 : vector<32x1xi1>, vector<32x1xf32>
    %260 = vector.extract_strided_slice %226 {offsets = [0, 1], sizes = [32, 1], strides = [1, 1]} : vector<32x3xf32> to vector<32x1xf32>
    %261 = arith.addf %253, %260 : vector<32x1xf32>
    %262 = arith.addf %261, %259 : vector<32x1xf32>
    %263 = vector.broadcast %32 : vector<1x1xf32> to vector<32x1xf32>
    %264 = arith.addf %262, %263 : vector<32x1xf32>
    %cst_72 = arith.constant 0.000000e+00 : f32
    %265 = vector.broadcast %cst_72 : f32 to vector<32x1xf32>
    %266 = arith.subf %265, %238 : vector<32x1xf32>
    %267 = math.exp %266 : vector<32x1xf32>
    %cst_73 = arith.constant 1.000000e+00 : f32
    %268 = vector.broadcast %cst_73 : f32 to vector<32x1xf32>
    %269 = arith.addf %268, %267 : vector<32x1xf32>
    %270 = tpu.reciprocal %269 : vector<32x1xf32> -> vector<32x1xf32>
    %cst_74 = arith.constant 0.000000e+00 : f32
    %271 = vector.broadcast %cst_74 : f32 to vector<32x1xf32>
    %272 = arith.subf %271, %245 : vector<32x1xf32>
    %273 = math.exp %272 : vector<32x1xf32>
    %cst_75 = arith.constant 1.000000e+00 : f32
    %274 = vector.broadcast %cst_75 : f32 to vector<32x1xf32>
    %275 = arith.addf %274, %273 : vector<32x1xf32>
    %276 = tpu.reciprocal %275 : vector<32x1xf32> -> vector<32x1xf32>
    %cst_76 = arith.constant 0.000000e+00 : f32
    %277 = vector.broadcast %cst_76 : f32 to vector<32x1xf32>
    %278 = arith.subf %277, %252 : vector<32x1xf32>
    %279 = math.exp %278 : vector<32x1xf32>
    %cst_77 = arith.constant 1.000000e+00 : f32
    %280 = vector.broadcast %cst_77 : f32 to vector<32x1xf32>
    %281 = arith.addf %280, %279 : vector<32x1xf32>
    %282 = tpu.reciprocal %281 : vector<32x1xf32> -> vector<32x1xf32>
    %cst_78 = arith.constant 0.000000e+00 : f32
    %283 = vector.broadcast %cst_78 : f32 to vector<32x1xf32>
    %284 = arith.subf %283, %264 : vector<32x1xf32>
    %285 = math.exp %284 : vector<32x1xf32>
    %cst_79 = arith.constant 1.000000e+00 : f32
    %286 = vector.broadcast %cst_79 : f32 to vector<32x1xf32>
    %287 = arith.addf %286, %285 : vector<32x1xf32>
    %288 = tpu.reciprocal %287 : vector<32x1xf32> -> vector<32x1xf32>
    %289 = vector.broadcast %270 : vector<32x1xf32> to vector<32x96xf32>
    %290 = vector.broadcast %21 : vector<1x96xf32> to vector<32x96xf32>
    %291 = arith.mulf %289, %290 : vector<32x96xf32>
    %292 = vector.broadcast %276 : vector<32x1xf32> to vector<32x96xf32>
    %293 = vector.broadcast %21 : vector<1x96xf32> to vector<32x96xf32>
    %294 = arith.mulf %292, %293 : vector<32x96xf32>
    %295 = vector.broadcast %282 : vector<32x1xf32> to vector<32x96xf32>
    %296 = vector.broadcast %21 : vector<1x96xf32> to vector<32x96xf32>
    %297 = arith.mulf %295, %296 : vector<32x96xf32>
    %298 = vector.broadcast %288 : vector<32x1xf32> to vector<32x96xf32>
    %299 = vector.broadcast %21 : vector<1x96xf32> to vector<32x96xf32>
    %300 = arith.mulf %298, %299 : vector<32x96xf32>
    %301 = vector.extract_strided_slice %300 {offsets = [0, 0], sizes = [32, 32], strides = [1, 1]} : vector<32x96xf32> to vector<32x32xf32>
    %cst_80 = arith.constant 0.000000e+00 : f32
    %302 = vector.broadcast %cst_80 : f32 to vector<1x32xf32>
    %303 = vector.extract_strided_slice %301 {offsets = [0, 0], sizes = [31, 32], strides = [1, 1]} : vector<32x32xf32> to vector<31x32xf32>
    %304 = tpu.concatenate %302, %303 in 0 : vector<1x32xf32>, vector<31x32xf32> -> vector<32x32xf32>
    %cst_81 = arith.constant 0.000000e+00 : f32
    %305 = vector.shape_cast %18 : vector<32x1xi1> to vector<32x1xi1>
    %306 = vector.broadcast %305 : vector<32x1xi1> to vector<32x32xi1>
    %307 = vector.broadcast %cst_81 : f32 to vector<32x32xf32>
    %308 = arith.select %306, %307, %304 : vector<32x32xi1>, vector<32x32xf32>
    %309 = vector.extract_strided_slice %294 {offsets = [0, 64], sizes = [32, 32], strides = [1, 1]} : vector<32x96xf32> to vector<32x32xf32>
    %310 = vector.extract_strided_slice %291 {offsets = [0, 32], sizes = [32, 32], strides = [1, 1]} : vector<32x96xf32> to vector<32x32xf32>
    %311 = arith.addf %308, %310 : vector<32x32xf32>
    %312 = arith.addf %311, %309 : vector<32x32xf32>
    %313 = vector.broadcast %22 : vector<1x32xf32> to vector<32x32xf32>
    %314 = arith.addf %312, %313 : vector<32x32xf32>
    %315 = vector.extract_strided_slice %291 {offsets = [0, 0], sizes = [32, 32], strides = [1, 1]} : vector<32x96xf32> to vector<32x32xf32>
    %316 = vector.extract_strided_slice %297 {offsets = [0, 64], sizes = [32, 32], strides = [1, 1]} : vector<32x96xf32> to vector<32x32xf32>
    %317 = vector.extract_strided_slice %294 {offsets = [0, 32], sizes = [32, 32], strides = [1, 1]} : vector<32x96xf32> to vector<32x32xf32>
    %318 = arith.addf %315, %317 : vector<32x32xf32>
    %319 = arith.addf %318, %316 : vector<32x32xf32>
    %320 = vector.broadcast %22 : vector<1x32xf32> to vector<32x32xf32>
    %321 = arith.addf %319, %320 : vector<32x32xf32>
    %322 = vector.extract_strided_slice %294 {offsets = [0, 0], sizes = [32, 32], strides = [1, 1]} : vector<32x96xf32> to vector<32x32xf32>
    %323 = vector.extract_strided_slice %300 {offsets = [0, 64], sizes = [32, 32], strides = [1, 1]} : vector<32x96xf32> to vector<32x32xf32>
    %324 = vector.extract_strided_slice %297 {offsets = [0, 32], sizes = [32, 32], strides = [1, 1]} : vector<32x96xf32> to vector<32x32xf32>
    %325 = arith.addf %322, %324 : vector<32x32xf32>
    %326 = arith.addf %325, %323 : vector<32x32xf32>
    %327 = vector.broadcast %22 : vector<1x32xf32> to vector<32x32xf32>
    %328 = arith.addf %326, %327 : vector<32x32xf32>
    %329 = vector.extract_strided_slice %297 {offsets = [0, 0], sizes = [32, 32], strides = [1, 1]} : vector<32x96xf32> to vector<32x32xf32>
    %330 = vector.extract_strided_slice %291 {offsets = [0, 64], sizes = [32, 32], strides = [1, 1]} : vector<32x96xf32> to vector<32x32xf32>
    %cst_82 = arith.constant 0.000000e+00 : f32
    %331 = vector.broadcast %cst_82 : f32 to vector<1x32xf32>
    %332 = vector.extract_strided_slice %330 {offsets = [1, 0], sizes = [31, 32], strides = [1, 1]} : vector<32x32xf32> to vector<31x32xf32>
    %333 = tpu.concatenate %332, %331 in 0 : vector<31x32xf32>, vector<1x32xf32> -> vector<32x32xf32>
    %cst_83 = arith.constant 0.000000e+00 : f32
    %334 = vector.shape_cast %20 : vector<32x1xi1> to vector<32x1xi1>
    %335 = vector.broadcast %334 : vector<32x1xi1> to vector<32x32xi1>
    %336 = vector.broadcast %cst_83 : f32 to vector<32x32xf32>
    %337 = arith.select %335, %336, %333 : vector<32x32xi1>, vector<32x32xf32>
    %338 = vector.extract_strided_slice %300 {offsets = [0, 32], sizes = [32, 32], strides = [1, 1]} : vector<32x96xf32> to vector<32x32xf32>
    %339 = arith.addf %329, %338 : vector<32x32xf32>
    %340 = arith.addf %339, %337 : vector<32x32xf32>
    %341 = vector.broadcast %22 : vector<1x32xf32> to vector<32x32xf32>
    %342 = arith.addf %340, %341 : vector<32x32xf32>
    %cst_84 = arith.constant 0.000000e+00 : f32
    %343 = vector.broadcast %cst_84 : f32 to vector<32x32xf32>
    %344 = arith.cmpf oge, %314, %343 : vector<32x32xf32>
    %cst_85 = arith.constant 1.000000e-01 : f32
    %345 = vector.broadcast %cst_85 : f32 to vector<32x32xf32>
    %346 = arith.mulf %345, %314 : vector<32x32xf32>
    %347 = arith.select %344, %314, %346 : vector<32x32xi1>, vector<32x32xf32>
    %cst_86 = arith.constant 0.000000e+00 : f32
    %348 = vector.broadcast %cst_86 : f32 to vector<32x32xf32>
    %349 = arith.cmpf oge, %321, %348 : vector<32x32xf32>
    %cst_87 = arith.constant 1.000000e-01 : f32
    %350 = vector.broadcast %cst_87 : f32 to vector<32x32xf32>
    %351 = arith.mulf %350, %321 : vector<32x32xf32>
    %352 = arith.select %349, %321, %351 : vector<32x32xi1>, vector<32x32xf32>
    %cst_88 = arith.constant 0.000000e+00 : f32
    %353 = vector.broadcast %cst_88 : f32 to vector<32x32xf32>
    %354 = arith.cmpf oge, %328, %353 : vector<32x32xf32>
    %cst_89 = arith.constant 1.000000e-01 : f32
    %355 = vector.broadcast %cst_89 : f32 to vector<32x32xf32>
    %356 = arith.mulf %355, %328 : vector<32x32xf32>
    %357 = arith.select %354, %328, %356 : vector<32x32xi1>, vector<32x32xf32>
    %cst_90 = arith.constant 0.000000e+00 : f32
    %358 = vector.broadcast %cst_90 : f32 to vector<32x32xf32>
    %359 = arith.cmpf oge, %342, %358 : vector<32x32xf32>
    %cst_91 = arith.constant 1.000000e-01 : f32
    %360 = vector.broadcast %cst_91 : f32 to vector<32x32xf32>
    %361 = arith.mulf %360, %342 : vector<32x32xf32>
    %362 = arith.select %359, %342, %361 : vector<32x32xi1>, vector<32x32xf32>
    %363 = arith.maximumf %347, %352 : vector<32x32xf32>
    %364 = arith.maximumf %357, %362 : vector<32x32xf32>
    %cst_92 = arith.constant dense<0.000000e+00> : vector<32x96xf32>
    %365 = tpu.matmul %363, %23, %cst_92 {dimension_numbers = #tpu.dot_dimension_numbers<[1], [0], [0], [1], [0, 0, 1, 1], [], []>} : vector<32x32xf32>, vector<32x96xf32>, vector<32x96xf32> -> vector<32x96xf32>
    %cst_93 = arith.constant dense<0.000000e+00> : vector<32x96xf32>
    %366 = tpu.matmul %364, %23, %cst_93 {dimension_numbers = #tpu.dot_dimension_numbers<[1], [0], [0], [1], [0, 0, 1, 1], [], []>} : vector<32x32xf32>, vector<32x96xf32>, vector<32x96xf32> -> vector<32x96xf32>
    %367 = vector.extract_strided_slice %366 {offsets = [0, 0], sizes = [32, 32], strides = [1, 1]} : vector<32x96xf32> to vector<32x32xf32>
    %cst_94 = arith.constant 0.000000e+00 : f32
    %368 = vector.broadcast %cst_94 : f32 to vector<1x32xf32>
    %369 = vector.extract_strided_slice %367 {offsets = [0, 0], sizes = [31, 32], strides = [1, 1]} : vector<32x32xf32> to vector<31x32xf32>
    %370 = tpu.concatenate %368, %369 in 0 : vector<1x32xf32>, vector<31x32xf32> -> vector<32x32xf32>
    %cst_95 = arith.constant 0.000000e+00 : f32
    %371 = vector.shape_cast %18 : vector<32x1xi1> to vector<32x1xi1>
    %372 = vector.broadcast %371 : vector<32x1xi1> to vector<32x32xi1>
    %373 = vector.broadcast %cst_95 : f32 to vector<32x32xf32>
    %374 = arith.select %372, %373, %370 : vector<32x32xi1>, vector<32x32xf32>
    %375 = vector.extract_strided_slice %366 {offsets = [0, 64], sizes = [32, 32], strides = [1, 1]} : vector<32x96xf32> to vector<32x32xf32>
    %376 = vector.extract_strided_slice %365 {offsets = [0, 32], sizes = [32, 32], strides = [1, 1]} : vector<32x96xf32> to vector<32x32xf32>
    %377 = arith.addf %374, %376 : vector<32x32xf32>
    %378 = arith.addf %377, %375 : vector<32x32xf32>
    %379 = vector.broadcast %24 : vector<1x32xf32> to vector<32x32xf32>
    %380 = arith.addf %378, %379 : vector<32x32xf32>
    %381 = vector.extract_strided_slice %365 {offsets = [0, 0], sizes = [32, 32], strides = [1, 1]} : vector<32x96xf32> to vector<32x32xf32>
    %382 = vector.extract_strided_slice %365 {offsets = [0, 64], sizes = [32, 32], strides = [1, 1]} : vector<32x96xf32> to vector<32x32xf32>
    %cst_96 = arith.constant 0.000000e+00 : f32
    %383 = vector.broadcast %cst_96 : f32 to vector<1x32xf32>
    %384 = vector.extract_strided_slice %382 {offsets = [1, 0], sizes = [31, 32], strides = [1, 1]} : vector<32x32xf32> to vector<31x32xf32>
    %385 = tpu.concatenate %384, %383 in 0 : vector<31x32xf32>, vector<1x32xf32> -> vector<32x32xf32>
    %cst_97 = arith.constant 0.000000e+00 : f32
    %386 = vector.shape_cast %20 : vector<32x1xi1> to vector<32x1xi1>
    %387 = vector.broadcast %386 : vector<32x1xi1> to vector<32x32xi1>
    %388 = vector.broadcast %cst_97 : f32 to vector<32x32xf32>
    %389 = arith.select %387, %388, %385 : vector<32x32xi1>, vector<32x32xf32>
    %390 = vector.extract_strided_slice %366 {offsets = [0, 32], sizes = [32, 32], strides = [1, 1]} : vector<32x96xf32> to vector<32x32xf32>
    %391 = arith.addf %381, %390 : vector<32x32xf32>
    %392 = arith.addf %391, %389 : vector<32x32xf32>
    %393 = vector.broadcast %24 : vector<1x32xf32> to vector<32x32xf32>
    %394 = arith.addf %392, %393 : vector<32x32xf32>
    %cst_98 = arith.constant 0.000000e+00 : f32
    %395 = vector.broadcast %cst_98 : f32 to vector<32x32xf32>
    %396 = arith.cmpf oge, %380, %395 : vector<32x32xf32>
    %cst_99 = arith.constant 1.000000e-01 : f32
    %397 = vector.broadcast %cst_99 : f32 to vector<32x32xf32>
    %398 = arith.mulf %397, %380 : vector<32x32xf32>
    %399 = arith.select %396, %380, %398 : vector<32x32xi1>, vector<32x32xf32>
    %cst_100 = arith.constant 0.000000e+00 : f32
    %400 = vector.broadcast %cst_100 : f32 to vector<32x32xf32>
    %401 = arith.cmpf oge, %394, %400 : vector<32x32xf32>
    %cst_101 = arith.constant 1.000000e-01 : f32
    %402 = vector.broadcast %cst_101 : f32 to vector<32x32xf32>
    %403 = arith.mulf %402, %394 : vector<32x32xf32>
    %404 = arith.select %401, %394, %403 : vector<32x32xi1>, vector<32x32xf32>
    %405 = arith.maximumf %399, %404 : vector<32x32xf32>
    %cst_102 = arith.constant dense<0.000000e+00> : vector<32x96xf32>
    %406 = tpu.matmul %405, %25, %cst_102 {dimension_numbers = #tpu.dot_dimension_numbers<[1], [0], [0], [1], [0, 0, 1, 1], [], []>} : vector<32x32xf32>, vector<32x96xf32>, vector<32x96xf32> -> vector<32x96xf32>
    %407 = vector.extract_strided_slice %406 {offsets = [0, 0], sizes = [32, 32], strides = [1, 1]} : vector<32x96xf32> to vector<32x32xf32>
    %cst_103 = arith.constant 0.000000e+00 : f32
    %408 = vector.broadcast %cst_103 : f32 to vector<1x32xf32>
    %409 = vector.extract_strided_slice %407 {offsets = [0, 0], sizes = [31, 32], strides = [1, 1]} : vector<32x32xf32> to vector<31x32xf32>
    %410 = tpu.concatenate %408, %409 in 0 : vector<1x32xf32>, vector<31x32xf32> -> vector<32x32xf32>
    %cst_104 = arith.constant 0.000000e+00 : f32
    %411 = vector.shape_cast %18 : vector<32x1xi1> to vector<32x1xi1>
    %412 = vector.broadcast %411 : vector<32x1xi1> to vector<32x32xi1>
    %413 = vector.broadcast %cst_104 : f32 to vector<32x32xf32>
    %414 = arith.select %412, %413, %410 : vector<32x32xi1>, vector<32x32xf32>
    %415 = vector.extract_strided_slice %406 {offsets = [0, 64], sizes = [32, 32], strides = [1, 1]} : vector<32x96xf32> to vector<32x32xf32>
    %cst_105 = arith.constant 0.000000e+00 : f32
    %416 = vector.broadcast %cst_105 : f32 to vector<1x32xf32>
    %417 = vector.extract_strided_slice %415 {offsets = [1, 0], sizes = [31, 32], strides = [1, 1]} : vector<32x32xf32> to vector<31x32xf32>
    %418 = tpu.concatenate %417, %416 in 0 : vector<31x32xf32>, vector<1x32xf32> -> vector<32x32xf32>
    %cst_106 = arith.constant 0.000000e+00 : f32
    %419 = vector.shape_cast %20 : vector<32x1xi1> to vector<32x1xi1>
    %420 = vector.broadcast %419 : vector<32x1xi1> to vector<32x32xi1>
    %421 = vector.broadcast %cst_106 : f32 to vector<32x32xf32>
    %422 = arith.select %420, %421, %418 : vector<32x32xi1>, vector<32x32xf32>
    %423 = vector.extract_strided_slice %406 {offsets = [0, 32], sizes = [32, 32], strides = [1, 1]} : vector<32x96xf32> to vector<32x32xf32>
    %424 = arith.addf %414, %423 : vector<32x32xf32>
    %425 = arith.addf %424, %422 : vector<32x32xf32>
    %426 = vector.broadcast %26 : vector<1x32xf32> to vector<32x32xf32>
    %427 = arith.addf %425, %426 : vector<32x32xf32>
    %cst_107 = arith.constant 0.000000e+00 : f32
    %428 = vector.broadcast %cst_107 : f32 to vector<32x32xf32>
    %429 = arith.cmpf oge, %427, %428 : vector<32x32xf32>
    %cst_108 = arith.constant 1.000000e-01 : f32
    %430 = vector.broadcast %cst_108 : f32 to vector<32x32xf32>
    %431 = arith.mulf %430, %427 : vector<32x32xf32>
    %432 = arith.select %429, %427, %431 : vector<32x32xi1>, vector<32x32xf32>
    %cst_109 = arith.constant dense<0.000000e+00> : vector<32x96xf32>
    %433 = tpu.matmul %432, %27, %cst_109 {dimension_numbers = #tpu.dot_dimension_numbers<[1], [0], [0], [1], [0, 0, 1, 1], [], []>} : vector<32x32xf32>, vector<32x96xf32>, vector<32x96xf32> -> vector<32x96xf32>
    %434 = vector.extract_strided_slice %433 {offsets = [0, 32], sizes = [32, 32], strides = [1, 1]} : vector<32x96xf32> to vector<32x32xf32>
    %435 = vector.broadcast %28 : vector<1x32xf32> to vector<32x32xf32>
    %436 = arith.addf %434, %435 : vector<32x32xf32>
    %437 = vector.extract_strided_slice %433 {offsets = [0, 0], sizes = [32, 32], strides = [1, 1]} : vector<32x96xf32> to vector<32x32xf32>
    %cst_110 = arith.constant 0.000000e+00 : f32
    %438 = vector.broadcast %cst_110 : f32 to vector<1x32xf32>
    %439 = vector.extract_strided_slice %437 {offsets = [1, 0], sizes = [31, 32], strides = [1, 1]} : vector<32x32xf32> to vector<31x32xf32>
    %440 = tpu.concatenate %439, %438 in 0 : vector<31x32xf32>, vector<1x32xf32> -> vector<32x32xf32>
    %cst_111 = arith.constant 0.000000e+00 : f32
    %441 = vector.shape_cast %20 : vector<32x1xi1> to vector<32x1xi1>
    %442 = vector.broadcast %441 : vector<32x1xi1> to vector<32x32xi1>
    %443 = vector.broadcast %cst_111 : f32 to vector<32x32xf32>
    %444 = arith.select %442, %443, %440 : vector<32x32xi1>, vector<32x32xf32>
    %445 = vector.extract_strided_slice %433 {offsets = [0, 64], sizes = [32, 32], strides = [1, 1]} : vector<32x96xf32> to vector<32x32xf32>
    %446 = arith.addf %444, %445 : vector<32x32xf32>
    %447 = vector.broadcast %28 : vector<1x32xf32> to vector<32x32xf32>
    %448 = arith.addf %446, %447 : vector<32x32xf32>
    %cst_112 = arith.constant dense<0.000000e+00> : vector<32x96xf32>
    %449 = tpu.matmul %436, %29, %cst_112 {dimension_numbers = #tpu.dot_dimension_numbers<[1], [0], [0], [1], [0, 0, 1, 1], [], []>} : vector<32x32xf32>, vector<32x96xf32>, vector<32x96xf32> -> vector<32x96xf32>
    %cst_113 = arith.constant dense<0.000000e+00> : vector<32x96xf32>
    %450 = tpu.matmul %448, %29, %cst_113 {dimension_numbers = #tpu.dot_dimension_numbers<[1], [0], [0], [1], [0, 0, 1, 1], [], []>} : vector<32x32xf32>, vector<32x96xf32>, vector<32x96xf32> -> vector<32x96xf32>
    %451 = vector.extract_strided_slice %449 {offsets = [0, 32], sizes = [32, 32], strides = [1, 1]} : vector<32x96xf32> to vector<32x32xf32>
    %452 = vector.broadcast %30 : vector<1x32xf32> to vector<32x32xf32>
    %453 = arith.addf %451, %452 : vector<32x32xf32>
    %454 = vector.extract_strided_slice %450 {offsets = [0, 0], sizes = [32, 32], strides = [1, 1]} : vector<32x96xf32> to vector<32x32xf32>
    %455 = vector.extract_strided_slice %449 {offsets = [0, 64], sizes = [32, 32], strides = [1, 1]} : vector<32x96xf32> to vector<32x32xf32>
    %456 = arith.addf %454, %455 : vector<32x32xf32>
    %457 = vector.broadcast %30 : vector<1x32xf32> to vector<32x32xf32>
    %458 = arith.addf %456, %457 : vector<32x32xf32>
    %459 = vector.extract_strided_slice %450 {offsets = [0, 32], sizes = [32, 32], strides = [1, 1]} : vector<32x96xf32> to vector<32x32xf32>
    %460 = vector.broadcast %30 : vector<1x32xf32> to vector<32x32xf32>
    %461 = arith.addf %459, %460 : vector<32x32xf32>
    %462 = vector.extract_strided_slice %449 {offsets = [0, 0], sizes = [32, 32], strides = [1, 1]} : vector<32x96xf32> to vector<32x32xf32>
    %cst_114 = arith.constant 0.000000e+00 : f32
    %463 = vector.broadcast %cst_114 : f32 to vector<1x32xf32>
    %464 = vector.extract_strided_slice %462 {offsets = [1, 0], sizes = [31, 32], strides = [1, 1]} : vector<32x32xf32> to vector<31x32xf32>
    %465 = tpu.concatenate %464, %463 in 0 : vector<31x32xf32>, vector<1x32xf32> -> vector<32x32xf32>
    %cst_115 = arith.constant 0.000000e+00 : f32
    %466 = vector.shape_cast %20 : vector<32x1xi1> to vector<32x1xi1>
    %467 = vector.broadcast %466 : vector<32x1xi1> to vector<32x32xi1>
    %468 = vector.broadcast %cst_115 : f32 to vector<32x32xf32>
    %469 = arith.select %467, %468, %465 : vector<32x32xi1>, vector<32x32xf32>
    %470 = vector.extract_strided_slice %450 {offsets = [0, 64], sizes = [32, 32], strides = [1, 1]} : vector<32x96xf32> to vector<32x32xf32>
    %471 = arith.addf %469, %470 : vector<32x32xf32>
    %472 = vector.broadcast %30 : vector<1x32xf32> to vector<32x32xf32>
    %473 = arith.addf %471, %472 : vector<32x32xf32>
    %cst_116 = arith.constant dense<0.000000e+00> : vector<32x3xf32>
    %474 = tpu.matmul %453, %31, %cst_116 {dimension_numbers = #tpu.dot_dimension_numbers<[1], [0], [0], [1], [0, 0, 1, 1], [], []>} : vector<32x32xf32>, vector<32x3xf32>, vector<32x3xf32> -> vector<32x3xf32>
    %cst_117 = arith.constant dense<0.000000e+00> : vector<32x3xf32>
    %475 = tpu.matmul %458, %31, %cst_117 {dimension_numbers = #tpu.dot_dimension_numbers<[1], [0], [0], [1], [0, 0, 1, 1], [], []>} : vector<32x32xf32>, vector<32x3xf32>, vector<32x3xf32> -> vector<32x3xf32>
    %cst_118 = arith.constant dense<0.000000e+00> : vector<32x3xf32>
    %476 = tpu.matmul %461, %31, %cst_118 {dimension_numbers = #tpu.dot_dimension_numbers<[1], [0], [0], [1], [0, 0, 1, 1], [], []>} : vector<32x32xf32>, vector<32x3xf32>, vector<32x3xf32> -> vector<32x3xf32>
    %cst_119 = arith.constant dense<0.000000e+00> : vector<32x3xf32>
    %477 = tpu.matmul %473, %31, %cst_119 {dimension_numbers = #tpu.dot_dimension_numbers<[1], [0], [0], [1], [0, 0, 1, 1], [], []>} : vector<32x32xf32>, vector<32x3xf32>, vector<32x3xf32> -> vector<32x3xf32>
    %478 = vector.extract_strided_slice %477 {offsets = [0, 0], sizes = [32, 1], strides = [1, 1]} : vector<32x3xf32> to vector<32x1xf32>
    %cst_120 = arith.constant 0.000000e+00 : f32
    %479 = vector.broadcast %cst_120 : f32 to vector<1x1xf32>
    %480 = vector.extract_strided_slice %478 {offsets = [0, 0], sizes = [31, 1], strides = [1, 1]} : vector<32x1xf32> to vector<31x1xf32>
    %481 = tpu.concatenate %479, %480 in 0 : vector<1x1xf32>, vector<31x1xf32> -> vector<32x1xf32>
    %cst_121 = arith.constant 0.000000e+00 : f32
    %482 = vector.broadcast %cst_121 : f32 to vector<32x1xf32>
    %483 = arith.select %18, %482, %481 : vector<32x1xi1>, vector<32x1xf32>
    %484 = vector.extract_strided_slice %475 {offsets = [0, 2], sizes = [32, 1], strides = [1, 1]} : vector<32x3xf32> to vector<32x1xf32>
    %485 = vector.extract_strided_slice %474 {offsets = [0, 1], sizes = [32, 1], strides = [1, 1]} : vector<32x3xf32> to vector<32x1xf32>
    %486 = arith.addf %483, %485 : vector<32x1xf32>
    %487 = arith.addf %486, %484 : vector<32x1xf32>
    %488 = vector.broadcast %32 : vector<1x1xf32> to vector<32x1xf32>
    %489 = arith.addf %487, %488 : vector<32x1xf32>
    %490 = vector.extract_strided_slice %474 {offsets = [0, 0], sizes = [32, 1], strides = [1, 1]} : vector<32x3xf32> to vector<32x1xf32>
    %491 = vector.extract_strided_slice %476 {offsets = [0, 2], sizes = [32, 1], strides = [1, 1]} : vector<32x3xf32> to vector<32x1xf32>
    %492 = vector.extract_strided_slice %475 {offsets = [0, 1], sizes = [32, 1], strides = [1, 1]} : vector<32x3xf32> to vector<32x1xf32>
    %493 = arith.addf %490, %492 : vector<32x1xf32>
    %494 = arith.addf %493, %491 : vector<32x1xf32>
    %495 = vector.broadcast %32 : vector<1x1xf32> to vector<32x1xf32>
    %496 = arith.addf %494, %495 : vector<32x1xf32>
    %497 = vector.extract_strided_slice %475 {offsets = [0, 0], sizes = [32, 1], strides = [1, 1]} : vector<32x3xf32> to vector<32x1xf32>
    %498 = vector.extract_strided_slice %477 {offsets = [0, 2], sizes = [32, 1], strides = [1, 1]} : vector<32x3xf32> to vector<32x1xf32>
    %499 = vector.extract_strided_slice %476 {offsets = [0, 1], sizes = [32, 1], strides = [1, 1]} : vector<32x3xf32> to vector<32x1xf32>
    %500 = arith.addf %497, %499 : vector<32x1xf32>
    %501 = arith.addf %500, %498 : vector<32x1xf32>
    %502 = vector.broadcast %32 : vector<1x1xf32> to vector<32x1xf32>
    %503 = arith.addf %501, %502 : vector<32x1xf32>
    %504 = vector.extract_strided_slice %476 {offsets = [0, 0], sizes = [32, 1], strides = [1, 1]} : vector<32x3xf32> to vector<32x1xf32>
    %505 = vector.extract_strided_slice %474 {offsets = [0, 2], sizes = [32, 1], strides = [1, 1]} : vector<32x3xf32> to vector<32x1xf32>
    %cst_122 = arith.constant 0.000000e+00 : f32
    %506 = vector.broadcast %cst_122 : f32 to vector<1x1xf32>
    %507 = vector.extract_strided_slice %505 {offsets = [1, 0], sizes = [31, 1], strides = [1, 1]} : vector<32x1xf32> to vector<31x1xf32>
    %508 = tpu.concatenate %507, %506 in 0 : vector<31x1xf32>, vector<1x1xf32> -> vector<32x1xf32>
    %cst_123 = arith.constant 0.000000e+00 : f32
    %509 = vector.broadcast %cst_123 : f32 to vector<32x1xf32>
    %510 = arith.select %20, %509, %508 : vector<32x1xi1>, vector<32x1xf32>
    %511 = vector.extract_strided_slice %477 {offsets = [0, 1], sizes = [32, 1], strides = [1, 1]} : vector<32x3xf32> to vector<32x1xf32>
    %512 = arith.addf %504, %511 : vector<32x1xf32>
    %513 = arith.addf %512, %510 : vector<32x1xf32>
    %514 = vector.broadcast %32 : vector<1x1xf32> to vector<32x1xf32>
    %515 = arith.addf %513, %514 : vector<32x1xf32>
    %cst_124 = arith.constant 0.000000e+00 : f32
    %516 = vector.broadcast %cst_124 : f32 to vector<32x1xf32>
    %517 = arith.subf %516, %489 : vector<32x1xf32>
    %518 = math.exp %517 : vector<32x1xf32>
    %cst_125 = arith.constant 1.000000e+00 : f32
    %519 = vector.broadcast %cst_125 : f32 to vector<32x1xf32>
    %520 = arith.addf %519, %518 : vector<32x1xf32>
    %521 = tpu.reciprocal %520 : vector<32x1xf32> -> vector<32x1xf32>
    %cst_126 = arith.constant 0.000000e+00 : f32
    %522 = vector.broadcast %cst_126 : f32 to vector<32x1xf32>
    %523 = arith.subf %522, %496 : vector<32x1xf32>
    %524 = math.exp %523 : vector<32x1xf32>
    %cst_127 = arith.constant 1.000000e+00 : f32
    %525 = vector.broadcast %cst_127 : f32 to vector<32x1xf32>
    %526 = arith.addf %525, %524 : vector<32x1xf32>
    %527 = tpu.reciprocal %526 : vector<32x1xf32> -> vector<32x1xf32>
    %cst_128 = arith.constant 0.000000e+00 : f32
    %528 = vector.broadcast %cst_128 : f32 to vector<32x1xf32>
    %529 = arith.subf %528, %503 : vector<32x1xf32>
    %530 = math.exp %529 : vector<32x1xf32>
    %cst_129 = arith.constant 1.000000e+00 : f32
    %531 = vector.broadcast %cst_129 : f32 to vector<32x1xf32>
    %532 = arith.addf %531, %530 : vector<32x1xf32>
    %533 = tpu.reciprocal %532 : vector<32x1xf32> -> vector<32x1xf32>
    %cst_130 = arith.constant 0.000000e+00 : f32
    %534 = vector.broadcast %cst_130 : f32 to vector<32x1xf32>
    %535 = arith.subf %534, %515 : vector<32x1xf32>
    %536 = math.exp %535 : vector<32x1xf32>
    %cst_131 = arith.constant 1.000000e+00 : f32
    %537 = vector.broadcast %cst_131 : f32 to vector<32x1xf32>
    %538 = arith.addf %537, %536 : vector<32x1xf32>
    %539 = tpu.reciprocal %538 : vector<32x1xf32> -> vector<32x1xf32>
    %c0_132 = arith.constant 0 : index
    %c0_133 = arith.constant 0 : index
    %540 = vector.load %arg14[%c0_132, %c0_133] : memref<32x4xf32, #tpu.memory_space<vmem>>, vector<32x1xf32>
    tpu.vector_store %arg14[%c0_132, %c0_133], %521 {strides = array<i32>} : memref<32x4xf32, #tpu.memory_space<vmem>>, vector<32x1xf32>,
    %c0_134 = arith.constant 0 : index
    %c1 = arith.constant 1 : index
    %541 = vector.load %arg14[%c0_134, %c1] : memref<32x4xf32, #tpu.memory_space<vmem>>, vector<32x1xf32>
    tpu.vector_store %arg14[%c0_134, %c1], %527 {strides = array<i32>} : memref<32x4xf32, #tpu.memory_space<vmem>>, vector<32x1xf32>,
    %c0_135 = arith.constant 0 : index
    %c2 = arith.constant 2 : index
    %542 = vector.load %arg14[%c0_135, %c2] : memref<32x4xf32, #tpu.memory_space<vmem>>, vector<32x1xf32>
    tpu.vector_store %arg14[%c0_135, %c2], %533 {strides = array<i32>} : memref<32x4xf32, #tpu.memory_space<vmem>>, vector<32x1xf32>,
    %c0_136 = arith.constant 0 : index
    %c3 = arith.constant 3 : index
    %543 = vector.load %arg14[%c0_136, %c3] : memref<32x4xf32, #tpu.memory_space<vmem>>, vector<32x1xf32>
    tpu.vector_store %arg14[%c0_136, %c3], %539 {strides = array<i32>} : memref<32x4xf32, #tpu.memory_space<vmem>>, vector<32x1xf32>,
    return
  }
  func.func @transform_0(%arg0: i32) -> (i32, i32) {
    %c0_i32 = arith.constant 0 : i32
    %c0_i32_0 = arith.constant 0 : i32
    return %arg0, %c0_i32 : i32, i32
  }
  func.func @transform_1(%arg0: i32) -> (i32, i32) {
    %c0_i32 = arith.constant 0 : i32
    %c0_i32_0 = arith.constant 0 : i32
    %c0_i32_1 = arith.constant 0 : i32
    return %c0_i32, %c0_i32_0 : i32, i32
  }
  func.func @transform_2(%arg0: i32) -> (i32, i32) {
    %c0_i32 = arith.constant 0 : i32
    %c0_i32_0 = arith.constant 0 : i32
    %c0_i32_1 = arith.constant 0 : i32
    return %c0_i32, %c0_i32_0 : i32, i32
  }
  func.func @transform_3(%arg0: i32) -> (i32, i32) {
    %c0_i32 = arith.constant 0 : i32
    %c0_i32_0 = arith.constant 0 : i32
    %c0_i32_1 = arith.constant 0 : i32
    return %c0_i32, %c0_i32_0 : i32, i32
  }
  func.func @transform_4(%arg0: i32) -> (i32, i32) {
    %c0_i32 = arith.constant 0 : i32
    %c0_i32_0 = arith.constant 0 : i32
    %c0_i32_1 = arith.constant 0 : i32
    return %c0_i32, %c0_i32_0 : i32, i32
  }
  func.func @transform_5(%arg0: i32) -> (i32, i32) {
    %c0_i32 = arith.constant 0 : i32
    %c0_i32_0 = arith.constant 0 : i32
    %c0_i32_1 = arith.constant 0 : i32
    return %c0_i32, %c0_i32_0 : i32, i32
  }
  func.func @transform_6(%arg0: i32) -> (i32, i32) {
    %c0_i32 = arith.constant 0 : i32
    %c0_i32_0 = arith.constant 0 : i32
    %c0_i32_1 = arith.constant 0 : i32
    return %c0_i32, %c0_i32_0 : i32, i32
  }
  func.func @transform_7(%arg0: i32) -> (i32, i32) {
    %c0_i32 = arith.constant 0 : i32
    %c0_i32_0 = arith.constant 0 : i32
    %c0_i32_1 = arith.constant 0 : i32
    return %c0_i32, %c0_i32_0 : i32, i32
  }
  func.func @transform_8(%arg0: i32) -> (i32, i32) {
    %c0_i32 = arith.constant 0 : i32
    %c0_i32_0 = arith.constant 0 : i32
    %c0_i32_1 = arith.constant 0 : i32
    return %c0_i32, %c0_i32_0 : i32, i32
  }
  func.func @transform_9(%arg0: i32) -> (i32, i32) {
    %c0_i32 = arith.constant 0 : i32
    %c0_i32_0 = arith.constant 0 : i32
    %c0_i32_1 = arith.constant 0 : i32
    return %c0_i32, %c0_i32_0 : i32, i32
  }
  func.func @transform_10(%arg0: i32) -> (i32, i32) {
    %c0_i32 = arith.constant 0 : i32
    %c0_i32_0 = arith.constant 0 : i32
    %c0_i32_1 = arith.constant 0 : i32
    return %c0_i32, %c0_i32_0 : i32, i32
  }
  func.func @transform_11(%arg0: i32) -> (i32, i32) {
    %c0_i32 = arith.constant 0 : i32
    %c0_i32_0 = arith.constant 0 : i32
    %c0_i32_1 = arith.constant 0 : i32
    return %c0_i32, %c0_i32_0 : i32, i32
  }
  func.func @transform_12(%arg0: i32) -> (i32, i32) {
    %c0_i32 = arith.constant 0 : i32
    %c0_i32_0 = arith.constant 0 : i32
    %c0_i32_1 = arith.constant 0 : i32
    return %c0_i32, %c0_i32_0 : i32, i32
  }
  func.func @transform_13(%arg0: i32) -> (i32, i32) {
    %c0_i32 = arith.constant 0 : i32
    %c0_i32_0 = arith.constant 0 : i32
    return %arg0, %c0_i32 : i32, i32
  }
}

</mosaic_0001>

<bundles_post_ra>
// kernel: cae_forward.1
= control target key start
LH: loop header
LB: loop body
LE: loop exit
PB: predicated region body
PF: predicated region fallthrough
CT: control target
= control target key end

     0   :  { %s5610_s27 = smov 0   ;;  %s6949_s0 = inlined_call_operand.vmem [shape: f32[128,4], index: 0, kind: input, shape index: {}]   ;;  %s6950_s1 = inlined_call_operand.vmem [shape: f32[1,96], index: 1, kind: input, shape index: {}]   ;;  %s6951_s2 = inlined_call_operand.vmem [shape: f32[1,32], index: 2, kind: input, shape index: {}]   ;;  %s6952_s3 = inlined_call_operand.vmem [shape: f32[32,96], index: 3, kind: input, shape index: {}]   ;;  %s6953_s4 = inlined_call_operand.vmem [shape: f32[1,32], index: 4, kind: input, shape index: {}]   ;;  %s6954_s5 = inlined_call_operand.vmem [shape: f32[32,96], index: 5, kind: input, shape index: {}]   ;;  %s6955_s6 = inlined_call_operand.vmem [shape: f32[1,32], index: 6, kind: input, shape index: {}]   ;;  %s6956_s7 = inlined_call_operand.vmem [shape: f32[32,96], index: 7, kind: input, shape index: {}]   ;;  %s6957_s8 = inlined_call_operand.vmem [shape: f32[1,32], index: 8, kind: input, shape index: {}]   ;;  %s6958_s9 = inlined_call_operand.vmem [shape: f32[32,96], index: 9, kind: input, shape index: {}]   ;;  %s6959_s10 = inlined_call_operand.vmem [shape: f32[1,32], index: 10, kind: input, shape index: {}]   ;;  %s6960_s11 = inlined_call_operand.vmem [shape: f32[32,3], index: 11, kind: input, shape index: {}]   ;;  %s6961_s12 = inlined_call_operand.<no memory space> [shape: f32[1,1], index: 12, kind: input, shape index: {}]   ;;  %s6962_s13 = inlined_call_operand.vmem [shape: f32[128,4], index: 13, kind: output, shape index: {}]  }
   0x1   :  { %v18_v0 = vstv %s6961_s12 }
   0x2   :  { %19 = vst [vmem:[#allocation2] sm:$0x1] %v18_v0 }
   0x3 LB: > { %s4649_s28 = sadd.s32 4294967295, %s5523_s27   ;;  %p4653_p0 = scmp.ge.s32.totalorder %s5523_s27, 1  ;;  %s5523_s27 = sphi %s5610_s27, %s25_s27  }
   0x4   : > { %p390_p1 = scmp.lt.s32.totalorder %s5523_s27, 5 }
   0x6   : > { %p391_p2 = pnand %p4653_p0, %p390_p1 }
   0x7   : > { %s4654_s29 = sshll.u32 (!%p391_p2), %s4649_s28, 2  ;;  %v5525_v1 = vmov (!%p391_p2), 0   ;;  %v5526_v4 = vmov (!%p391_p2), 1   ;;  %v5527_v6 = vmov (!%p391_p2), 2   ;;  %v5528_v8 = vmov (!%p391_p2), 3   ;;  %s5529_s18 = smov (!%p391_p2), 96  }
   0x8   : > { %394 = sbr.rel (%p391_p2) target bundleno = 4292 (0x10c4), region = 72  ;;  %5369 = vset.pattern.permute.xlu1 (!%p391_p2), %v5525_v1  ;;  %5367 = vset.pattern.permute.xlu0 (!%p391_p2), %v5525_v1  ;;  %p435_p3 = scmp.lt.s32.totalorder (!%p391_p2), %s4654_s29, 15  ;;  %v5629_v9 = vld [vmem:[%s6950_s1] ss:$0 sm:$0xff] (!%p391_p2)  ;;  %v510_v17 = vld [vmem:[%s6952_s3 + $0x8] sm:$0xff] (!%p391_p2)  ;;  %v511_v20 = vld [vmem:[%s6952_s3 + $0x10] sm:$0xff] (!%p391_p2)  ;;  %v446_v50 = vlaneseq (!%p391_p2) }
   0x9   : > { %v509_v16 = vld [vmem:[%s6952_s3] sm:$0xff] (!%p391_p2)  ;;  %v512_v21 = vld [vmem:[%s6952_s3 + $0x18] sm:$0xff] (!%p391_p2)  ;;  %s5530_s28 = smov (!%p391_p2), 64   ;;  %vm6963_vm0 = vcmask (!%p391_p2), 1040384   ;;  %vm6964_vm1 = vcmask (!%p391_p2), 1046528   ;;  %vm904_vm10 = vcmask (!%p391_p2), 261120  }
   0xa   : > { %v5648_v19 = vpack.c.bf16 (!%p391_p2), %v510_v17, %v509_v16  ;;  %v5666_v25 = vpack.c.bf16 (!%p391_p2), %v512_v21, %v511_v20  ;;  %v447_v53 = vshrl.u32 (!%p391_p2), %v446_v50, 7  ;;  %s5531_s23 = smov (!%p391_p2), 32   ;;  %s5532_s17 = smov (!%p391_p2), 127  }
   0xb   : > { %s5533_s19 = smov (!%p391_p2), 126  }
   0xc   : > { %5188 = vmatprep.subr.bf16.mxu0 (!%p391_p2), %v5648_v19  ;;  %5196 = vmatprep.subr.bf16.mxu1 (!%p391_p2), %v5648_v19  ;;  %v455_v56 = vand.u32 (!%p391_p2), 3, %v447_v53  ;;  %v448_v59 = vadd.s32 (!%p391_p2), 8, %v447_v53 }
   0xd   : > { %5190 = vmatpush3.bf16.msra.mxu0 (!%p391_p2), %v5648_v19  ;;  %5198 = vmatpush3.bf16.msra.mxu1 (!%p391_p2), %v5648_v19 }
   0xe   : > { %5192 = vmatprep.subr.bf16.mxu0 (!%p391_p2), %v5666_v25  ;;  %5200 = vmatprep.subr.bf16.mxu1 (!%p391_p2), %v5666_v25  ;;  %vm5752_vm2 = vcmp.eq.s32.totalorder (!%p391_p2), %v455_v56, 3  ;;  %v462_v0 = vand.u32 (!%p391_p2), 3, %v448_v59  ;;  %vm5797_vm6 = vcmp.eq.s32.totalorder (!%p391_p2), %v455_v56, 0 }
   0xf   : > { %s7014_s29 = smov (!%p435_p3, %s4654_s29), 15 }
  0x10   : > { %s4655_s12 = sshll.u32 %s7014_s29, 3  ;;  %vm5766_vm3 = vcmp.eq.s32.totalorder %v462_v0, 3  ;;  %vm5804_vm7 = vcmp.eq.s32.totalorder %v462_v0, 0 }
  0x11   : > { %s438_s15 = scalar_lea.vmem %s6949_s0, %s4655_s12  ;;  %5194 = vmatpush3.bf16.msra.mxu0 %v5666_v25  ;;  %5202 = vmatpush3.bf16.msra.mxu1 %v5666_v25  ;;  %s6924_s22 = scalar_lea.vmem %s6962_s13, %s4655_s12 }
  0x12   : > { %v535_v2 = vld [vmem:[%s438_s15 + $0x8] sm:$0xff]  ;;  %v534_v3 = vld [vmem:[%s438_s15] sm:$0xff]  ;;  %v537_v5 = vld [vmem:[%s438_s15 + $0x18] sm:$0xff] }
  0x13   : > { %545 = vperm.xlu1 %5369, %v535_v2   ;;  %540 = vperm.xlu0 %5367, %v534_v3   ;;  %v536_v7 = vld [vmem:[%s438_s15 + $0x10] sm:$0xff] }
  0x17   : > { %5370 = vset.pattern.permute.xlu1 %v5526_v4  ;;  %5368 = vset.pattern.permute.xlu0 %v5526_v4 }
  0x18   : > { %573 = vperm.xlu1 %5370, %v535_v2   ;;  %569 = vperm.xlu0 %5368, %v534_v3  }
  0x1c   : > { %5371 = vset.pattern.permute.xlu1 %v5527_v6  ;;  %5374 = vset.pattern.permute.xlu0 %v5525_v1 }
  0x1d   : > { %589 = vperm.xlu1 %5371, %v534_v3   ;;  %555 = vperm.xlu0 %5374, %v537_v5  }
  0x21   : > { %5372 = vset.pattern.permute.xlu1 %v5525_v1  ;;  %5375 = vset.pattern.permute.xlu0 %v5527_v6 }
  0x22   : > { %550 = vperm.xlu1 %5372, %v536_v7   ;;  %593 = vperm.xlu0 %5375, %v535_v2  }
  0x26   : > { %5373 = vset.pattern.permute.xlu1 %v5526_v4  ;;  %597 = vperm.xlu0 %5375, %v536_v7  }
  0x27   : > { %577 = vperm.xlu1 %5373, %v536_v7  }
  0x2a   : > { %5378 = vset.pattern.permute.xlu0 %v5528_v8 }
  0x2b   : > { %581 = vperm.xlu1 %5373, %v537_v5   ;;  %617 = vperm.xlu0 %5378, %v536_v7  }
  0x2f   : > { %5376 = vset.pattern.permute.xlu1 %v5528_v8  ;;  %5381 = vset.pattern.permute.xlu0 %v5525_v1 }
  0x30   : > { %609 = vperm.xlu1 %5376, %v534_v3  }
  0x34   : > { %613 = vperm.xlu1 %5376, %v535_v2  }
  0x38   : > { %5377 = vset.pattern.permute.xlu1 %v5527_v6  ;;  %v5772_v6 = vadd.s32 24, %v447_v53 }
  0x39   : > { %601 = vperm.xlu1 %5377, %v537_v5  }
  0x3d   : > { %5379 = vset.pattern.permute.xlu1 %v5528_v8 }
  0x3e   : > { %621 = vperm.xlu1 %5379, %v537_v5  }
  0x42   : > { %5380 = vset.pattern.permute.xlu1 %v5525_v1  ;;  %v5759_v1 = vadd.s32 16, %v447_v53 }
  0x44   : > { %v469_v5 = vand.u32 3, %v5759_v1 }
  0x46   : > { %vm5779_vm4 = vcmp.eq.s32.totalorder %v469_v5, 3  ;;  %vm5821_vm13 = vcmp.eq.s32.totalorder %v469_v5, 0 }
  0x92   : > { %v546_v10 = vpop.permute.xlu1 %545  ;;  %v541_v11 = vpop.permute.xlu0 %540 }
  0x93   : > { %v5632_v12 = vmul.f32 %v5629_v9, %v541_v11  ;;  %v5637_v13 = vmul.f32 %v5629_v9, %v546_v10  ;;  %v476_v11 = vand.u32 3, %v5772_v6 }
  0x95   : > { %661 = vrot.lane.b32.xlu1 %v5632_v12, %s5529_s18  ;;  %v785_v57 = vrot.slane %v5637_v13, 1  ;;  %v784_v58 = vrot.slane %v5632_v12, 1  ;;  %vm5789_vm5 = vcmp.eq.s32.totalorder %v476_v11, 3  ;;  %vm5830_vm14 = vcmp.eq.s32.totalorder %v476_v11, 0 }
  0x97   : > { %v574_v14 = vpop.permute.xlu1 %573  ;;  %v570_v15 = vpop.permute.xlu0 %569  ;;  %v786_v63 = vsel %vm6964_vm1, %v784_v58, %v785_v57 }
  0x98   : > { %v5646_v18 = vmul.f32 %v5629_v9, %v570_v15  ;;  %v5664_v22 = vmul.f32 %v5629_v9, %v574_v14  ;;  %v804_v2 = vsel %vm5752_vm2, 0.0, %v786_v63 }
  0x99   : > { %663 = vrot.lane.b32.xlu1 %v5637_v13, %s5529_s18 }
  0x9a   : > { %707 = vrot.lane.b32.xlu0 %v5646_v18, %s5529_s18 }
  0x9c   : > { %v590_v23 = vpop.permute.xlu1 %589  ;;  %v556_v24 = vpop.permute.xlu0 %555 }
  0x9d   : > { %681 = vrot.lane.b32.xlu1 %v5646_v18, %s5530_s28  ;;  %v5677_v26 = vmul.f32 %v5629_v9, %v590_v23  ;;  %v5695_v32 = vmul.f32 %v5629_v9, %v556_v24 }
  0x9e   : > { %709 = vrot.lane.b32.xlu0 %v5664_v22, %s5529_s18 }
  0x9f   : > { %v789_v7 = vrot.slane %v5695_v32, 1 }
  0xa1   : > { %v551_v27 = vpop.permute.xlu1 %550  ;;  %683 = vrot.lane.b32.xlu1 %v5664_v22, %s5530_s28  ;;  %v594_v28 = vpop.permute.xlu0 %593  ;;  %v795_v16 = vsel %vm6964_vm1, %v789_v7, 0.0 }
  0xa2   : > { %v5683_v29 = vmul.f32 %v5629_v9, %v551_v27  ;;  %v5686_v30 = vmul.f32 %v5629_v9, %v594_v28  ;;  %727 = vrot.lane.b32.xlu0 %v5677_v26, %s5530_s28  ;;  %v807_v17 = vsel %vm5789_vm5, 0.0, %v795_v16 }
  0xa4   : > { %v787_v62 = vrot.slane %v5683_v29, 1 }
  0xa5   : > { %665 = vrot.lane.b32.xlu1 %v5683_v29, %s5529_s18  ;;  %v598_v34 = vpop.permute.xlu0 %597 }
  0xa6   : > { %v578_v31 = vpop.permute.xlu1 %577  ;;  %729 = vrot.lane.b32.xlu0 %v5686_v30, %s5530_s28  ;;  %v5720_v42 = vmul.f32 %v5629_v9, %v598_v34  ;;  %v788_v4 = vsel %vm6964_vm1, %v785_v57, %v787_v62  ;;  %v790_v10 = vsel %vm6964_vm1, %v787_v62, %v789_v7 }
  0xa7   : > { %v5698_v33 = vmul.f32 %v5629_v9, %v578_v31  ;;  %v805_v8 = vsel %vm5766_vm3, 0.0, %v788_v4  ;;  %v806_v14 = vsel %vm5779_vm4, 0.0, %v790_v10 }
  0xa9   : > { %667 = vrot.lane.b32.xlu1 %v5695_v32, %s5529_s18 }
  0xaa   : > { %v582_v35 = vpop.permute.xlu1 %581  ;;  %711 = vrot.lane.b32.xlu0 %v5698_v33, %s5529_s18  ;;  %v618_v37 = vpop.permute.xlu0 %617 }
  0xab   : > { %v5705_v36 = vmul.f32 %v5629_v9, %v582_v35  ;;  %v626_v40 = vmul.f32 %v5629_v9, %v618_v37  ;;  %v5811_v37 = vld [vmem:[%s6951_s2] ss:$0 sm:$0xff] }
  0xad   : > { %747 = vrot.lane.b32.xlu1 %v5677_v26, %s5529_s18  ;;  %v636_v44 = vrot.slane %v626_v40, 7 }
  0xae   : > { %713 = vrot.lane.b32.xlu0 %v5705_v36, %s5529_s18 }
  0xaf   : > { %v610_v38 = vpop.permute.xlu1 %609 }
  0xb0   : > { %v5712_v39 = vmul.f32 %v5629_v9, %v610_v38 }
  0xb1   : > { %685 = vrot.lane.b32.xlu1 %v5698_v33, %s5530_s28 }
  0xb2   : > { %808 = vrot.lane.b32.xlu0 %v5712_v39, %s5529_s18  ;;  %v633_v46 = vrot.slane %v5712_v39, 7 }
  0xb3   : > { %v614_v41 = vpop.permute.xlu1 %613 }
  0xb4   : > { %v625_v43 = vmul.f32 %v5629_v9, %v614_v41  ;;  %v644_v23 = vsel %vm6963_vm0, 0.0, %v633_v46 }
  0xb5   : > { %749 = vrot.lane.b32.xlu1 %v5686_v30, %s5529_s18  ;;  %v653_v28 = vsel %vm5797_vm6, 0.0, %v644_v23 }
  0xb6   : > { %v634_v45 = vrot.slane %v625_v43, 7  ;;  %731 = vrot.lane.b32.xlu0 %v5720_v42, %s5530_s28 }
  0xb8   : > { %v602_v47 = vpop.permute.xlu1 %601  ;;  %v635_v48 = vsel %vm6963_vm0, %v633_v46, %v634_v45  ;;  %v5730_v49 = vsel %vm6963_vm0, %v634_v45, %v636_v44 }
  0xb9   : > { %687 = vrot.lane.b32.xlu1 %v5705_v36, %s5530_s28  ;;  %v5736_v51 = vmul.f32 %v5629_v9, %v602_v47  ;;  %v655_v16 = vsel %vm5821_vm13, 0.0, %v5730_v49 }
  0xba   : > { %810 = vrot.lane.b32.xlu0 %v625_v43, %s5529_s18 }
  0xbd   : > { %763 = vrot.lane.b32.xlu1 %v5712_v39, %s5530_s28  ;;  %v622_v52 = vpop.permute.xlu1 %621 }
  0xbe   : > { %733 = vrot.lane.b32.xlu0 %v5736_v51, %s5530_s28  ;;  %v627_v54 = vmul.f32 %v5629_v9, %v622_v52 }
  0xc0   : > { %v638_v55 = vrot.slane %v627_v54, 7 }
  0xc1   : > { %765 = vrot.lane.b32.xlu1 %v625_v43, %s5530_s28 }
  0xc2   : > { %812 = vrot.lane.b32.xlu0 %v626_v40, %s5529_s18  ;;  %v5748_v60 = vsel %vm6963_vm0, %v636_v44, %v638_v55 }
  0xc3   : > { %v656_v49 = vsel %vm5830_vm14, 0.0, %v5748_v60 }
  0xc5   : > { %751 = vrot.lane.b32.xlu1 %v5720_v42, %s5529_s18 }
  0xc6   : > { %814 = vrot.lane.b32.xlu0 %v627_v54, %s5529_s18 }
  0xc9   : > { %753 = vrot.lane.b32.xlu1 %v5736_v51, %s5529_s18 }
  0xca   : > { %828 = vrot.lane.b32.xlu0 %v804_v2, %s5530_s28 }
  0xcd   : > { %767 = vrot.lane.b32.xlu1 %v626_v40, %s5530_s28  ;;  %v654_v40 = vsel %vm5804_vm7, 0.0, %v635_v48 }
  0xce   : > { %830 = vrot.lane.b32.xlu0 %v805_v8, %s5530_s28 }
  0xd1   : > { %769 = vrot.lane.b32.xlu1 %v627_v54, %s5530_s28 }
  0xd2   : > { %832 = vrot.lane.b32.xlu0 %v806_v14, %s5530_s28 }
  0xd6   : > { %834 = vrot.lane.b32.xlu0 %v807_v17, %s5530_s28 }
 0x107   : > { %v662_v20 = vpop.permute.xlu1 %661 }
 0x108   : > { %v673_v31 = vadd.f32 %v662_v20, %v653_v28 }
 0x10b   : > { %v664_v24 = vpop.permute.xlu1 %663 }
 0x10c   : > { %v708_v27 = vpop.permute.xlu0 %707  ;;  %v674_v41 = vadd.f32 %v664_v24, %v654_v40 }
 0x10d   : > { %v719_v43 = vadd.f32 %v708_v27, %v5632_v12 }
 0x10f   : > { %v682_v35 = vpop.permute.xlu1 %681 }
 0x110   : > { %v693_v38 = vadd.f32 %v682_v35, %v673_v31  ;;  %v710_v39 = vpop.permute.xlu0 %709 }
 0x111   : > { %v720_v52 = vadd.f32 %v710_v39, %v5637_v13 }
 0x112   : > { %v703_v44 = vadd.f32 %v5811_v37, %v693_v38 }
 0x113   : > { %v684_v45 = vpop.permute.xlu1 %683 }
 0x114   : > { %v694_v46 = vadd.f32 %v684_v45, %v674_v41  ;;  %v728_v47 = vpop.permute.xlu0 %727  ;;  %v852_v56 = vmul.f32 0.1, %v703_v44  ;;  %vm848_vm8 = vcmp.ge.f32.partialorder %v703_v44, 0.0 }
 0x115   : > { %v739_v50 = vadd.f32 %v728_v47, %v719_v43 }
 0x116   : > { %v704_v53 = vadd.f32 %v5811_v37, %v694_v46  ;;  %v856_v63 = vsel %vm848_vm8, %v703_v44, %v852_v56 }
 0x117   : > { %v743_v54 = vadd.f32 %v5811_v37, %v739_v50  ;;  %v666_v55 = vpop.permute.xlu1 %665 }
 0x118   : > { %v730_v57 = vpop.permute.xlu0 %729  ;;  %v853_v12 = vmul.f32 0.1, %v704_v53  ;;  %vm849_vm11 = vcmp.ge.f32.partialorder %v704_v53, 0.0  ;;  %v675_v17 = vadd.f32 %v666_v55, %v655_v16 }
 0x119   : > { %v740_v48 = vadd.f32 %v730_v57, %v720_v52  ;;  %vm860_vm9 = vcmp.ge.f32.partialorder %v743_v54, 0.0  ;;  %v864_v58 = vmul.f32 0.1, %v743_v54 }
 0x11a   : > { %v857_v6 = vsel %vm849_vm11, %v704_v53, %v853_v12 }
 0x11b   : > { %v744_v59 = vadd.f32 %v5811_v37, %v740_v48  ;;  %v668_v62 = vpop.permute.xlu1 %667  ;;  %v868_v0 = vsel %vm860_vm9, %v743_v54, %v864_v58 }
 0x11c   : > { %v712_v13 = vpop.permute.xlu0 %711  ;;  %v896_v1 = vmax.f32 %v856_v63, %v868_v0  ;;  %v676_v39 = vadd.f32 %v668_v62, %v656_v49 }
 0x11d   : > { %vm861_vm12 = vcmp.ge.f32.partialorder %v744_v59, 0.0  ;;  %v865_v2 = vmul.f32 0.1, %v744_v59  ;;  %v721_v27 = vadd.f32 %v712_v13, %v5683_v29 }
 0x11e   : > { %4915 = vmatprep.mubr.msk.f32.mxu0 %vm904_vm10, %v896_v1 }
 0x11f   : > { %v869_v7 = vsel %vm861_vm12, %v744_v59, %v865_v2  ;;  %v748_v8 = vpop.permute.xlu1 %747 }
 0x120   : > { %v714_v10 = vpop.permute.xlu0 %713  ;;  %v897_v14 = vmax.f32 %v857_v6, %v869_v7  ;;  %v759_v48 = vadd.f32 %v748_v8, %v5646_v18 }
 0x121   : > { %v722_v29 = vadd.f32 %v714_v10, %v5695_v32 }
 0x122   : > { %4916 = vmatmul.mubr.msk.f32.vlgmr.msra.gmra.mrb[0].mxu0 %vm904_vm10, %v897_v14 }
 0x123   : > { %v686_v20 = vpop.permute.xlu1 %685 }
 0x124   : > { %v695_v23 = vadd.f32 %v686_v20, %v675_v17  ;;  %v809_v5 = vpop.permute.xlu0 %808 }
 0x125   : > { %v820_v7 = vadd.f32 %v809_v5, %v5677_v26 }
 0x126   : > { %v705_v28 = vadd.f32 %v5811_v37, %v695_v23 }
 0x127   : > { %v750_v31 = vpop.permute.xlu1 %749 }
 0x128   : > { %v732_v35 = vpop.permute.xlu0 %731  ;;  %v854_v40 = vmul.f32 0.1, %v705_v28  ;;  %vm850_vm15 = vcmp.ge.f32.partialorder %v705_v28, 0.0  ;;  %v760_v0 = vadd.f32 %v750_v31, %v5664_v22 }
 0x129   : > { %v741_v38 = vadd.f32 %v732_v35, %v721_v27 }
 0x12a   : > { %v858_v46 = vsel %vm850_vm15, %v705_v28, %v854_v40 }
 0x12b   : > { %v745_v41 = vadd.f32 %v5811_v37, %v741_v38  ;;  %v688_v43 = vpop.permute.xlu1 %687 }
 0x12c   : > { %v696_v11 = vadd.f32 %v688_v43, %v676_v39  ;;  %v811_v44 = vpop.permute.xlu0 %810 }
 0x12d   : > { %vm862_vm8 = vcmp.ge.f32.partialorder %v745_v41, 0.0  ;;  %v866_v45 = vmul.f32 0.1, %v745_v41  ;;  %v821_v20 = vadd.f32 %v811_v44, %v5686_v30 }
 0x12e   : > { %v706_v50 = vadd.f32 %v5811_v37, %v696_v11 }
 0x12f   : > { %v870_v47 = vsel %vm862_vm8, %v745_v41, %v866_v45  ;;  %v764_v52 = vpop.permute.xlu1 %763 }
 0x130   : > { %v734_v53 = vpop.permute.xlu0 %733  ;;  %v898_v60 = vmax.f32 %v858_v46, %v870_v47  ;;  %v855_v55 = vmul.f32 0.1, %v706_v50  ;;  %vm851_vm9 = vcmp.ge.f32.partialorder %v706_v50, 0.0  ;;  %v775_v12 = vadd.f32 %v764_v52, %v759_v48 }
 0x131   : > { %v742_v54 = vadd.f32 %v734_v53, %v722_v29 }
 0x132   : > { %4918 = vmatprep.mubr.msk.f32.mxu0 %vm904_vm10, %v898_v60  ;;  %v859_v59 = vsel %vm851_vm9, %v706_v50, %v855_v55  ;;  %v779_v2 = vadd.f32 %v5811_v37, %v775_v12 }
 0x133   : > { %v746_v56 = vadd.f32 %v5811_v37, %v742_v54  ;;  %v766_v57 = vpop.permute.xlu1 %765 }
 0x134   : > { %v813_v58 = vpop.permute.xlu0 %812  ;;  %v776_v6 = vadd.f32 %v766_v57, %v760_v0  ;;  %v876_v17 = vmul.f32 0.1, %v779_v2  ;;  %vm872_vm12 = vcmp.ge.f32.partialorder %v779_v2, 0.0 }
 0x135   : > { %vm863_vm11 = vcmp.ge.f32.partialorder %v746_v56, 0.0  ;;  %v867_v32 = vmul.f32 0.1, %v746_v56  ;;  %v822_v5 = vadd.f32 %v813_v58, %v5720_v42 }
 0x136   : > { %v780_v14 = vadd.f32 %v5811_v37, %v776_v6  ;;  %v880_v38 = vsel %vm872_vm12, %v779_v2, %v876_v17 }
 0x137   : > { %v871_v62 = vsel %vm863_vm11, %v746_v56, %v867_v32  ;;  %v752_v63 = vpop.permute.xlu1 %751 }
 0x138   : > { %v815_v13 = vpop.permute.xlu0 %814  ;;  %v899_v1 = vmax.f32 %v859_v59, %v871_v62  ;;  %v761_v16 = vadd.f32 %v752_v63, %v5698_v33  ;;  %v877_v26 = vmul.f32 0.1, %v780_v14  ;;  %vm873_vm8 = vcmp.ge.f32.partialorder %v780_v14, 0.0 }
 0x139   : > { %v823_v46 = vadd.f32 %v815_v13, %v5736_v51 }
 0x13a   : > { %4919 = vmatmul.mubr.msk.f32.gmra.mrb[2].mxu0 %vm904_vm10, %v899_v1  ;;  %v881_v29 = vsel %vm873_vm8, %v780_v14, %v877_v26 }
 0x13b   : > { %v754_v18 = vpop.permute.xlu1 %753 }
 0x13c   : > { %v829_v8 = vpop.permute.xlu0 %828  ;;  %v762_v49 = vadd.f32 %v754_v18, %v5705_v36 }
 0x13d   : > { %v840_v10 = vadd.f32 %v829_v8, %v820_v7 }
 0x13f   : > { %v844_v22 = vadd.f32 %v5811_v37, %v840_v10  ;;  %v768_v23 = vpop.permute.xlu1 %767 }
 0x140   : > { %v777_v27 = vadd.f32 %v768_v23, %v761_v16  ;;  %v831_v28 = vpop.permute.xlu0 %830  ;;  %v515_v23 = vld [vmem:[%s6954_s5 + $0x8] sm:$0xff] }
 0x141   : > { %v841_v31 = vadd.f32 %v831_v28, %v821_v20  ;;  %vm884_vm15 = vcmp.ge.f32.partialorder %v844_v22, 0.0  ;;  %v888_v35 = vmul.f32 0.1, %v844_v22 }
 0x142   : > { %v781_v33 = vadd.f32 %v5811_v37, %v777_v27 }
 0x143   : > { %v845_v30 = vadd.f32 %v5811_v37, %v841_v31  ;;  %v770_v39 = vpop.permute.xlu1 %769  ;;  %v892_v40 = vsel %vm884_vm15, %v844_v22, %v888_v35  ;;  %v514_v22 = vld [vmem:[%s6954_s5] sm:$0xff] }
 0x144   : > { %v778_v41 = vadd.f32 %v770_v39, %v762_v49  ;;  %v833_v43 = vpop.permute.xlu0 %832  ;;  %v900_v11 = vmax.f32 %v880_v38, %v892_v40  ;;  %v878_v36 = vmul.f32 0.1, %v781_v33  ;;  %vm874_vm11 = vcmp.ge.f32.partialorder %v781_v33, 0.0  ;;  %v516_v49 = vld [vmem:[%s6954_s5 + $0x10] sm:$0xff]  ;;  %v517_v38 = vld [vmem:[%s6954_s5 + $0x18] sm:$0xff] }
 0x145   : > { %vm885_vm9 = vcmp.ge.f32.partialorder %v845_v30, 0.0  ;;  %v889_v44 = vmul.f32 0.1, %v845_v30  ;;  %v842_v45 = vadd.f32 %v833_v43, %v822_v5  ;;  %v5891_v27 = vpack.c.bf16 %v515_v23, %v514_v22 }
 0x146   : > { %4929 = vmatprep.mubr.msk.f32.mxu1 %vm904_vm10, %v900_v11  ;;  %v782_v47 = vadd.f32 %v5811_v37, %v778_v41  ;;  %v882_v55 = vsel %vm874_vm11, %v781_v33, %v878_v36  ;;  %v5908_v39 = vpack.c.bf16 %v517_v38, %v516_v49 }
 0x147   : > { %v893_v42 = vsel %vm885_vm9, %v845_v30, %v889_v44  ;;  %v846_v50 = vadd.f32 %v5811_v37, %v842_v45  ;;  %5204 = vmatprep.subr.bf16.mxu0 %v5891_v27 }
 0x148   : > { %v835_v52 = vpop.permute.xlu0 %834  ;;  %v901_v53 = vmax.f32 %v881_v29, %v893_v42  ;;  %v879_v56 = vmul.f32 0.1, %v782_v47  ;;  %vm875_vm15 = vcmp.ge.f32.partialorder %v782_v47, 0.0  ;;  %5206 = vmatpush3.bf16.msra.mxu0 %v5891_v27 }
 0x149   : > { %vm886_vm12 = vcmp.ge.f32.partialorder %v846_v50, 0.0  ;;  %v890_v60 = vmul.f32 0.1, %v846_v50  ;;  %v843_v54 = vadd.f32 %v835_v52, %v823_v46  ;;  %5208 = vmatprep.subr.bf16.mxu0 %v5908_v39 }
 0x14a   : > { %4930 = vmatmul.mubr.msk.f32.vlgmr.msra.gmra.mrb[0].mxu1 %vm904_vm10, %v901_v53  ;;  %v883_v32 = vsel %vm875_vm15, %v782_v47, %v879_v56 }
 0x14b   : > { %v894_v57 = vsel %vm886_vm12, %v846_v50, %v890_v60  ;;  %v847_v51 = vadd.f32 %v5811_v37, %v843_v54  ;;  %v4668_v60 = vld [vmem:[%s6953_s4] ss:$0 sm:$0xff] }
 0x14c   : > { %v902_v48 = vmax.f32 %v882_v55, %v894_v57  ;;  %5210 = vmatpush3.bf16.msra.mxu0 %v5908_v39 }
 0x14d   : > { %vm887_vm8 = vcmp.ge.f32.partialorder %v847_v51, 0.0  ;;  %v891_v58 = vmul.f32 0.1, %v847_v51 }
 0x14e   : > { %4932 = vmatprep.mubr.msk.f32.mxu1 %vm904_vm10, %v902_v48 }
 0x14f   : > { %v895_v12 = vsel %vm887_vm8, %v847_v51, %v891_v58 }
 0x150   : > { %v903_v59 = vmax.f32 %v883_v32, %v895_v12 }
 0x152   : > { %4933 = vmatmul.mubr.msk.f32.gmra.mrb[2].mxu1 %vm904_vm10, %v903_v59 }
 0x1f5   : > { %v5865_v62 = vpop.f32.mrb[0].mxu0 }
 0x1f6   : > { %v1166_v63 = vrot.slane %v5865_v62, 1  ;;  %1125 = vrot.lane.b32.xlu1 %v5865_v62, %s5529_s18  ;;  %v983_v0 = vpop.f32.mrb[1].mxu0 }
 0x1f7   : > { %v1165_v37 = vrot.slane %v983_v0, 1 }
 0x1f9   : > { %v1167_v13 = vsel %vm6964_vm1, %v1165_v37, %v1166_v63 }
 0x1fa   : > { %1123 = vrot.lane.b32.xlu1 %v983_v0, %s5529_s18  ;;  %v1177_v31 = vsel %vm5752_vm2, 0.0, %v1167_v13 }
 0x20d   : > { %v5872_v1 = vpop.f32.mrb[2].mxu0 }
 0x20e   : > { %v1170_v2 = vrot.slane %v5872_v1, 1  ;;  %v5875_v6 = vpop.f32.mrb[3].mxu0 }
 0x20f   : > { %v1168_v7 = vrot.slane %v5875_v6, 1 }
 0x210   : > { %v1176_v43 = vsel %vm6964_vm1, %v1170_v2, 0.0 }
 0x211   : > { %v1169_v18 = vsel %vm6964_vm1, %v1166_v63, %v1168_v7  ;;  %v1171_v8 = vsel %vm6964_vm1, %v1168_v7, %v1170_v2  ;;  %v1180_v11 = vsel %vm5789_vm5, 0.0, %v1176_v43 }
 0x212   : > { %v1178_v40 = vsel %vm5766_vm3, 0.0, %v1169_v18  ;;  %v1179_v41 = vsel %vm5779_vm4, 0.0, %v1171_v8 }
 0x21d   : > { %v4931_v10 = vpop.f32.mrb[0].mxu1 }
 0x21e   : > { %v1104_v14 = vrot.slane %v4931_v10, 7  ;;  %1141 = vrot.lane.b32.xlu1 %v4931_v10, %s5530_s28  ;;  %1183 = vrot.lane.b32.xlu0 %v4931_v10, %s5529_s18  ;;  %v1080_v16 = vpop.f32.mrb[1].mxu1 }
 0x21f   : > { %v1103_v17 = vrot.slane %v1080_v16, 7 }
 0x221   : > { %v1105_v20 = vsel %vm6963_vm0, %v1103_v17, %v1104_v14  ;;  %v1114_v29 = vsel %vm6963_vm0, 0.0, %v1103_v17 }
 0x222   : > { %1139 = vrot.lane.b32.xlu1 %v1080_v16, %s5530_s28  ;;  %1181 = vrot.lane.b32.xlu0 %v1080_v16, %s5529_s18  ;;  %v1115_v42 = vsel %vm5797_vm6, 0.0, %v1114_v29  ;;  %v1116_v32 = vsel %vm5804_vm7, 0.0, %v1105_v20 }
 0x225   : > { %v4934_v28 = vpop.f32.mrb[2].mxu1 }
 0x226   : > { %v1108_v35 = vrot.slane %v4934_v28, 7  ;;  %1129 = vrot.lane.b32.xlu1 %v5872_v1, %s5529_s18  ;;  %1201 = vrot.lane.b32.xlu0 %v1177_v31, %s5530_s28  ;;  %v1090_v26 = vpop.f32.mrb[3].mxu1 }
 0x227   : > { %v1106_v5 = vrot.slane %v1090_v26, 7 }
 0x229   : > { %v1109_v33 = vsel %vm6963_vm0, %v1106_v5, %v1108_v35  ;;  %v1107_v30 = vsel %vm6963_vm0, %v1104_v14, %v1106_v5 }
 0x22a   : > { %1127 = vrot.lane.b32.xlu1 %v5875_v6, %s5529_s18  ;;  %1187 = vrot.lane.b32.xlu0 %v4934_v28, %s5529_s18  ;;  %v1117_v10 = vsel %vm5821_vm13, 0.0, %v1107_v30  ;;  %v1118_v20 = vsel %vm5830_vm14, 0.0, %v1109_v33 }
 0x22e   : > { %1143 = vrot.lane.b32.xlu1 %v1090_v26, %s5530_s28  ;;  %1185 = vrot.lane.b32.xlu0 %v1090_v26, %s5529_s18 }
 0x232   : > { %1145 = vrot.lane.b32.xlu1 %v4934_v28, %s5530_s28  ;;  %1203 = vrot.lane.b32.xlu0 %v1178_v40, %s5530_s28 }
 0x236   : > { %1205 = vrot.lane.b32.xlu0 %v1179_v41, %s5530_s28 }
 0x23a   : > { %1207 = vrot.lane.b32.xlu0 %v1180_v11, %s5530_s28 }
 0x268   : > { %v1126_v44 = vpop.permute.xlu1 %1125 }
 0x269   : > { %v1136_v63 = vadd.f32 %v1126_v44, %v1116_v32 }
 0x26c   : > { %v1124_v45 = vpop.permute.xlu1 %1123 }
 0x26d   : > { %v1135_v47 = vadd.f32 %v1124_v45, %v1115_v42 }
 0x290   : > { %v1142_v46 = vpop.permute.xlu1 %1141  ;;  %v1184_v36 = vpop.permute.xlu0 %1183 }
 0x291   : > { %v1152_v13 = vadd.f32 %v1142_v46, %v1136_v63  ;;  %v1194_v17 = vadd.f32 %v5865_v62, %v1184_v36 }
 0x293   : > { %v1162_v16 = vadd.f32 %v4668_v60, %v1152_v13  ;;  %v521_v13 = vld [vmem:[%s6956_s7 + $0x10] sm:$0xff] }
 0x294   : > { %v1140_v50 = vpop.permute.xlu1 %1139  ;;  %v1182_v52 = vpop.permute.xlu0 %1181 }
 0x295   : > { %v1151_v53 = vadd.f32 %v1140_v50, %v1135_v47  ;;  %v1193_v55 = vadd.f32 %v1182_v52, %v983_v0  ;;  %v1226_v26 = vmul.f32 0.1, %v1162_v16  ;;  %vm1222_vm12 = vcmp.ge.f32.partialorder %v1162_v16, 0.0 }
 0x297   : > { %v1161_v54 = vadd.f32 %v4668_v60, %v1151_v53  ;;  %v1230_v62 = vsel %vm1222_vm12, %v1162_v16, %v1226_v26 }
 0x298   : > { %v1130_v56 = vpop.permute.xlu1 %1129  ;;  %v1202_v57 = vpop.permute.xlu0 %1201 }
 0x299   : > { %v1213_v51 = vadd.f32 %v1202_v57, %v1193_v55  ;;  %v1225_v48 = vmul.f32 0.1, %v1161_v54  ;;  %vm1221_vm9 = vcmp.ge.f32.partialorder %v1161_v54, 0.0  ;;  %v1138_v31 = vadd.f32 %v1130_v56, %v1118_v20 }
 0x29b   : > { %v1217_v58 = vadd.f32 %v4668_v60, %v1213_v51  ;;  %v1229_v2 = vsel %vm1221_vm9, %v1161_v54, %v1225_v48  ;;  %v519_v51 = vld [vmem:[%s6956_s7] sm:$0xff] }
 0x29c   : > { %v1128_v12 = vpop.permute.xlu1 %1127  ;;  %v1188_v59 = vpop.permute.xlu0 %1187 }
 0x29d   : > { %vm1233_vm11 = vcmp.ge.f32.partialorder %v1217_v58, 0.0  ;;  %v1237_v37 = vmul.f32 0.1, %v1217_v58  ;;  %v1137_v14 = vadd.f32 %v1128_v12, %v1117_v10  ;;  %v1196_v11 = vadd.f32 %v5872_v1, %v1188_v59 }
 0x29f   : > { %v1241_v7 = vsel %vm1233_vm11, %v1217_v58, %v1237_v37 }
 0x2a0   : > { %v1144_v18 = vpop.permute.xlu1 %1143  ;;  %v1186_v8 = vpop.permute.xlu0 %1185  ;;  %v1245_v0 = vmax.f32 %v1229_v2, %v1241_v7  ;;  %v522_v2 = vld [vmem:[%s6956_s7 + $0x18] sm:$0xff] }
 0x2a1   : > { %v1153_v22 = vadd.f32 %v1144_v18, %v1137_v14  ;;  %v1195_v30 = vadd.f32 %v1186_v8, %v5875_v6  ;;  %v5965_v7 = vpack.c.bf16 %v522_v2, %v521_v13 }
 0x2a2   : > { %4943 = vmatprep.mubr.msk.f32.mxu0 %vm904_vm10, %v1245_v0 }
 0x2a3   : > { %v1163_v38 = vadd.f32 %v4668_v60, %v1153_v22 }
 0x2a4   : > { %v1146_v23 = vpop.permute.xlu1 %1145  ;;  %v1204_v28 = vpop.permute.xlu0 %1203 }
 0x2a5   : > { %v1214_v35 = vadd.f32 %v1204_v28, %v1194_v17  ;;  %v1154_v5 = vadd.f32 %v1146_v23, %v1138_v31  ;;  %v1227_v45 = vmul.f32 0.1, %v1163_v38  ;;  %vm1223_vm8 = vcmp.ge.f32.partialorder %v1163_v38, 0.0 }
 0x2a7   : > { %v1218_v49 = vadd.f32 %v4668_v60, %v1214_v35  ;;  %v1164_v33 = vadd.f32 %v4668_v60, %v1154_v5  ;;  %v1231_v52 = vsel %vm1223_vm8, %v1163_v38, %v1227_v45  ;;  %v5990_v38 = vld [vmem:[%s6957_s8] ss:$0 sm:$0xff] }
 0x2a8   : > { %v1206_v40 = vpop.permute.xlu0 %1205 }
 0x2a9   : > { %vm1234_vm15 = vcmp.ge.f32.partialorder %v1218_v49, 0.0  ;;  %v1238_v41 = vmul.f32 0.1, %v1218_v49  ;;  %v1215_v43 = vadd.f32 %v1206_v40, %v1195_v30  ;;  %v1228_v6 = vmul.f32 0.1, %v1164_v33 }
 0x2aa   : > { %vm1224_vm11 = vcmp.ge.f32.partialorder %v1164_v33, 0.0 }
 0x2ab   : > { %v1242_v44 = vsel %vm1234_vm15, %v1218_v49, %v1238_v41  ;;  %v1219_v46 = vadd.f32 %v4668_v60, %v1215_v43  ;;  %v1232_v55 = vsel %vm1224_vm11, %v1164_v33, %v1228_v6  ;;  %v4673_v33 = vld [vmem:[%s6955_s6] ss:$0 sm:$0xff] }
 0x2ac   : > { %v1246_v29 = vmax.f32 %v1230_v62, %v1242_v44  ;;  %v1208_v36 = vpop.permute.xlu0 %1207 }
 0x2ad   : > { %v1216_v42 = vadd.f32 %v1208_v36, %v1196_v11  ;;  %vm1235_vm9 = vcmp.ge.f32.partialorder %v1219_v46, 0.0  ;;  %v1239_v47 = vmul.f32 0.1, %v1219_v46 }
 0x2ae   : > { %4944 = vmatmul.mubr.msk.f32.vlgmr.msra.gmra.mrb[4].mxu0 %vm904_vm10, %v1246_v29 }
 0x2af   : > { %v1220_v50 = vadd.f32 %v4668_v60, %v1216_v42  ;;  %v1243_v53 = vsel %vm1235_vm9, %v1219_v46, %v1239_v47  ;;  %v520_v60 = vld [vmem:[%s6956_s7 + $0x8] sm:$0xff] }
 0x2b0   : > { %v1247_v1 = vmax.f32 %v1231_v52, %v1243_v53  ;;  %v5953_v48 = vpack.c.bf16 %v520_v60, %v519_v51 }
 0x2b1   : > { %vm1236_vm12 = vcmp.ge.f32.partialorder %v1220_v50, 0.0  ;;  %v1240_v54 = vmul.f32 0.1, %v1220_v50 }
 0x2b2   : > { %4946 = vmatprep.mubr.msk.f32.mxu0 %vm904_vm10, %v1247_v1  ;;  %5212 = vmatprep.subr.bf16.mxu1 %v5953_v48 }
 0x2b3   : > { %v1244_v56 = vsel %vm1236_vm12, %v1220_v50, %v1240_v54  ;;  %5214 = vmatpush3.bf16.msra.mxu1 %v5953_v48 }
 0x2b4   : > { %v1248_v57 = vmax.f32 %v1232_v55, %v1244_v56  ;;  %5216 = vmatprep.subr.bf16.mxu1 %v5965_v7 }
 0x2b6   : > { %4947 = vmatmul.mubr.msk.f32.gmra.mrb[6].mxu0 %vm904_vm10, %v1248_v57 }
 0x2b7   : > { %5218 = vmatpush3.bf16.msra.mxu1 %v5965_v7 }
 0x381   : > { %v4945_v58 = vpop.f32.mrb[4].mxu0 }
 0x382   : > { %v1351_v32 = vrot.slane %v4945_v58, 7  ;;  %v1367_v12 = vrot.slane %v4945_v58, 1  ;;  %1384 = vrot.lane.b32.xlu0 %v4945_v58, %s5529_s18  ;;  %v1327_v59 = vpop.f32.mrb[5].mxu0 }
 0x383   : > { %v1350_v63 = vrot.slane %v1327_v59, 7  ;;  %v1366_v37 = vrot.slane %v1327_v59, 1  ;;  %1382 = vrot.lane.b32.xlu1 %v1327_v59, %s5529_s18 }
 0x385   : > { %v1368_v18 = vsel %vm6964_vm1, %v1366_v37, %v1367_v12  ;;  %v1352_v8 = vsel %vm6963_vm0, %v1350_v63, %v1351_v32  ;;  %v1361_v40 = vsel %vm6963_vm0, 0.0, %v1350_v63 }
 0x386   : > { %v1378_v0 = vsel %vm5752_vm2, 0.0, %v1368_v18  ;;  %v1362_v43 = vsel %vm5797_vm6, 0.0, %v1361_v40  ;;  %v1363_v47 = vsel %vm5804_vm7, 0.0, %v1352_v8 }
 0x387   : > { %1402 = vrot.lane.b32.xlu1 %v1378_v0, %s5530_s28  ;;  %v524_v0 = vld [vmem:[%s6958_s9] sm:$0xff] }
 0x389   : > { %v4948_v10 = vpop.f32.mrb[6].mxu0 }
 0x38a   : > { %v1355_v14 = vrot.slane %v4948_v10, 7  ;;  %v1371_v16 = vrot.slane %v4948_v10, 1  ;;  %1388 = vrot.lane.b32.xlu0 %v4948_v10, %s5529_s18  ;;  %v1337_v17 = vpop.f32.mrb[7].mxu0  ;;  %v525_v10 = vld [vmem:[%s6958_s9 + $0x8] sm:$0xff] }
 0x38b   : > { %v1353_v20 = vrot.slane %v1337_v17, 7  ;;  %v1369_v22 = vrot.slane %v1337_v17, 1  ;;  %1386 = vrot.lane.b32.xlu1 %v1337_v17, %s5529_s18  ;;  %v527_v17 = vld [vmem:[%s6958_s9 + $0x18] sm:$0xff] }
 0x38c   : > { %v1377_v49 = vsel %vm6964_vm1, %v1371_v16, 0.0 }
 0x38d   : > { %v1372_v23 = vsel %vm6964_vm1, %v1369_v22, %v1371_v16  ;;  %v1370_v28 = vsel %vm6964_vm1, %v1367_v12, %v1369_v22  ;;  %v1356_v31 = vsel %vm6963_vm0, %v1353_v20, %v1355_v14  ;;  %v1354_v5 = vsel %vm6963_vm0, %v1351_v32, %v1353_v20  ;;  %v526_v16 = vld [vmem:[%s6958_s9 + $0x10] sm:$0xff] }
 0x38e   : > { %v1380_v35 = vsel %vm5779_vm4, 0.0, %v1372_v23  ;;  %v1379_v26 = vsel %vm5766_vm3, 0.0, %v1370_v28  ;;  %v1381_v30 = vsel %vm5789_vm5, 0.0, %v1377_v49  ;;  %v1364_v6 = vsel %vm5821_vm13, 0.0, %v1354_v5 }
 0x38f   : > { %1406 = vrot.lane.b32.xlu1 %v1380_v35, %s5530_s28  ;;  %1404 = vrot.lane.b32.xlu0 %v1379_v26, %s5530_s28  ;;  %v1365_v57 = vsel %vm5830_vm14, 0.0, %v1356_v31  ;;  %v6019_v14 = vpack.c.bf16 %v525_v10, %v524_v0  ;;  %v6031_v20 = vpack.c.bf16 %v527_v17, %v526_v16 }
 0x391   : > { %5220 = vmatprep.subr.bf16.mxu0 %v6019_v14  ;;  %5228 = vmatprep.subr.bf16.mxu1 %v6019_v14 }
 0x392   : > { %5222 = vmatpush3.bf16.msra.mxu0 %v6019_v14 }
 0x393   : > { %1408 = vrot.lane.b32.xlu0 %v1381_v30, %s5530_s28  ;;  %1543 = vrot.lane.b32.xlu1 %v5990_v38, %s5531_s23 }
 0x394   : > { %5224 = vmatprep.subr.bf16.mxu0 %v6031_v20 }
 0x396   : > { %5226 = vmatpush3.bf16.msra.mxu0 %v6031_v20 }
 0x3f4   : > { %v1385_v62 = vpop.permute.xlu0 %1384 }
 0x3f5   : > { %v1383_v41 = vpop.permute.xlu1 %1382  ;;  %v1395_v50 = vadd.f32 %v1385_v62, %v1363_v47 }
 0x3f6   : > { %v1394_v11 = vadd.f32 %v1383_v41, %v1362_v43 }
 0x3f9   : > { %v1403_v44 = vpop.permute.xlu1 %1402 }
 0x3fa   : > { %v1414_v45 = vadd.f32 %v1403_v44, %v1394_v11 }
 0x3fc   : > { %v1424_v29 = vadd.f32 %v4673_v33, %v1414_v45  ;;  %v1389_v46 = vpop.permute.xlu0 %1388  ;;  %v6056_v45 = vld [vmem:[%s6959_s10] ss:$0 sm:$0xff] }
 0x3fd   : > { %v1387_v36 = vpop.permute.xlu1 %1386  ;;  %v1397_v51 = vadd.f32 %v1389_v46, %v1365_v57 }
 0x3fe   : > { %vm1428_vm15 = vcmp.ge.f32.partialorder %v1424_v29, 0.0  ;;  %v1432_v42 = vmul.f32 0.1, %v1424_v29  ;;  %v1396_v52 = vadd.f32 %v1387_v36, %v1364_v6 }
 0x400   : > { %v1436_v53 = vsel %vm1428_vm15, %v1424_v29, %v1432_v42 }
 0x401   : > { %4957 = vmatprep.mubr.msk.f32.mxu1 %vm904_vm10, %v1436_v53  ;;  %v1407_v54 = vpop.permute.xlu1 %1406  ;;  %v1405_v1 = vpop.permute.xlu0 %1404 }
 0x402   : > { %v1416_v55 = vadd.f32 %v1407_v54, %v1396_v52  ;;  %v1415_v56 = vadd.f32 %v1405_v1, %v1395_v50 }
 0x404   : > { %v1426_v60 = vadd.f32 %v4673_v33, %v1416_v55  ;;  %v1425_v58 = vadd.f32 %v4673_v33, %v1415_v56 }
 0x405   : > { %v1409_v32 = vpop.permute.xlu0 %1408  ;;  %v6037_v22 = vpop.permute.xlu1 %1543 }
 0x406   : > { %vm1429_vm8 = vcmp.ge.f32.partialorder %v1425_v58, 0.0  ;;  %v1433_v12 = vmul.f32 0.1, %v1425_v58  ;;  %v1417_v59 = vadd.f32 %v1409_v32, %v1397_v51  ;;  %vm1430_vm9 = vcmp.ge.f32.partialorder %v1426_v60, 0.0 }
 0x407   : > { %v1434_v63 = vmul.f32 0.1, %v1426_v60 }
 0x408   : > { %v1437_v37 = vsel %vm1429_vm8, %v1425_v58, %v1433_v12  ;;  %v1427_v13 = vadd.f32 %v4673_v33, %v1417_v59 }
 0x409   : > { %4958 = vmatmul.mubr.msk.f32.vlgmr.msra.gmra.mrb[4].mxu1 %vm904_vm10, %v1437_v37  ;;  %v1438_v2 = vsel %vm1430_vm9, %v1426_v60, %v1434_v63  ;;  %v529_v37 = vld [vmem:[%s6960_s11] sm:$0xff] }
 0x40a   : > { %4960 = vmatprep.mubr.msk.f32.mxu1 %vm904_vm10, %v1438_v2  ;;  %vm1431_vm11 = vcmp.ge.f32.partialorder %v1427_v13, 0.0  ;;  %v1435_v18 = vmul.f32 0.1, %v1427_v13  ;;  %5230 = vmatpush3.bf16.msra.mxu1 %v6019_v14 }
 0x40b   : > { %5232 = vmatprep.subr.bf16.mxu1 %v6031_v20 }
 0x40c   : > { %v1439_v8 = vsel %vm1431_vm11, %v1427_v13, %v1435_v18  ;;  %v530_v13 = vld [vmem:[%s6960_s11 + $0x8] sm:$0xff]  ;;  %v532_v18 = vld [vmem:[%s6960_s11 + $0x18] sm:$0xff] }
 0x40d   : > { %4961 = vmatmul.mubr.msk.f32.gmra.mrb[6].mxu1 %vm904_vm10, %v1439_v8  ;;  %v6088_v2 = vpack.c.bf16 %v530_v13, %v529_v37 }
 0x40e   : > { %5234 = vmatpush3.bf16.msra.mxu1 %v6031_v20 }
 0x40f   : > { %5236 = vmatprep.subr.bf16.mxu0 %v6088_v2  ;;  %5244 = vmatprep.subr.bf16.mxu1 %v6088_v2 }
 0x4dc   : > { %v4959_v23 = vpop.f32.mrb[4].mxu1 }
 0x4dd   : > { %v1547_v28 = vadd.f32 %v4959_v23, %v6037_v22  ;;  %v1555_v31 = vrot.slane %v4959_v23, 1  ;;  %v1518_v35 = vpop.f32.mrb[5].mxu1 }
 0x4de   : > { %v1554_v26 = vrot.slane %v1518_v35, 1  ;;  %1570 = vrot.lane.b32.xlu0 %v1518_v35, %s5530_s28  ;;  %v1546_v5 = vadd.f32 %v6037_v22, %v1518_v35 }
 0x4df   : > { %1596 = vrot.lane.b32.xlu1 %v1547_v28, %s5529_s18 }
 0x4e0   : > { %v4962_v49 = vpop.f32.mrb[6].mxu1  ;;  %v1556_v30 = vsel %vm6964_vm1, %v1554_v26, %v1555_v31 }
 0x4e1   : > { %v1559_v40 = vrot.slane %v4962_v49, 1  ;;  %v1528_v41 = vpop.f32.mrb[7].mxu1  ;;  %v1549_v44 = vadd.f32 %v4962_v49, %v6037_v22  ;;  %v1566_v29 = vsel %vm5752_vm2, 0.0, %v1556_v30 }
 0x4e2   : > { %v1548_v43 = vadd.f32 %v6037_v22, %v1528_v41  ;;  %v1557_v62 = vrot.slane %v1528_v41, 1  ;;  %1594 = vrot.lane.b32.xlu0 %v1546_v5, %s5529_s18 }
 0x4e3   : > { %v1565_v56 = vsel %vm6964_vm1, %v1559_v40, 0.0 }
 0x4e4   : > { %1598 = vrot.lane.b32.xlu1 %v1548_v43, %s5529_s18  ;;  %v1558_v11 = vsel %vm6964_vm1, %v1555_v31, %v1557_v62  ;;  %v1560_v33 = vsel %vm6964_vm1, %v1557_v62, %v1559_v40  ;;  %v1569_v58 = vsel %vm5789_vm5, 0.0, %v1565_v56 }
 0x4e5   : > { %v1567_v52 = vsel %vm5766_vm3, 0.0, %v1558_v11  ;;  %v1568_v57 = vsel %vm5779_vm4, 0.0, %v1560_v33 }
 0x4e6   : > { %1572 = vrot.lane.b32.xlu0 %v4959_v23, %s5530_s28 }
 0x4e8   : > { %1600 = vrot.lane.b32.xlu1 %v1549_v44, %s5529_s18 }
 0x4ea   : > { %1574 = vrot.lane.b32.xlu0 %v1528_v41, %s5530_s28 }
 0x4ec   : > { %1576 = vrot.lane.b32.xlu1 %v4962_v49, %s5530_s28 }
 0x4ee   : > { %1798 = vrot.lane.b32.xlu0 %v6056_v45, %s5531_s23 }
 0x550   : > { %v1571_v46 = vpop.permute.xlu0 %1570 }
 0x551   : > { %v1582_v36 = vadd.f32 %v1571_v46, %v1566_v29  ;;  %v1597_v42 = vpop.permute.xlu1 %1596 }
 0x553   : > { %v1586_v47 = vadd.f32 %v5990_v38, %v1582_v36 }
 0x554   : > { %v1595_v6 = vpop.permute.xlu0 %1594 }
 0x555   : > { %4971 = vmatprep.mubr.msk.f32.mxu0 %vm904_vm10, %v1595_v6  ;;  %4985 = vmatprep.mubr.msk.f32.mxu1 %vm904_vm10, %v1586_v47 }
 0x556   : > { %v1599_v50 = vpop.permute.xlu1 %1598  ;;  %4972 = vmatmul.mubr.msk.f32.vlgmr.msra.gmra.mrb[8].mxu0 %vm904_vm10, %v1597_v42 }
 0x557   : > { %4974 = vmatprep.mubr.msk.f32.mxu0 %vm904_vm10, %v1599_v50  ;;  %5238 = vmatpush3.bf16.msra.mxu0 %v6088_v2 }
 0x558   : > { %v1573_v53 = vpop.permute.xlu0 %1572 }
 0x559   : > { %v1583_v54 = vadd.f32 %v1573_v53, %v1567_v52 }
 0x55a   : > { %v1601_v1 = vpop.permute.xlu1 %1600 }
 0x55b   : > { %v1587_v55 = vadd.f32 %v5990_v38, %v1583_v54  ;;  %4975 = vmatmul.mubr.msk.f32.gmra.mrb[10].mxu0 %vm904_vm10, %v1601_v1 }
 0x55c   : > { %v1575_v51 = vpop.permute.xlu0 %1574 }
 0x55d   : > { %v1584_v60 = vadd.f32 %v1575_v51, %v1568_v57  ;;  %4986 = vmatmul.mubr.msk.f32.vlgmr.msra.gmra.mrb[8].mxu1 %vm904_vm10, %v1587_v55 }
 0x55e   : > { %v1577_v32 = vpop.permute.xlu1 %1576  ;;  %5246 = vmatpush3.bf16.msra.mxu1 %v6088_v2 }
 0x55f   : > { %v1588_v12 = vadd.f32 %v5990_v38, %v1584_v60  ;;  %v1585_v59 = vadd.f32 %v1577_v32, %v1569_v58 }
 0x560   : > { %v6108_v10 = vpop.permute.xlu0 %1798 }
 0x561   : > { %v1589_v63 = vadd.f32 %v5990_v38, %v1585_v59  ;;  %4988 = vmatprep.mubr.msk.f32.mxu1 %vm904_vm10, %v1588_v12  ;;  %v531_v38 = vld [vmem:[%s6960_s11 + $0x10] sm:$0xff] }
 0x562   : > { %v6100_v8 = vpack.c.bf16 %v532_v18, %v531_v38 }
 0x563   : > { %4989 = vmatmul.mubr.msk.f32.gmra.mrb[10].mxu1 %vm904_vm10, %v1589_v63 }
 0x564   : > { %5240 = vmatprep.subr.bf16.mxu0 %v6100_v8  ;;  %5248 = vmatprep.subr.bf16.mxu1 %v6100_v8 }
 0x565   : > { %5242 = vmatpush3.bf16.msra.mxu0 %v6100_v8  ;;  %5250 = vmatpush3.bf16.msra.mxu1 %v6100_v8 }
 0x566   : > { %5260 = vmatprep.subr.bf16.mxu1 %v6088_v2  ;;  %5252 = vmatprep.subr.bf16.mxu0 %v6088_v2 }
 0x629   : > { %v4973_v0 = vpop.f32.mrb[8].mxu0 }
 0x62a   : > { %v1834_v16 = vrot.slane %v4973_v0, 1  ;;  %1811 = vrot.lane.b32.xlu0 %v4973_v0, %s5530_s28  ;;  %v1676_v17 = vpop.f32.mrb[9].mxu0  ;;  %v1802_v28 = vadd.f32 %v4973_v0, %v6108_v10 }
 0x62b   : > { %v1833_v23 = vrot.slane %v1676_v17, 1  ;;  %1809 = vrot.lane.b32.xlu1 %v1676_v17, %s5530_s28  ;;  %v1801_v31 = vadd.f32 %v6108_v10, %v1676_v17 }
 0x62d   : > { %v1835_v35 = vsel %vm6964_vm1, %v1833_v23, %v1834_v16 }
 0x62e   : > { %v6115_v26 = vpop.f32.mrb[10].mxu0  ;;  %1879 = vrot.lane.b32.xlu0 %v1802_v28, %s5529_s18  ;;  %v1845_v58 = vsel %vm5752_vm2, 0.0, %v1835_v35 }
 0x62f   : > { %v1838_v5 = vrot.slane %v6115_v26, 1  ;;  %v1686_v49 = vpop.f32.mrb[11].mxu0  ;;  %1877 = vrot.lane.b32.xlu1 %v1801_v31, %s5529_s18  ;;  %v1804_v46 = vadd.f32 %v6115_v26, %v6108_v10 }
 0x630   : > { %v1836_v30 = vrot.slane %v1686_v49, 1  ;;  %v4987_v40 = vpop.f32.mrb[8].mxu1  ;;  %v1803_v36 = vadd.f32 %v6108_v10, %v1686_v49 }
 0x631   : > { %v1773_v41 = vpop.f32.mrb[9].mxu1  ;;  %v1830_v44 = vadd.f32 %v4987_v40, %v6108_v10  ;;  %v1844_v35 = vsel %vm6964_vm1, %v1838_v5, 0.0 }
 0x632   : > { %1855 = vrot.lane.b32.xlu0 %v4987_v40, %s5530_s28  ;;  %v1837_v43 = vsel %vm6964_vm1, %v1834_v16, %v1836_v30  ;;  %v6125_v62 = vsel %vm6964_vm1, %v1836_v30, %v1838_v5  ;;  %v1829_v29 = vadd.f32 %v6108_v10, %v1773_v41 }
 0x633   : > { %1853 = vrot.lane.b32.xlu1 %v1773_v41, %s5530_s28  ;;  %v1846_v37 = vsel %vm5766_vm3, 0.0, %v1837_v43 }
 0x636   : > { %v4990_v11 = vpop.f32.mrb[10].mxu1  ;;  %1815 = vrot.lane.b32.xlu0 %v6115_v26, %s5530_s28  ;;  %v1847_v26 = vsel %vm5779_vm4, 0.0, %v6125_v62 }
 0x637   : > { %v1783_v33 = vpop.f32.mrb[11].mxu1  ;;  %1813 = vrot.lane.b32.xlu1 %v1686_v49, %s5530_s28  ;;  %v1832_v42 = vadd.f32 %v4990_v11, %v6108_v10  ;;  %v1848_v49 = vsel %vm5789_vm5, 0.0, %v1844_v35 }
 0x638   : > { %v1831_v47 = vadd.f32 %v6108_v10, %v1783_v33 }
 0x63a   : > { %2081 = vrot.lane.b32.xlu0 %v1830_v44, %s5529_s18 }
 0x63b   : > { %2079 = vrot.lane.b32.xlu1 %v1829_v29, %s5529_s18 }
 0x63e   : > { %1883 = vrot.lane.b32.xlu0 %v1804_v46, %s5529_s18 }
 0x63f   : > { %1881 = vrot.lane.b32.xlu1 %v1803_v36, %s5529_s18 }
 0x642   : > { %1859 = vrot.lane.b32.xlu0 %v4990_v11, %s5530_s28 }
 0x643   : > { %1857 = vrot.lane.b32.xlu1 %v1783_v33, %s5530_s28 }
 0x646   : > { %2085 = vrot.lane.b32.xlu0 %v1832_v42, %s5529_s18 }
 0x647   : > { %2083 = vrot.lane.b32.xlu1 %v1831_v47, %s5529_s18 }
 0x69c   : > { %v1812_v6 = vpop.permute.xlu0 %1811 }
 0x69d   : > { %v1822_v50 = vadd.f32 %v4987_v40, %v1812_v6  ;;  %v1810_v52 = vpop.permute.xlu1 %1809 }
 0x69e   : > { %v1821_v53 = vadd.f32 %v1810_v52, %v1773_v41 }
 0x69f   : > { %v1826_v55 = vadd.f32 %v6056_v45, %v1822_v50 }
 0x6a0   : > { %v1825_v54 = vadd.f32 %v6056_v45, %v1821_v53  ;;  %v1880_v1 = vpop.permute.xlu0 %1879 }
 0x6a1   : > { %v1878_v56 = vpop.permute.xlu1 %1877 }
 0x6a2   : > { %4999 = vmatprep.mubr.msk.f32.mxu0 %vm904_vm10, %v1878_v56  ;;  %5013 = vmatprep.mubr.msk.f32.mxu1 %vm904_vm10, %v1825_v54 }
 0x6a3   : > { %5000 = vmatmul.mubr.msk.f32.vlgmr.msra.gmra.mrb[12].mxu0 %vm904_vm10, %v1880_v1  ;;  %5014 = vmatmul.mubr.msk.f32.vlgmr.msra.gmra.mrb[12].mxu1 %vm904_vm10, %v1826_v55 }
 0x6a4   : > { %v1856_v57 = vpop.permute.xlu0 %1855  ;;  %5262 = vmatpush3.bf16.msra.mxu1 %v6088_v2  ;;  %5254 = vmatpush3.bf16.msra.mxu0 %v6088_v2 }
 0x6a5   : > { %v1854_v51 = vpop.permute.xlu1 %1853  ;;  %5264 = vmatprep.subr.bf16.mxu1 %v6100_v8  ;;  %5256 = vmatprep.subr.bf16.mxu0 %v6100_v8  ;;  %v1866_v18 = vadd.f32 %v1856_v57, %v1846_v37 }
 0x6a6   : > { %v1865_v59 = vadd.f32 %v1854_v51, %v1845_v58 }
 0x6a7   : > { %v1870_v28 = vadd.f32 %v6056_v45, %v1866_v18 }
 0x6a8   : > { %v1816_v60 = vpop.permute.xlu0 %1815  ;;  %5266 = vmatpush3.bf16.msra.mxu1 %v6100_v8  ;;  %5258 = vmatpush3.bf16.msra.mxu0 %v6100_v8  ;;  %v1869_v17 = vadd.f32 %v6056_v45, %v1865_v59 }
 0x6a9   : > { %v1824_v32 = vadd.f32 %v4990_v11, %v1816_v60  ;;  %v1814_v12 = vpop.permute.xlu1 %1813  ;;  %5268 = vmatprep.subr.bf16.mxu0 %v5648_v19  ;;  %5276 = vmatprep.subr.bf16.mxu1 %v5648_v19 }
 0x6aa   : > { %v1823_v63 = vadd.f32 %v1814_v12, %v1783_v33 }
 0x6ab   : > { %v1828_v0 = vadd.f32 %v6056_v45, %v1824_v32 }
 0x6ac   : > { %v1827_v13 = vadd.f32 %v6056_v45, %v1823_v63  ;;  %v2082_v38 = vpop.permute.xlu0 %2081 }
 0x6ad   : > { %v2080_v16 = vpop.permute.xlu1 %2079 }
 0x6ae   : > { %5016 = vmatprep.mubr.msk.f32.mxu1 %vm904_vm10, %v1827_v13 }
 0x6af   : > { %5017 = vmatmul.mubr.msk.f32.gmra.mrb[14].mxu1 %vm904_vm10, %v1828_v0 }
 0x6b0   : > { %5041 = vmatprep.mubr.msk.f32.mxu1 %vm904_vm10, %v1869_v17  ;;  %v1884_v23 = vpop.permute.xlu0 %1883 }
 0x6b1   : > { %v1882_v31 = vpop.permute.xlu1 %1881 }
 0x6b2   : > { %5002 = vmatprep.mubr.msk.f32.mxu0 %vm904_vm10, %v1882_v31 }
 0x6b3   : > { %5003 = vmatmul.mubr.msk.f32.gmra.mrb[14].mxu0 %vm904_vm10, %v1884_v23  ;;  %5042 = vmatmul.mubr.msk.f32.vlgmr.msra.gmra.mrb[16].mxu1 %vm904_vm10, %v1870_v28 }
 0x6b4   : > { %5027 = vmatprep.mubr.msk.f32.mxu0 %vm904_vm10, %v2080_v16  ;;  %v1860_v30 = vpop.permute.xlu0 %1859  ;;  %5278 = vmatpush3.bf16.msra.mxu1 %v5648_v19 }
 0x6b5   : > { %v1868_v40 = vadd.f32 %v1860_v30, %v1848_v49  ;;  %v1858_v5 = vpop.permute.xlu1 %1857  ;;  %5280 = vmatprep.subr.bf16.mxu1 %v5666_v25 }
 0x6b6   : > { %v1867_v41 = vadd.f32 %v1858_v5, %v1847_v26 }
 0x6b7   : > { %5028 = vmatmul.mubr.msk.f32.vlgmr.msra.gmra.mrb[16].mxu0 %vm904_vm10, %v2082_v38  ;;  %v1872_v11 = vadd.f32 %v6056_v45, %v1868_v40 }
 0x6b8   : > { %v1871_v43 = vadd.f32 %v6056_v45, %v1867_v41  ;;  %5270 = vmatpush3.bf16.msra.mxu0 %v5648_v19  ;;  %5282 = vmatpush3.bf16.msra.mxu1 %v5666_v25  ;;  %v2086_v62 = vpop.permute.xlu0 %2085  ;;  %v6298_v41 = vld [vmem:[#allocation2] ss:$0 sm:$0xff] }
 0x6b9   : > { %v2084_v33 = vpop.permute.xlu1 %2083  ;;  %5272 = vmatprep.subr.bf16.mxu0 %v5666_v25  ;;  %5292 = vmatprep.subr.bf16.mxu1 %v5953_v48 }
 0x6ba   : > { %5030 = vmatprep.mubr.msk.f32.mxu0 %vm904_vm10, %v2084_v33  ;;  %5044 = vmatprep.mubr.msk.f32.mxu1 %vm904_vm10, %v1871_v43 }
 0x6bb   : > { %5031 = vmatmul.mubr.msk.f32.gmra.mrb[18].mxu0 %vm904_vm10, %v2086_v62  ;;  %5045 = vmatmul.mubr.msk.f32.gmra.mrb[18].mxu1 %vm904_vm10, %v1872_v11 }
 0x6bc   : > { %5274 = vmatpush3.bf16.msra.mxu0 %v5666_v25 }
 0x6bd   : > { %5284 = vmatprep.subr.bf16.mxu0 %v5891_v27 }
 0x776   : > { %v6198_v19 = vpop.f32.mrb[12].mxu0  ;;  %v6200_v45 = vpop.f32.mrb[12].mxu1 }
 0x777   : > { %v2424_v44 = vrot.slane %v6198_v19, 1  ;;  %2349 = vrot.lane.b32.xlu0 %v6200_v45, %s5532_s17  ;;  %v6205_v29 = vpop.f32.mrb[13].mxu1  ;;  %2303 = vrot.lane.b32.xlu1 %v6198_v19, %s5532_s17  ;;  %v6209_v46 = vpop.f32.mrb[13].mxu0 }
 0x778   : > { %v2423_v25 = vrot.slane %v6209_v46, 1 }
 0x77a   : > { %v2425_v36 = vsel %vm6964_vm1, %v2423_v25, %v2424_v44 }
 0x77b   : > { %2323 = vrot.lane.b32.xlu0 %v6200_v45, %s5533_s19  ;;  %2301 = vrot.lane.b32.xlu1 %v6209_v46, %s5532_s17  ;;  %v2435_v12 = vsel %vm5752_vm2, 0.0, %v2425_v36 }
 0x77f   : > { %2347 = vrot.lane.b32.xlu0 %v6205_v29, %s5532_s17  ;;  %2321 = vrot.lane.b32.xlu1 %v6205_v29, %s5533_s19 }
 0x782   : > { %v6221_v42 = vpop.f32.mrb[14].mxu1 }
 0x783   : > { %v6223_v47 = vpop.f32.mrb[15].mxu1 }
 0x786   : > { %v6225_v6 = vpop.f32.mrb[14].mxu0  ;;  %v5043_v50 = vpop.f32.mrb[16].mxu1 }
 0x787   : > { %v2428_v52 = vrot.slane %v6225_v6, 1  ;;  %v2282_v53 = vrot.slane %v5043_v50, 7  ;;  %v2258_v54 = vpop.f32.mrb[17].mxu1  ;;  %2307 = vrot.lane.b32.xlu0 %v6225_v6, %s5532_s17  ;;  %v6230_v1 = vpop.f32.mrb[15].mxu0 }
 0x788   : > { %v2281_v55 = vrot.slane %v2258_v54, 7  ;;  %v2426_v56 = vrot.slane %v6230_v1, 1  ;;  %2305 = vrot.lane.b32.xlu1 %v6230_v1, %s5532_s17 }
 0x789   : > { %v2434_v23 = vsel %vm6964_vm1, %v2428_v52, 0.0 }
 0x78a   : > { %v6235_v57 = vpop.f32.mrb[16].mxu0  ;;  %v2427_v51 = vsel %vm6964_vm1, %v2424_v44, %v2426_v56  ;;  %v2429_v60 = vsel %vm6964_vm1, %v2426_v56, %v2428_v52  ;;  %v2283_v58 = vsel %vm6963_vm0, %v2281_v55, %v2282_v53  ;;  %v2438_v28 = vsel %vm5789_vm5, 0.0, %v2434_v23 }
 0x78b   : > { %2327 = vrot.lane.b32.xlu0 %v6221_v42, %s5533_s19  ;;  %v6242_v32 = vpop.f32.mrb[17].mxu0  ;;  %v2436_v17 = vsel %vm5766_vm3, 0.0, %v2427_v51  ;;  %v2437_v31 = vsel %vm5779_vm4, 0.0, %v2429_v60  ;;  %v2294_v30 = vsel %vm5804_vm7, 0.0, %v2283_v58  ;;  %v2292_v26 = vsel %vm6963_vm0, 0.0, %v2281_v55 }
 0x78c   : > { %2459 = vrot.lane.b32.xlu1 %v2435_v12, %s5533_s19  ;;  %v2293_v33 = vsel %vm5797_vm6, 0.0, %v2292_v26 }
 0x78e   : > { %v6247_v59 = vpop.f32.mrb[18].mxu0  ;;  %v5046_v63 = vpop.f32.mrb[18].mxu1 }
 0x78f   : > { %v2286_v37 = vrot.slane %v5046_v63, 7  ;;  %2351 = vrot.lane.b32.xlu0 %v6223_v47, %s5532_s17  ;;  %v6251_v13 = vpop.f32.mrb[19].mxu0  ;;  %v2268_v38 = vpop.f32.mrb[19].mxu1 }
 0x790   : > { %v2284_v18 = vrot.slane %v2268_v38, 7  ;;  %2353 = vrot.lane.b32.xlu1 %v6221_v42, %s5532_s17 }
 0x792   : > { %v2287_v0 = vsel %vm6963_vm0, %v2284_v18, %v2286_v37  ;;  %v6257_v16 = vsel %vm6963_vm0, %v2282_v53, %v2284_v18 }
 0x793   : > { %2325 = vrot.lane.b32.xlu0 %v6223_v47, %s5533_s19  ;;  %v2296_v58 = vsel %vm5830_vm14, 0.0, %v2287_v0 }
 0x794   : > { %2369 = vrot.lane.b32.xlu1 %v6235_v57, %s5533_s19 }
 0x797   : > { %2389 = vrot.lane.b32.xlu0 %v6235_v57, %s5532_s17 }
 0x798   : > { %2387 = vrot.lane.b32.xlu1 %v6242_v32, %s5532_s17 }
 0x79b   : > { %2367 = vrot.lane.b32.xlu0 %v6242_v32, %s5533_s19 }
 0x79c   : > { %2461 = vrot.lane.b32.xlu1 %v2436_v17, %s5533_s19 }
 0x79f   : > { %2405 = vrot.lane.b32.xlu0 %v5043_v50, %s5533_s19 }
 0x7a0   : > { %2441 = vrot.lane.b32.xlu1 %v5043_v50, %s5532_s17 }
 0x7a3   : > { %2393 = vrot.lane.b32.xlu0 %v6247_v59, %s5532_s17 }
 0x7a4   : > { %2403 = vrot.lane.b32.xlu1 %v2258_v54, %s5533_s19 }
 0x7a7   : > { %2391 = vrot.lane.b32.xlu0 %v6251_v13, %s5532_s17 }
 0x7a8   : > { %2439 = vrot.lane.b32.xlu1 %v2258_v54, %s5532_s17 }
 0x7ab   : > { %2409 = vrot.lane.b32.xlu0 %v5046_v63, %s5533_s19 }
 0x7ac   : > { %2373 = vrot.lane.b32.xlu1 %v6247_v59, %s5533_s19 }
 0x7af   : > { %2445 = vrot.lane.b32.xlu0 %v5046_v63, %s5532_s17 }
 0x7b0   : > { %2371 = vrot.lane.b32.xlu1 %v6251_v13, %s5533_s19 }
 0x7b3   : > { %2407 = vrot.lane.b32.xlu0 %v2268_v38, %s5533_s19 }
 0x7b4   : > { %2443 = vrot.lane.b32.xlu1 %v2268_v38, %s5532_s17 }
 0x7b7   : > { %2465 = vrot.lane.b32.xlu0 %v2438_v28, %s5533_s19 }
 0x7b8   : > { %2463 = vrot.lane.b32.xlu1 %v2437_v31, %s5533_s19 }
 0x7e9   : > { %v2304_v35 = vpop.permute.xlu1 %2303  ;;  %v2350_v49 = vpop.permute.xlu0 %2349 }
 0x7ea   : > { %v2314_v40 = vadd.f32 %v2304_v35, %v2294_v30  ;;  %v2295_v30 = vsel %vm5821_vm13, 0.0, %v6257_v16 }
 0x7ed   : > { %v2302_v5 = vpop.permute.xlu1 %2301  ;;  %v2324_v43 = vpop.permute.xlu0 %2323 }
 0x7ee   : > { %v2334_v11 = vadd.f32 %v2324_v43, %v2314_v40  ;;  %v2313_v62 = vadd.f32 %v2302_v5, %v2293_v33  ;;  %v2360_v5 = vadd.f32 %v6198_v19, %v2350_v49 }
 0x7f0   : > { %v2344_v44 = vadd.f32 %v6298_v41, %v2334_v11 }
 0x7f1   : > { %v2322_v25 = vpop.permute.xlu1 %2321  ;;  %v2348_v54 = vpop.permute.xlu0 %2347 }
 0x7f2   : > { %v2480_v36 = vsub.f32 0.0, %v2344_v44  ;;  %v2333_v50 = vadd.f32 %v2322_v25, %v2313_v62 }
 0x7f4   : > { %v2485_v52 = vmul.f32 1.442695, %v2480_v36  ;;  %v2343_v53 = vadd.f32 %v6298_v41, %v2333_v50 }
 0x7f6   : > { %5382 = vpow2.f32 %v2485_v52  ;;  %v2479_v55 = vsub.f32 0.0, %v2343_v53 }
 0x7f8   : > { %v2483_v56 = vmul.f32 1.442695, %v2479_v55  ;;  %v2359_v55 = vadd.f32 %v2348_v54, %v6209_v46 }
 0x7f9   : > { %v2308_v51 = vpop.permute.xlu0 %2307 }
 0x7fa   : > { %5384 = vpow2.f32 %v2483_v56  ;;  %v2306_v60 = vpop.permute.xlu1 %2305  ;;  %v2316_v12 = vadd.f32 %v2308_v51, %v2296_v58 }
 0x7fb   : > { %v2315_v40 = vadd.f32 %v2306_v60, %v2295_v30 }
 0x7fd   : > { %v2328_v63 = vpop.permute.xlu0 %2327 }
 0x7fe   : > { %v2336_v37 = vadd.f32 %v2328_v63, %v2316_v12  ;;  %v6306_v38 = vpop.permute.xlu1 %2459 }
 0x800   : > { %v5383_v18 = vpop.eup %5382  ;;  %v2346_v17 = vadd.f32 %v6298_v41, %v2336_v37 }
 0x801   : > { %v2492_v23 = vadd.f32 1.0, %v5383_v18  ;;  %v6309_v28 = vpop.permute.xlu0 %2351 }
 0x802   : > { %v2482_v31 = vsub.f32 0.0, %v2346_v17  ;;  %v6311_v35 = vpop.permute.xlu1 %2353 }
 0x803   : > { %5386 = vrcp.f32 %v2492_v23 }
 0x804   : > { %v5385_v0 = vpop.eup %5384  ;;  %v2489_v26 = vmul.f32 1.442695, %v2482_v31 }
 0x805   : > { %v2491_v43 = vadd.f32 1.0, %v5385_v0  ;;  %v2326_v11 = vpop.permute.xlu0 %2325 }
 0x806   : > { %5388 = vpow2.f32 %v2489_v26  ;;  %v2335_v33 = vadd.f32 %v2326_v11, %v2315_v40  ;;  %v2370_v62 = vpop.permute.xlu1 %2369 }
 0x807   : > { %5390 = vrcp.f32 %v2491_v43  ;;  %v2380_v44 = vadd.f32 %v2370_v62, %v2360_v5 }
 0x808   : > { %v2345_v25 = vadd.f32 %v6298_v41, %v2335_v33 }
 0x809   : > { %v2384_v36 = vadd.f32 %v6298_v41, %v2380_v44  ;;  %v2390_v50 = vpop.permute.xlu0 %2389 }
 0x80a   : > { %v2481_v52 = vsub.f32 0.0, %v2345_v25  ;;  %v2388_v53 = vpop.permute.xlu1 %2387  ;;  %v2400_v63 = vadd.f32 %v6200_v45, %v2390_v50 }
 0x80b   : > { %v2500_v16 = vsub.f32 0.0, %v2384_v36  ;;  %v2399_v26 = vadd.f32 %v2388_v53, %v6205_v29 }
 0x80c   : > { %v2487_v56 = vmul.f32 1.442695, %v2481_v52 }
 0x80d   : > { %v5387_v51 = vpop.eup %5386  ;;  %v2505_v19 = vmul.f32 1.442695, %v2500_v16  ;;  %v2368_v49 = vpop.permute.xlu0 %2367 }
 0x80e   : > { %5392 = vpow2.f32 %v2487_v56  ;;  %v2379_v60 = vadd.f32 %v2368_v49, %v2359_v55  ;;  %v2462_v58 = vpop.permute.xlu1 %2461  ;;  %2566 = vperm.xlu1 %5380, %v5387_v51  }
 0x80f   : > { %5394 = vpow2.f32 %v2505_v19 }
 0x810   : > { %v5389_v12 = vpop.eup %5388  ;;  %v2383_v37 = vadd.f32 %v6298_v41, %v2379_v60  ;;  %v2362_v60 = vadd.f32 %v6225_v6, %v6311_v35 }
 0x811   : > { %v5391_v18 = vpop.eup %5390  ;;  %v2494_v17 = vadd.f32 1.0, %v5389_v12  ;;  %v2406_v23 = vpop.permute.xlu0 %2405 }
 0x812   : > { %v2499_v31 = vsub.f32 0.0, %v2383_v37  ;;  %v2416_v30 = vadd.f32 %v2406_v23, %v2400_v63  ;;  %v2442_v46 = vpop.permute.xlu1 %2441  ;;  %2561 = vperm.xlu1 %5380, %v5391_v18  }
 0x813   : > { %5396 = vrcp.f32 %v2494_v17  ;;  %v2452_v54 = vadd.f32 %v6235_v57, %v2442_v46 }
 0x814   : > { %v2503_v0 = vmul.f32 1.442695, %v2499_v31  ;;  %v2420_v40 = vadd.f32 %v6298_v41, %v2416_v30 }
 0x815   : > { %v2472_v5 = vadd.f32 %v2462_v58, %v2452_v54  ;;  %v2394_v43 = vpop.permute.xlu0 %2393 }
 0x816   : > { %5398 = vpow2.f32 %v2503_v0  ;;  %v2520_v45 = vsub.f32 0.0, %v2420_v40  ;;  %v2404_v11 = vpop.permute.xlu1 %2403  ;;  %v2402_v19 = vadd.f32 %v6221_v42, %v2394_v43  ;;  %v2361_v42 = vadd.f32 %v6309_v28, %v6230_v1 }
 0x817   : > { %v2476_v33 = vadd.f32 %v6298_v41, %v2472_v5  ;;  %v2415_v62 = vadd.f32 %v2404_v11, %v2399_v26 }
 0x818   : > { %v5393_v44 = vpop.eup %5392  ;;  %v2525_v25 = vmul.f32 1.442695, %v2520_v45 }
 0x819   : > { %v5395_v36 = vpop.eup %5394  ;;  %v2493_v50 = vadd.f32 1.0, %v5393_v44  ;;  %v2540_v52 = vsub.f32 0.0, %v2476_v33  ;;  %v2419_v57 = vadd.f32 %v6298_v41, %v2415_v62  ;;  %v2392_v16 = vpop.permute.xlu0 %2391 }
 0x81a   : > { %v2512_v55 = vadd.f32 1.0, %v5395_v36  ;;  %5400 = vpow2.f32 %v2525_v25  ;;  %v2440_v56 = vpop.permute.xlu1 %2439  ;;  %v2401_v43 = vadd.f32 %v2392_v16, %v6223_v47 }
 0x81b   : > { %5402 = vrcp.f32 %v2493_v50  ;;  %v2545_v29 = vmul.f32 1.442695, %v2540_v52  ;;  %v2519_v53 = vsub.f32 0.0, %v2419_v57  ;;  %v2451_v51 = vadd.f32 %v2440_v56, %v6242_v32 }
 0x81c   : > { %5404 = vrcp.f32 %v2512_v55 }
 0x81d   : > { %v5397_v49 = vpop.eup %5396  ;;  %v2523_v58 = vmul.f32 1.442695, %v2519_v53  ;;  %v2471_v12 = vadd.f32 %v6306_v38, %v2451_v51  ;;  %v2410_v63 = vpop.permute.xlu0 %2409  ;;  %5406 = vpow2.f32 %v2545_v29 }
 0x81e   : > { %v2418_v37 = vadd.f32 %v2410_v63, %v2402_v19  ;;  %v2374_v18 = vpop.permute.xlu1 %2373  ;;  %2576 = vperm.xlu0 %5381, %v5397_v49  }
 0x81f   : > { %5408 = vpow2.f32 %v2523_v58  ;;  %v2475_v17 = vadd.f32 %v6298_v41, %v2471_v12  ;;  %v2382_v23 = vadd.f32 %v2374_v18, %v2362_v60 }
 0x820   : > { %v5399_v32 = vpop.eup %5398  ;;  %v2422_v31 = vadd.f32 %v6298_v41, %v2418_v37 }
 0x821   : > { %v2511_v30 = vadd.f32 1.0, %v5399_v32  ;;  %v2539_v6 = vsub.f32 0.0, %v2475_v17  ;;  %v2386_v35 = vadd.f32 %v6298_v41, %v2382_v23  ;;  %v2446_v38 = vpop.permute.xlu0 %2445 }
 0x822   : > { %v2522_v46 = vsub.f32 0.0, %v2422_v31  ;;  %v2372_v54 = vpop.permute.xlu1 %2371  ;;  %v2454_v57 = vadd.f32 %v6247_v59, %v2446_v38 }
 0x823   : > { %5410 = vrcp.f32 %v2511_v30  ;;  %v2543_v0 = vmul.f32 1.442695, %v2539_v6  ;;  %v2502_v40 = vsub.f32 0.0, %v2386_v35  ;;  %v2381_v26 = vadd.f32 %v2372_v54, %v2361_v42 }
 0x824   : > { %v5401_v5 = vpop.eup %5400  ;;  %v2529_v44 = vmul.f32 1.442695, %v2522_v46 }
 0x825   : > { %v5403_v45 = vpop.eup %5402  ;;  %v2532_v11 = vadd.f32 1.0, %v5401_v5  ;;  %5412 = vpow2.f32 %v2543_v0  ;;  %v2509_v33 = vmul.f32 1.442695, %v2502_v40  ;;  %v2385_v1 = vadd.f32 %v6298_v41, %v2381_v26  ;;  %v2408_v28 = vpop.permute.xlu0 %2407 }
 0x826   : > { %v5405_v62 = vpop.eup %5404  ;;  %v2417_v25 = vadd.f32 %v2408_v28, %v2401_v43  ;;  %v2444_v36 = vpop.permute.xlu1 %2443  ;;  %2571 = vperm.xlu0 %5381, %v5403_v45  }
 0x827   : > { %5414 = vrcp.f32 %v2532_v11  ;;  %v2501_v50 = vsub.f32 0.0, %v2385_v1  ;;  %2590 = vperm.xlu1 %5380, %v5405_v62   ;;  %v5407_v52 = vpop.eup %5406  ;;  %v2453_v56 = vadd.f32 %v2444_v36, %v6251_v13 }
 0x828   : > { %5416 = vpow2.f32 %v2509_v33  ;;  %v2421_v47 = vadd.f32 %v6298_v41, %v2417_v25  ;;  %v2552_v60 = vadd.f32 1.0, %v5407_v52  ;;  %v6347_v52 = vld [vmem:[%s6950_s1] ss:$0 sm:$0xff] }
 0x829   : > { %v5409_v16 = vpop.eup %5408  ;;  %v2507_v55 = vmul.f32 1.442695, %v2501_v50  ;;  %v2466_v29 = vpop.permute.xlu0 %2465  ;;  %5418 = vpow2.f32 %v2529_v44 }
 0x82a   : > { %v2531_v53 = vadd.f32 1.0, %v5409_v16  ;;  %v2521_v51 = vsub.f32 0.0, %v2421_v47  ;;  %v2474_v19 = vadd.f32 %v2466_v29, %v2454_v57  ;;  %v2464_v49 = vpop.permute.xlu1 %2463 }
 0x82b   : > { %5420 = vpow2.f32 %v2507_v55  ;;  %v2473_v58 = vadd.f32 %v2464_v49, %v2453_v56 }
 0x82c   : > { %5422 = vrcp.f32 %v2531_v53  ;;  %v2527_v12 = vmul.f32 1.442695, %v2521_v51  ;;  %v2478_v63 = vadd.f32 %v6298_v41, %v2474_v19 }
 0x82d   : > { %v5411_v59 = vpop.eup %5410  ;;  %v2477_v37 = vadd.f32 %v6298_v41, %v2473_v58  ;;  %5424 = vrcp.f32 %v2552_v60 }
 0x82e   : > { %v2542_v18 = vsub.f32 0.0, %v2478_v63  ;;  %2585 = vperm.xlu0 %5381, %v5411_v59   ;;  %5426 = vpow2.f32 %v2527_v12 }
 0x82f   : > { %v5413_v17 = vpop.eup %5412  ;;  %v2541_v13 = vsub.f32 0.0, %v2477_v37 }
 0x830   : > { %v2551_v23 = vadd.f32 1.0, %v5413_v17  ;;  %v2549_v32 = vmul.f32 1.442695, %v2542_v18 }
 0x831   : > { %v5415_v31 = vpop.eup %5414  ;;  %v2547_v30 = vmul.f32 1.442695, %v2541_v13 }
 0x832   : > { %v5417_v42 = vpop.eup %5416  ;;  %2614 = vperm.xlu1 %5380, %v5415_v31   ;;  %5428 = vrcp.f32 %v2551_v23 }
 0x833   : > { %v2514_v6 = vadd.f32 1.0, %v5417_v42  ;;  %v5419_v35 = vpop.eup %5418  ;;  %5430 = vpow2.f32 %v2549_v32 }
 0x834   : > { %v2534_v0 = vadd.f32 1.0, %v5419_v35 }
 0x835   : > { %v5421_v38 = vpop.eup %5420  ;;  %5432 = vrcp.f32 %v2514_v6 }
 0x836   : > { %v5423_v46 = vpop.eup %5422  ;;  %v2513_v41 = vadd.f32 1.0, %v5421_v38  ;;  %5434 = vpow2.f32 %v2547_v30 }
 0x837   : > { %2609 = vperm.xlu0 %5381, %v5423_v46   ;;  %v5425_v54 = vpop.eup %5424 }
 0x838   : > { %5436 = vrcp.f32 %v2513_v41  ;;  %v5427_v40 = vpop.eup %5426 }
 0x839   : > { %5438 = vrcp.f32 %v2534_v0  ;;  %v2533_v5 = vadd.f32 1.0, %v5427_v40 }
 0x83b   : > { %2638 = vperm.xlu0 %5381, %v5425_v54   ;;  %5440 = vrcp.f32 %v2533_v5 }
 0x83c   : > { %v5429_v26 = vpop.eup %5428 }
 0x83d   : > { %v5431_v43 = vpop.eup %5430 }
 0x83e   : > { %v2554_v33 = vadd.f32 1.0, %v5431_v43 }
 0x83f   : > { %v5433_v45 = vpop.eup %5432  ;;  %2633 = vperm.xlu0 %5381, %v5429_v26  }
 0x840   : > { %v5435_v11 = vpop.eup %5434  ;;  %2600 = vperm.xlu1 %5380, %v5433_v45  }
 0x841   : > { %v2553_v1 = vadd.f32 1.0, %v5435_v11 }
 0x842   : > { %v5437_v28 = vpop.eup %5436 }
 0x843   : > { %5442 = vrcp.f32 %v2553_v1  ;;  %v5439_v62 = vpop.eup %5438 }
 0x844   : > { %2595 = vperm.xlu1 %5380, %v5437_v28   ;;  %5444 = vrcp.f32 %v2554_v33 }
 0x845   : > { %v5441_v44 = vpop.eup %5440 }
 0x848   : > { %2624 = vperm.xlu1 %5380, %v5439_v62  }
 0x84c   : > { %2619 = vperm.xlu1 %5380, %v5441_v44  }
 0x84d   : > { %v5443_v25 = vpop.eup %5442 }
 0x84e   : > { %2643 = vperm.xlu0 %5381, %v5443_v25   ;;  %v5445_v36 = vpop.eup %5444 }
 0x850   : > { %2648 = vperm.xlu1 %5380, %v5445_v36  }
 0x88d   : > { %v2567_v50 = vpop.permute.xlu1 %2566 }
 0x88e   : > { %v6350_v57 = vmul.f32 %v6347_v52, %v2567_v50 }
 0x890   : > { %2681 = vrot.lane.b32.xlu0 %v6350_v57, %s5529_s18  ;;  %v2796_v55 = vrot.slane %v6350_v57, 1 }
 0x891   : > { %v2562_v47 = vpop.permute.xlu1 %2561 }
 0x892   : > { %v6355_v16 = vmul.f32 %v6347_v52, %v2562_v47 }
 0x894   : > { %v2795_v56 = vrot.slane %v6355_v16, 1  ;;  %2679 = vrot.lane.b32.xlu0 %v6355_v16, %s5529_s18 }
 0x896   : > { %v2797_v29 = vsel %vm6964_vm1, %v2795_v56, %v2796_v55 }
 0x897   : > { %v2807_v53 = vsel %vm5752_vm2, 0.0, %v2797_v29 }
 0x898   : > { %2831 = vrot.lane.b32.xlu1 %v2807_v53, %s5530_s28 }
 0x89d   : > { %v2577_v51 = vpop.permute.xlu0 %2576 }
 0x89e   : > { %v6366_v19 = vmul.f32 %v6347_v52, %v2577_v51 }
 0x8a0   : > { %2685 = vrot.lane.b32.xlu0 %v6366_v19, %s5529_s18  ;;  %v2800_v42 = vrot.slane %v6366_v19, 1 }
 0x8a5   : > { %v2572_v49 = vpop.permute.xlu0 %2571 }
 0x8a6   : > { %v6371_v60 = vmul.f32 %v6347_v52, %v2572_v49  ;;  %v2591_v58 = vpop.permute.xlu1 %2590 }
 0x8a7   : > { %v6374_v12 = vmul.f32 %v6347_v52, %v2591_v58 }
 0x8a8   : > { %2683 = vrot.lane.b32.xlu0 %v6371_v60, %s5529_s18  ;;  %v2798_v17 = vrot.slane %v6371_v60, 1 }
 0x8a9   : > { %2721 = vrot.lane.b32.xlu1 %v6374_v12, %s5529_s18 }
 0x8aa   : > { %v2799_v32 = vsel %vm6964_vm1, %v2796_v55, %v2798_v17  ;;  %v2801_v35 = vsel %vm6964_vm1, %v2798_v17, %v2800_v42 }
 0x8ab   : > { %v2808_v30 = vsel %vm5766_vm3, 0.0, %v2799_v32  ;;  %v2809_v0 = vsel %vm5779_vm4, 0.0, %v2801_v35 }
 0x8ac   : > { %2701 = vrot.lane.b32.xlu0 %v6374_v12, %s5530_s28 }
 0x8ad   : > { %v2586_v63 = vpop.permute.xlu0 %2585 }
 0x8ae   : > { %v6383_v59 = vmul.f32 %v6347_v52, %v2586_v63 }
 0x8b0   : > { %2699 = vrot.lane.b32.xlu0 %v6383_v59, %s5530_s28  ;;  %2719 = vrot.lane.b32.xlu1 %v6383_v59, %s5529_s18 }
 0x8b1   : > { %v2615_v37 = vpop.permute.xlu1 %2614 }
 0x8b2   : > { %v6390_v18 = vmul.f32 %v6347_v52, %v2615_v37 }
 0x8b4   : > { %2761 = vrot.lane.b32.xlu0 %v6390_v18, %s5529_s18  ;;  %2741 = vrot.lane.b32.xlu1 %v6390_v18, %s5530_s28 }
 0x8b6   : > { %v2610_v13 = vpop.permute.xlu0 %2609 }
 0x8b7   : > { %v6398_v23 = vmul.f32 %v6347_v52, %v2610_v13 }
 0x8b9   : > { %2759 = vrot.lane.b32.xlu0 %v6398_v23, %s5529_s18  ;;  %2739 = vrot.lane.b32.xlu1 %v6398_v23, %s5530_s28 }
 0x8ba   : > { %v2639_v31 = vpop.permute.xlu0 %2638 }
 0x8bb   : > { %v2652_v6 = vmul.f32 %v6347_v52, %v2639_v31 }
 0x8bd   : > { %2833 = vrot.lane.b32.xlu1 %v2808_v30, %s5530_s28  ;;  %v2660_v40 = vrot.slane %v2652_v6, 7 }
 0x8be   : > { %v2634_v38 = vpop.permute.xlu0 %2633 }
 0x8bf   : > { %v2601_v46 = vpop.permute.xlu1 %2600  ;;  %v2651_v41 = vmul.f32 %v6347_v52, %v2634_v38 }
 0x8c0   : > { %v6413_v54 = vmul.f32 %v6347_v52, %v2601_v46 }
 0x8c1   : > { %v2659_v26 = vrot.slane %v2651_v41, 7  ;;  %2835 = vrot.lane.b32.xlu1 %v2809_v0, %s5530_s28 }
 0x8c2   : > { %2705 = vrot.lane.b32.xlu0 %v6413_v54, %s5530_s28 }
 0x8c3   : > { %v2596_v5 = vpop.permute.xlu1 %2595  ;;  %v2661_v43 = vsel %vm6963_vm0, %v2659_v26, %v2660_v40  ;;  %v2670_v13 = vsel %vm6963_vm0, 0.0, %v2659_v26  ;;  %v6477_v26 = vld [vmem:[%s6951_s2] ss:$0 sm:$0xff] }
 0x8c4   : > { %v6425_v11 = vmul.f32 %v6347_v52, %v2596_v5  ;;  %v2671_v31 = vsel %vm5797_vm6, 0.0, %v2670_v13  ;;  %v2672_v30 = vsel %vm5804_vm7, 0.0, %v2661_v43 }
 0x8c5   : > { %2725 = vrot.lane.b32.xlu1 %v6413_v54, %s5529_s18 }
 0x8c6   : > { %2777 = vrot.lane.b32.xlu0 %v2652_v6, %s5530_s28 }
 0x8c7   : > { %v2625_v45 = vpop.permute.xlu1 %2624 }
 0x8c8   : > { %v6435_v44 = vmul.f32 %v6347_v52, %v2625_v45 }
 0x8c9   : > { %2813 = vrot.lane.b32.xlu1 %v2652_v6, %s5529_s18 }
 0x8ca   : > { %2703 = vrot.lane.b32.xlu0 %v6425_v11, %s5530_s28 }
 0x8cb   : > { %v2620_v33 = vpop.permute.xlu1 %2619 }
 0x8cc   : > { %v6445_v55 = vmul.f32 %v6347_v52, %v2620_v33 }
 0x8cd   : > { %v2644_v1 = vpop.permute.xlu0 %2643  ;;  %2723 = vrot.lane.b32.xlu1 %v6425_v11, %s5529_s18 }
 0x8ce   : > { %v2653_v28 = vmul.f32 %v6347_v52, %v2644_v1  ;;  %2775 = vrot.lane.b32.xlu0 %v2651_v41, %s5530_s28 }
 0x8cf   : > { %v2649_v62 = vpop.permute.xlu1 %2648 }
 0x8d0   : > { %v2662_v25 = vrot.slane %v2653_v28, 7  ;;  %v2654_v36 = vmul.f32 %v6347_v52, %v2649_v62  ;;  %v2806_v52 = vsel %vm6964_vm1, %v2800_v42, 0.0 }
 0x8d1   : > { %2811 = vrot.lane.b32.xlu1 %v2651_v41, %s5529_s18  ;;  %v2810_v29 = vsel %vm5789_vm5, 0.0, %v2806_v52 }
 0x8d2   : > { %v2664_v50 = vrot.slane %v2654_v36, 7  ;;  %2765 = vrot.lane.b32.xlu0 %v6435_v44, %s5529_s18  ;;  %v6442_v47 = vsel %vm6963_vm0, %v2660_v40, %v2662_v25 }
 0x8d4   : > { %v6448_v56 = vsel %vm6963_vm0, %v2662_v25, %v2664_v50 }
 0x8d5   : > { %2745 = vrot.lane.b32.xlu1 %v6435_v44, %s5530_s28 }
 0x8d6   : > { %2763 = vrot.lane.b32.xlu0 %v6445_v55, %s5529_s18 }
 0x8d9   : > { %2743 = vrot.lane.b32.xlu1 %v6445_v55, %s5530_s28 }
 0x8da   : > { %2779 = vrot.lane.b32.xlu0 %v2653_v28, %s5530_s28 }
 0x8dd   : > { %2817 = vrot.lane.b32.xlu1 %v2654_v36, %s5529_s18 }
 0x8de   : > { %2781 = vrot.lane.b32.xlu0 %v2654_v36, %s5530_s28 }
 0x8e1   : > { %2815 = vrot.lane.b32.xlu1 %v2653_v28, %s5529_s18 }
 0x8e5   : > { %2837 = vrot.lane.b32.xlu1 %v2810_v29, %s5530_s28 }
 0x902   : > { %v2682_v53 = vpop.permute.xlu0 %2681 }
 0x903   : > { %v2692_v35 = vadd.f32 %v2682_v53, %v2672_v30 }
 0x906   : > { %v2680_v51 = vpop.permute.xlu0 %2679 }
 0x907   : > { %v2691_v6 = vadd.f32 %v2680_v51, %v2671_v31 }
 0x90a   : > { %v6466_v58 = vpop.permute.xlu1 %2831 }
 0x912   : > { %v6464_v49 = vpop.permute.xlu0 %2685 }
 0x91a   : > { %v2684_v63 = vpop.permute.xlu0 %2683 }
 0x91b   : > { %v2722_v37 = vpop.permute.xlu1 %2721 }
 0x91c   : > { %v2732_v38 = vadd.f32 %v2722_v37, %v6350_v57 }
 0x91e   : > { %v2702_v17 = vpop.permute.xlu0 %2701 }
 0x91f   : > { %v2712_v0 = vadd.f32 %v2702_v17, %v2692_v35 }
 0x921   : > { %v2716_v1 = vadd.f32 %v6477_v26, %v2712_v0 }
 0x922   : > { %v2720_v32 = vpop.permute.xlu1 %2719  ;;  %v2700_v42 = vpop.permute.xlu0 %2699 }
 0x923   : > { %v2711_v46 = vadd.f32 %v2700_v42, %v2691_v6  ;;  %v2731_v45 = vadd.f32 %v2720_v32, %v6355_v16  ;;  %v2856_v50 = vmul.f32 0.1, %v2716_v1  ;;  %vm2852_vm8 = vcmp.ge.f32.partialorder %v2716_v1, 0.0 }
 0x925   : > { %v2715_v33 = vadd.f32 %v6477_v26, %v2711_v46  ;;  %v2860_v17 = vsel %vm2852_vm8, %v2716_v1, %v2856_v50  ;;  %v2673_v1 = vsel %vm5821_vm13, 0.0, %v6442_v47 }
 0x926   : > { %v2742_v41 = vpop.permute.xlu1 %2741  ;;  %v2762_v43 = vpop.permute.xlu0 %2761 }
 0x927   : > { %v2752_v40 = vadd.f32 %v2742_v41, %v2732_v38  ;;  %v2855_v25 = vmul.f32 0.1, %v2715_v33  ;;  %vm2851_vm15 = vcmp.ge.f32.partialorder %v2715_v33, 0.0  ;;  %v2772_v41 = vadd.f32 %v2762_v43, %v6374_v12 }
 0x929   : > { %v2756_v5 = vadd.f32 %v6477_v26, %v2752_v40  ;;  %v2859_v51 = vsel %vm2851_vm15, %v2715_v33, %v2855_v25 }
 0x92b   : > { %v2740_v28 = vpop.permute.xlu1 %2739  ;;  %v2868_v62 = vmul.f32 0.1, %v2756_v5  ;;  %vm2864_vm12 = vcmp.ge.f32.partialorder %v2756_v5, 0.0  ;;  %v2760_v53 = vpop.permute.xlu0 %2759 }
 0x92c   : > { %v2751_v57 = vadd.f32 %v2740_v28, %v2731_v45  ;;  %v2771_v0 = vadd.f32 %v2760_v53, %v6383_v59  ;;  %v2693_v28 = vadd.f32 %v2684_v63, %v2673_v1 }
 0x92d   : > { %v2872_v16 = vsel %vm2864_vm12, %v2756_v5, %v2868_v62 }
 0x92e   : > { %v2755_v36 = vadd.f32 %v6477_v26, %v2751_v57  ;;  %v2900_v31 = vmax.f32 %v2860_v17, %v2872_v16  ;;  %v2674_v57 = vsel %vm5830_vm14, 0.0, %v6448_v56 }
 0x92f   : > { %v2834_v52 = vpop.permute.xlu1 %2833  ;;  %v2694_v62 = vadd.f32 %v6464_v49, %v2674_v57 }
 0x930   : > { %vm2863_vm9 = vcmp.ge.f32.partialorder %v2755_v36, 0.0  ;;  %v2867_v29 = vmul.f32 0.1, %v2755_v36 }
 0x932   : > { %v2871_v37 = vsel %vm2863_vm9, %v2755_v36, %v2867_v29 }
 0x933   : > { %v6484_v13 = vpop.permute.xlu1 %2835  ;;  %v2899_v32 = vmax.f32 %v2859_v51, %v2871_v37 }
 0x934   : > { %v2706_v42 = vpop.permute.xlu0 %2705 }
 0x935   : > { %5055 = vmatprep.mubr.msk.f32.mxu0 %vm904_vm10, %v2899_v32  ;;  %v2714_v50 = vadd.f32 %v2706_v42, %v2694_v62 }
 0x936   : > { %5056 = vmatmul.mubr.msk.f32.vlgmr.msra.gmra.mrb[20].mxu0 %vm904_vm10, %v2900_v31 }
 0x937   : > { %v2726_v30 = vpop.permute.xlu1 %2725  ;;  %5286 = vmatpush3.bf16.msra.mxu0 %v5891_v27  ;;  %v2718_v17 = vadd.f32 %v6477_v26, %v2714_v50 }
 0x938   : > { %v2778_v6 = vpop.permute.xlu0 %2777  ;;  %5288 = vmatprep.subr.bf16.mxu0 %v5908_v39  ;;  %v2734_v47 = vadd.f32 %v2726_v30, %v6366_v19 }
 0x939   : > { %v2788_v33 = vadd.f32 %v2778_v6, %v2772_v41  ;;  %vm2854_vm0 = vcmp.ge.f32.partialorder %v2718_v17, 0.0 }
 0x93b   : > { %v2814_v35 = vpop.permute.xlu1 %2813  ;;  %5290 = vmatpush3.bf16.msra.mxu0 %v5908_v39  ;;  %v2792_v25 = vadd.f32 %v6477_v26, %v2788_v33 }
 0x93c   : > { %v2824_v38 = vadd.f32 %v2814_v35, %v6390_v18  ;;  %v2704_v46 = vpop.permute.xlu0 %2703  ;;  %5300 = vmatprep.subr.bf16.mxu0 %v6019_v14 }
 0x93d   : > { %v2713_v36 = vadd.f32 %v2704_v46, %v2693_v28  ;;  %vm2876_vm12 = vcmp.ge.f32.partialorder %v2792_v25, 0.0 }
 0x93e   : > { %v2844_v40 = vadd.f32 %v2834_v52, %v2824_v38 }
 0x93f   : > { %v2724_v5 = vpop.permute.xlu1 %2723  ;;  %v2717_v49 = vadd.f32 %v6477_v26, %v2713_v36 }
 0x940   : > { %v2776_v45 = vpop.permute.xlu0 %2775  ;;  %v2848_v39 = vadd.f32 %v6477_v26, %v2844_v40  ;;  %v2733_v37 = vadd.f32 %v2724_v5, %v6371_v60 }
 0x941   : > { %v2787_v27 = vadd.f32 %v2776_v45, %v2771_v0  ;;  %v2857_v46 = vmul.f32 0.1, %v2717_v49  ;;  %v2858_v45 = vmul.f32 0.1, %v2718_v17  ;;  %vm2853_vm1 = vcmp.ge.f32.partialorder %v2717_v49, 0.0 }
 0x942   : > { %v2892_v52 = vmul.f32 0.1, %v2848_v39  ;;  %vm2888_vm11 = vcmp.ge.f32.partialorder %v2848_v39, 0.0 }
 0x943   : > { %v2812_v18 = vpop.permute.xlu1 %2811  ;;  %v2791_v12 = vadd.f32 %v6477_v26, %v2787_v27 }
 0x944   : > { %v2823_v59 = vadd.f32 %v2812_v18, %v6398_v23  ;;  %v2766_v43 = vpop.permute.xlu0 %2765  ;;  %v2880_v23 = vmul.f32 0.1, %v2792_v25  ;;  %v2896_v32 = vsel %vm2888_vm11, %v2848_v39, %v2892_v52 }
 0x945   : > { %v2879_v53 = vmul.f32 0.1, %v2791_v12  ;;  %vm2875_vm15 = vcmp.ge.f32.partialorder %v2791_v12, 0.0  ;;  %v2774_v27 = vadd.f32 %v2766_v43, %v6413_v54 }
 0x946   : > { %v2843_v63 = vadd.f32 %v6466_v58, %v2823_v59  ;;  %v2884_v38 = vsel %vm2876_vm12, %v2792_v25, %v2880_v23  ;;  %v2862_v59 = vsel %vm2854_vm0, %v2718_v17, %v2858_v45 }
 0x947   : > { %v2746_v29 = vpop.permute.xlu1 %2745  ;;  %v2883_v42 = vsel %vm2875_vm15, %v2791_v12, %v2879_v53  ;;  %v2904_v40 = vmax.f32 %v2884_v38, %v2896_v32 }
 0x948   : > { %v2847_v56 = vadd.f32 %v6477_v26, %v2843_v63  ;;  %v2754_v16 = vadd.f32 %v2746_v29, %v2734_v47  ;;  %v2764_v51 = vpop.permute.xlu0 %2763 }
 0x949   : > { %v2773_v60 = vadd.f32 %v2764_v51, %v6425_v11  ;;  %v2861_v11 = vsel %vm2853_vm1, %v2717_v49, %v2857_v46 }
 0x94a   : > { %vm2887_vm8 = vcmp.ge.f32.partialorder %v2847_v56, 0.0  ;;  %v2891_v19 = vmul.f32 0.1, %v2847_v56  ;;  %v2758_v58 = vadd.f32 %v6477_v26, %v2754_v16 }
 0x94b   : > { %v2744_v31 = vpop.permute.xlu1 %2743 }
 0x94c   : > { %v2753_v30 = vadd.f32 %v2744_v31, %v2733_v37  ;;  %v2780_v6 = vpop.permute.xlu0 %2779  ;;  %v2895_v35 = vsel %vm2887_vm8, %v2847_v56, %v2891_v19  ;;  %v2870_v41 = vmul.f32 0.1, %v2758_v58  ;;  %vm2866_vm9 = vcmp.ge.f32.partialorder %v2758_v58, 0.0 }
 0x94d   : > { %v2903_v0 = vmax.f32 %v2883_v42, %v2895_v35  ;;  %v2789_v28 = vadd.f32 %v2780_v6, %v2773_v60  ;;  %vm6981_vm8 = vcmask 1046528  }
 0x94e   : > { %v2757_v5 = vadd.f32 %v6477_v26, %v2753_v30  ;;  %v2874_v18 = vsel %vm2866_vm9, %v2758_v58, %v2870_v41  ;;  %vm6982_vm9 = vcmask 1040384  }
 0x94f   : > { %v2818_v33 = vpop.permute.xlu1 %2817  ;;  %5069 = vmatprep.mubr.msk.f32.mxu1 %vm904_vm10, %v2903_v0  ;;  %v2793_v54 = vadd.f32 %v6477_v26, %v2789_v28  ;;  %v2902_v36 = vmax.f32 %v2862_v59, %v2874_v18 }
 0x950   : > { %vm2865_vm11 = vcmp.ge.f32.partialorder %v2757_v5, 0.0  ;;  %v2869_v1 = vmul.f32 0.1, %v2757_v5  ;;  %v2782_v39 = vpop.permute.xlu0 %2781  ;;  %5070 = vmatmul.mubr.msk.f32.vlgmr.msra.gmra.mrb[20].mxu1 %vm904_vm10, %v2904_v40 }
 0x951   : > { %5294 = vmatpush3.bf16.msra.mxu1 %v5953_v48  ;;  %v2790_v12 = vadd.f32 %v2782_v39, %v2774_v27  ;;  %v2826_v48 = vadd.f32 %v2818_v33, %v6435_v44  ;;  %v2881_v52 = vmul.f32 0.1, %v2793_v54  ;;  %vm2877_vm0 = vcmp.ge.f32.partialorder %v2793_v54, 0.0 }
 0x952   : > { %v2873_v57 = vsel %vm2865_vm11, %v2757_v5, %v2869_v1  ;;  %5296 = vmatprep.subr.bf16.mxu1 %v5965_v7  ;;  %vm6983_vm11 = vmmov %vm6981_vm8 }
 0x953   : > { %v2816_v62 = vpop.permute.xlu1 %2815  ;;  %v2901_v25 = vmax.f32 %v2861_v11, %v2873_v57  ;;  %v2794_v47 = vadd.f32 %v6477_v26, %v2790_v12  ;;  %v2885_v44 = vsel %vm2877_vm0, %v2793_v54, %v2881_v52  ;;  %vm6984_vm0 = vmmov %vm6981_vm8 }
 0x954   : > { %v2825_v43 = vadd.f32 %v2816_v62, %v6445_v55 }
 0x955   : > { %5058 = vmatprep.mubr.msk.f32.mxu0 %vm904_vm10, %v2901_v25  ;;  %5298 = vmatpush3.bf16.msra.mxu1 %v5965_v7  ;;  %v2882_v53 = vmul.f32 0.1, %v2794_v47  ;;  %vm2878_vm12 = vcmp.ge.f32.partialorder %v2794_v47, 0.0 }
 0x956   : > { %v2845_v63 = vadd.f32 %v6484_v13, %v2825_v43  ;;  %5059 = vmatmul.mubr.msk.f32.gmra.mrb[22].mxu0 %vm904_vm10, %v2902_v36  ;;  %5308 = vmatprep.subr.bf16.mxu1 %v6019_v14 }
 0x957   : > { %v2838_v50 = vpop.permute.xlu1 %2837  ;;  %v2886_v23 = vsel %vm2878_vm12, %v2794_v47, %v2882_v53  ;;  %v5512_v53 = vld [vmem:[%s6953_s4] ss:$0 sm:$0xff] }
 0x958   : > { %v2849_v29 = vadd.f32 %v6477_v26, %v2845_v63  ;;  %v2846_v55 = vadd.f32 %v2838_v50, %v2826_v48 }
 0x95a   : > { %vm2889_vm1 = vcmp.ge.f32.partialorder %v2849_v29, 0.0  ;;  %v2893_v56 = vmul.f32 0.1, %v2849_v29  ;;  %v2850_v7 = vadd.f32 %v6477_v26, %v2846_v55 }
 0x95c   : > { %vm2890_vm15 = vcmp.ge.f32.partialorder %v2850_v7, 0.0  ;;  %v2894_v16 = vmul.f32 0.1, %v2850_v7  ;;  %v2897_v13 = vsel %vm2889_vm1, %v2849_v29, %v2893_v56  ;;  %vm6985_vm1 = vmmov %vm6982_vm9 }
 0x95d   : > { %v2905_v51 = vmax.f32 %v2885_v44, %v2897_v13  ;;  %vm6986_vm12 = vmmov %vm6985_vm1 }
 0x95e   : > { %v2898_v49 = vsel %vm2890_vm15, %v2850_v7, %v2894_v16  ;;  %vm6987_vm15 = vmmov %vm6984_vm0 }
 0x95f   : > { %5072 = vmatprep.mubr.msk.f32.mxu1 %vm904_vm10, %v2905_v51  ;;  %v2906_v37 = vmax.f32 %v2886_v23, %v2898_v49 }
 0x961   : > { %5073 = vmatmul.mubr.msk.f32.gmra.mrb[22].mxu1 %vm904_vm10, %v2906_v37 }
 0xa09   : > { %v6534_v19 = vpop.f32.mrb[20].mxu0 }
 0xa0a   : > { %v3162_v58 = vrot.slane %v6534_v19, 1  ;;  %3127 = vrot.lane.b32.xlu0 %v6534_v19, %s5529_s18  ;;  %v2985_v26 = vpop.f32.mrb[21].mxu0 }
 0xa0b   : > { %v3161_v17 = vrot.slane %v2985_v26, 1 }
 0xa0d   : > { %v3163_v32 = vsel %vm6981_vm8, %v3161_v17, %v3162_v58  ;;  %vm6988_vm8 = vmmov %vm6985_vm1 }
 0xa0e   : > { %3125 = vrot.lane.b32.xlu0 %v2985_v26, %s5529_s18  ;;  %v3173_v40 = vsel %vm5752_vm2, 0.0, %v3163_v32 }
 0xa23   : > { %v5071_v31 = vpop.f32.mrb[20].mxu1 }
 0xa24   : > { %v3106_v42 = vrot.slane %v5071_v31, 7  ;;  %3143 = vrot.lane.b32.xlu0 %v5071_v31, %s5530_s28  ;;  %3179 = vrot.lane.b32.xlu1 %v5071_v31, %s5529_s18  ;;  %v3082_v30 = vpop.f32.mrb[21].mxu1 }
 0xa25   : > { %v3105_v6 = vrot.slane %v3082_v30, 7 }
 0xa27   : > { %v3107_v35 = vsel %vm6982_vm9, %v3105_v6, %v3106_v42  ;;  %v3116_v36 = vsel %vm6988_vm8, 0.0, %v3105_v6 }
 0xa28   : > { %3177 = vrot.lane.b32.xlu1 %v3082_v30, %s5529_s18  ;;  %v3117_v63 = vsel %vm5797_vm6, 0.0, %v3116_v36  ;;  %v3118_v44 = vsel %vm5804_vm7, 0.0, %v3107_v35 }
 0xa29   : > { %v6545_v38 = vpop.f32.mrb[22].mxu0 }
 0xa2a   : > { %v3166_v46 = vrot.slane %v6545_v38, 1  ;;  %v6548_v41 = vpop.f32.mrb[23].mxu0  ;;  %3131 = vrot.lane.b32.xlu0 %v6545_v38, %s5529_s18 }
 0xa2b   : > { %v3164_v0 = vrot.slane %v6548_v41, 1 }
 0xa2c   : > { %3197 = vrot.lane.b32.xlu1 %v3173_v40, %s5530_s28  ;;  %v3172_v57 = vsel %vm6987_vm15, %v3166_v46, 0.0 }
 0xa2d   : > { %v3165_v60 = vsel %vm6983_vm11, %v3162_v58, %v3164_v0  ;;  %v3167_v5 = vsel %vm6984_vm0, %v3164_v0, %v3166_v46  ;;  %v3176_v12 = vsel %vm5789_vm5, 0.0, %v3172_v57 }
 0xa2e   : > { %3141 = vrot.lane.b32.xlu0 %v3082_v30, %s5530_s28  ;;  %v3174_v28 = vsel %vm5766_vm3, 0.0, %v3165_v60  ;;  %v3175_v11 = vsel %vm5779_vm4, 0.0, %v3167_v5 }
 0xa32   : > { %3129 = vrot.lane.b32.xlu0 %v6548_v41, %s5529_s18 }
 0xa34   : > { %v5074_v45 = vpop.f32.mrb[22].mxu1 }
 0xa35   : > { %v3110_v33 = vrot.slane %v5074_v45, 7  ;;  %3183 = vrot.lane.b32.xlu1 %v5074_v45, %s5529_s18  ;;  %v3092_v27 = vpop.f32.mrb[23].mxu1 }
 0xa36   : > { %v3108_v1 = vrot.slane %v3092_v27, 7  ;;  %3145 = vrot.lane.b32.xlu0 %v3092_v27, %s5530_s28 }
 0xa38   : > { %v3111_v39 = vsel %vm6985_vm1, %v3108_v1, %v3110_v33  ;;  %v3109_v18 = vsel %vm6986_vm12, %v3106_v42, %v3108_v1 }
 0xa39   : > { %3199 = vrot.lane.b32.xlu1 %v3174_v28, %s5530_s28  ;;  %v3119_v6 = vsel %vm5821_vm13, 0.0, %v3109_v18 }
 0xa3a   : > { %3147 = vrot.lane.b32.xlu0 %v5074_v45, %s5530_s28  ;;  %v3120_v45 = vsel %vm5830_vm14, 0.0, %v3111_v39 }
 0xa3d   : > { %3181 = vrot.lane.b32.xlu1 %v3092_v27, %s5529_s18 }
 0xa41   : > { %3201 = vrot.lane.b32.xlu1 %v3175_v11, %s5530_s28 }
 0xa45   : > { %3203 = vrot.lane.b32.xlu1 %v3176_v12, %s5530_s28 }
 0xa7c   : > { %v3128_v59 = vpop.permute.xlu0 %3127 }
 0xa7d   : > { %v3138_v16 = vadd.f32 %v3128_v59, %v3118_v44 }
 0xa80   : > { %v3126_v62 = vpop.permute.xlu0 %3125 }
 0xa81   : > { %v3137_v52 = vadd.f32 %v3126_v62, %v3117_v63 }
 0xa96   : > { %v3180_v25 = vpop.permute.xlu1 %3179  ;;  %v3144_v54 = vpop.permute.xlu0 %3143 }
 0xa97   : > { %v3154_v49 = vadd.f32 %v3144_v54, %v3138_v16  ;;  %v3190_v30 = vadd.f32 %v6534_v19, %v3180_v25 }
 0xa99   : > { %v3158_v31 = vadd.f32 %v5512_v53, %v3154_v49 }
 0xa9a   : > { %v3178_v43 = vpop.permute.xlu1 %3177 }
 0xa9b   : > { %v3189_v47 = vadd.f32 %v3178_v43, %v2985_v26  ;;  %v3222_v40 = vmul.f32 0.1, %v3158_v31  ;;  %vm3218_vm0 = vcmp.ge.f32.partialorder %v3158_v31, 0.0 }
 0xa9c   : > { %v3132_v48 = vpop.permute.xlu0 %3131 }
 0xa9d   : > { %v3140_v1 = vadd.f32 %v3132_v48, %v3120_v45  ;;  %v3226_v28 = vsel %vm3218_vm0, %v3158_v31, %v3222_v40  ;;  %vm6990_vm0 = vcmask 1040384  }
 0xa9e   : > { %v3198_v50 = vpop.permute.xlu1 %3197 }
 0xa9f   : > { %v3209_v29 = vadd.f32 %v3198_v50, %v3189_v47 }
 0xaa0   : > { %v3142_v55 = vpop.permute.xlu0 %3141 }
 0xaa1   : > { %v3213_v56 = vadd.f32 %v5512_v53, %v3209_v29  ;;  %v3153_v7 = vadd.f32 %v3142_v55, %v3137_v52 }
 0xaa3   : > { %v3233_v13 = vmul.f32 0.1, %v3213_v56  ;;  %v3157_v51 = vadd.f32 %v5512_v53, %v3153_v7  ;;  %vm3229_vm9 = vcmp.ge.f32.partialorder %v3213_v56, 0.0 }
 0xaa4   : > { %v3130_v23 = vpop.permute.xlu0 %3129 }
 0xaa5   : > { %vm3217_vm11 = vcmp.ge.f32.partialorder %v3157_v51, 0.0  ;;  %v3221_v37 = vmul.f32 0.1, %v3157_v51  ;;  %v3237_v58 = vsel %vm3229_vm9, %v3213_v56, %v3233_v13  ;;  %v3139_v46 = vadd.f32 %v3130_v23, %v3119_v6 }
 0xaa7   : > { %v3225_v26 = vsel %vm3217_vm11, %v3157_v51, %v3221_v37  ;;  %v3184_v17 = vpop.permute.xlu1 %3183  ;;  %vm6989_vm11 = vcmask 1046528  }
 0xaa8   : > { %v3241_v32 = vmax.f32 %v3225_v26, %v3237_v58  ;;  %v3146_v42 = vpop.permute.xlu0 %3145  ;;  %v3192_v54 = vadd.f32 %v6545_v38, %v3184_v17 }
 0xaa9   : > { %v3155_v60 = vadd.f32 %v3146_v42, %v3139_v46 }
 0xaaa   : > { %5083 = vmatprep.mubr.msk.f32.mxu0 %vm904_vm10, %v3241_v32 }
 0xaab   : > { %v3200_v35 = vpop.permute.xlu1 %3199  ;;  %v3159_v11 = vadd.f32 %v5512_v53, %v3155_v60 }
 0xaac   : > { %v3210_v0 = vadd.f32 %v3200_v35, %v3190_v30  ;;  %v3148_v33 = vpop.permute.xlu0 %3147 }
 0xaad   : > { %v3156_v12 = vadd.f32 %v3148_v33, %v3140_v1  ;;  %v3223_v43 = vmul.f32 0.1, %v3159_v11  ;;  %vm3219_vm12 = vcmp.ge.f32.partialorder %v3159_v11, 0.0 }
 0xaae   : > { %v3214_v5 = vadd.f32 %v5512_v53, %v3210_v0 }
 0xaaf   : > { %v3182_v27 = vpop.permute.xlu1 %3181  ;;  %v3160_v39 = vadd.f32 %v5512_v53, %v3156_v12 }
 0xab0   : > { %vm3230_vm1 = vcmp.ge.f32.partialorder %v3214_v5, 0.0  ;;  %v3234_v19 = vmul.f32 0.1, %v3214_v5  ;;  %v3191_v18 = vadd.f32 %v3182_v27, %v6548_v41  ;;  %v3227_v41 = vsel %vm3219_vm12, %v3159_v11, %v3223_v43 }
 0xab1   : > { %v3224_v50 = vmul.f32 0.1, %v3160_v39  ;;  %vm3220_vm8 = vcmp.ge.f32.partialorder %v3160_v39, 0.0 }
 0xab2   : > { %v3238_v57 = vsel %vm3230_vm1, %v3214_v5, %v3234_v19  ;;  %vm6991_vm1 = vmmov %vm6989_vm11 }
 0xab3   : > { %v3242_v59 = vmax.f32 %v3226_v28, %v3238_v57  ;;  %v3202_v62 = vpop.permute.xlu1 %3201  ;;  %v3228_v56 = vsel %vm3220_vm8, %v3160_v39, %v3224_v50  ;;  %vm6992_vm12 = vmmov %vm6991_vm1 }
 0xab4   : > { %v3211_v25 = vadd.f32 %v3202_v62, %v3191_v18  ;;  %vm6994_vm8 = vmmov %vm6990_vm0  ;;  %v5513_v18 = vld [vmem:[%s6955_s6] ss:$0 sm:$0xff] }
 0xab5   : > { %5084 = vmatmul.mubr.msk.f32.vlgmr.msra.gmra.mrb[24].mxu0 %vm904_vm10, %v3242_v59 }
 0xab6   : > { %v3215_v36 = vadd.f32 %v5512_v53, %v3211_v25  ;;  %5302 = vmatpush3.bf16.msra.mxu0 %v6019_v14 }
 0xab7   : > { %v3204_v48 = vpop.permute.xlu1 %3203  ;;  %5304 = vmatprep.subr.bf16.mxu0 %v6031_v20 }
 0xab8   : > { %vm3231_vm15 = vcmp.ge.f32.partialorder %v3215_v36, 0.0  ;;  %v3235_v47 = vmul.f32 0.1, %v3215_v36  ;;  %v3212_v63 = vadd.f32 %v3204_v48, %v3192_v54 }
 0xaba   : > { %v3239_v52 = vsel %vm3231_vm15, %v3215_v36, %v3235_v47  ;;  %v3216_v29 = vadd.f32 %v5512_v53, %v3212_v63  ;;  %5306 = vmatpush3.bf16.msra.mxu0 %v6031_v20  ;;  %vm6993_vm15 = vmmov %vm6990_vm0 }
 0xabb   : > { %v3243_v38 = vmax.f32 %v3227_v41, %v3239_v52  ;;  %5316 = vmatprep.subr.bf16.mxu0 %v6088_v2 }
 0xabc   : > { %vm3232_vm9 = vcmp.ge.f32.partialorder %v3216_v29, 0.0  ;;  %v3236_v55 = vmul.f32 0.1, %v3216_v29 }
 0xabd   : > { %5086 = vmatprep.mubr.msk.f32.mxu0 %vm904_vm10, %v3243_v38 }
 0xabe   : > { %v3240_v7 = vsel %vm3232_vm9, %v3216_v29, %v3236_v55  ;;  %vm6995_vm9 = vmmov %vm6991_vm1 }
 0xabf   : > { %v3244_v44 = vmax.f32 %v3228_v56, %v3240_v7 }
 0xac1   : > { %5087 = vmatmul.mubr.msk.f32.gmra.mrb[26].mxu0 %vm904_vm10, %v3244_v44 }
 0xb88   : > { %v5085_v16 = vpop.f32.mrb[24].mxu0 }
 0xb89   : > { %v3347_v13 = vrot.slane %v5085_v16, 7  ;;  %v3363_v51 = vrot.slane %v5085_v16, 1  ;;  %3380 = vrot.lane.b32.xlu1 %v5085_v16, %s5529_s18  ;;  %v3323_v53 = vpop.f32.mrb[25].mxu0 }
 0xb8a   : > { %v3346_v23 = vrot.slane %v3323_v53, 7  ;;  %v3362_v49 = vrot.slane %v3323_v53, 1  ;;  %3378 = vrot.lane.b32.xlu0 %v3323_v53, %s5529_s18 }
 0xb8c   : > { %v3364_v37 = vsel %vm6989_vm11, %v3362_v49, %v3363_v51  ;;  %v3348_v58 = vsel %vm6990_vm0, %v3346_v23, %v3347_v13  ;;  %vm6996_vm11 = vmmov %vm6990_vm0 }
 0xb8d   : > { %v3374_v26 = vsel %vm5752_vm2, 0.0, %v3364_v37  ;;  %v3357_v27 = vsel %vm6996_vm11, 0.0, %v3346_v23  ;;  %v3359_v39 = vsel %vm5804_vm7, 0.0, %v3348_v58 }
 0xb8e   : > { %3398 = vrot.lane.b32.xlu0 %v3374_v26, %s5530_s28  ;;  %v3358_v19 = vsel %vm5797_vm6, 0.0, %v3357_v27 }
 0xb94   : > { %v5088_v17 = vpop.f32.mrb[26].mxu0 }
 0xb95   : > { %v3351_v32 = vrot.slane %v5088_v17, 7  ;;  %v3367_v31 = vrot.slane %v5088_v17, 1  ;;  %3384 = vrot.lane.b32.xlu1 %v5088_v17, %s5529_s18  ;;  %v3333_v42 = vpop.f32.mrb[27].mxu0 }
 0xb96   : > { %v3349_v30 = vrot.slane %v3333_v42, 7  ;;  %v3365_v6 = vrot.slane %v3333_v42, 1  ;;  %3382 = vrot.lane.b32.xlu0 %v3333_v42, %s5529_s18 }
 0xb97   : > { %v3373_v45 = vsel %vm6995_vm9, %v3367_v31, 0.0 }
 0xb98   : > { %v3368_v35 = vsel %vm6991_vm1, %v3365_v6, %v3367_v31  ;;  %v3366_v46 = vsel %vm6992_vm12, %v3363_v51, %v3365_v6  ;;  %v3352_v0 = vsel %vm6993_vm15, %v3349_v30, %v3351_v32  ;;  %v3350_v5 = vsel %vm6994_vm8, %v3347_v13, %v3349_v30  ;;  %vm6997_vm8 = vmmov %vm6995_vm9 }
 0xb99   : > { %v3376_v40 = vsel %vm5779_vm4, 0.0, %v3368_v35  ;;  %v3375_v60 = vsel %vm5766_vm3, 0.0, %v3366_v46  ;;  %v3377_v33 = vsel %vm5789_vm5, 0.0, %v3373_v45  ;;  %v3360_v36 = vsel %vm5821_vm13, 0.0, %v3350_v5  ;;  %vm6998_vm9 = vmmov %vm6997_vm8 }
 0xb9a   : > { %3402 = vrot.lane.b32.xlu0 %v3376_v40, %s5530_s28  ;;  %3400 = vrot.lane.b32.xlu1 %v3375_v60, %s5530_s28  ;;  %v3361_v29 = vsel %vm5830_vm14, 0.0, %v3352_v0  ;;  %vm6999_vm11 = vmmov %vm6997_vm8 }
 0xb9e   : > { %3404 = vrot.lane.b32.xlu1 %v3377_v33, %s5530_s28 }
 0xbfb   : > { %v3381_v12 = vpop.permute.xlu1 %3380 }
 0xbfc   : > { %v3379_v1 = vpop.permute.xlu0 %3378  ;;  %v3391_v48 = vadd.f32 %v3381_v12, %v3359_v39 }
 0xbfd   : > { %v3390_v28 = vadd.f32 %v3379_v1, %v3358_v19  ;;  %v5514_v1 = vld [vmem:[%s6957_s8] ss:$0 sm:$0xff] }
 0xc00   : > { %v3399_v11 = vpop.permute.xlu0 %3398 }
 0xc01   : > { %v3410_v57 = vadd.f32 %v3399_v11, %v3390_v28 }
 0xc03   : > { %v3414_v59 = vadd.f32 %v5513_v18, %v3410_v57 }
 0xc05   : > { %v3422_v62 = vmul.f32 0.1, %v3414_v59  ;;  %vm3418_vm0 = vcmp.ge.f32.partialorder %v3414_v59, 0.0 }
 0xc07   : > { %v3385_v25 = vpop.permute.xlu1 %3384  ;;  %v3426_v54 = vsel %vm3418_vm0, %v3414_v59, %v3422_v62  ;;  %vm7000_vm0 = vmmov %vm6997_vm8 }
 0xc08   : > { %5097 = vmatprep.mubr.msk.f32.mxu1 %vm904_vm10, %v3426_v54  ;;  %v3383_v43 = vpop.permute.xlu0 %3382  ;;  %v3393_v38 = vadd.f32 %v3385_v25, %v3361_v29 }
 0xc09   : > { %v3392_v47 = vadd.f32 %v3383_v43, %v3360_v36 }
 0xc0c   : > { %v3401_v63 = vpop.permute.xlu1 %3400  ;;  %v3403_v41 = vpop.permute.xlu0 %3402 }
 0xc0d   : > { %v3411_v50 = vadd.f32 %v3401_v63, %v3391_v48  ;;  %v3412_v52 = vadd.f32 %v3403_v41, %v3392_v47 }
 0xc0f   : > { %v3415_v55 = vadd.f32 %v5513_v18, %v3411_v50  ;;  %v3416_v56 = vadd.f32 %v5513_v18, %v3412_v52 }
 0xc10   : > { %v3405_v7 = vpop.permute.xlu1 %3404 }
 0xc11   : > { %vm3419_vm1 = vcmp.ge.f32.partialorder %v3415_v55, 0.0  ;;  %v3423_v44 = vmul.f32 0.1, %v3415_v55  ;;  %v3424_v16 = vmul.f32 0.1, %v3416_v56  ;;  %v3413_v13 = vadd.f32 %v3405_v7, %v3393_v38 }
 0xc12   : > { %vm3420_vm12 = vcmp.ge.f32.partialorder %v3416_v56, 0.0 }
 0xc13   : > { %v3427_v51 = vsel %vm3419_vm1, %v3415_v55, %v3423_v44  ;;  %v3417_v53 = vadd.f32 %v5513_v18, %v3413_v13  ;;  %v3428_v23 = vsel %vm3420_vm12, %v3416_v56, %v3424_v16  ;;  %vm7001_vm1 = vmmov %vm7000_vm0 }
 0xc14   : > { %5098 = vmatmul.mubr.msk.f32.vlgmr.msra.gmra.mrb[24].mxu1 %vm904_vm10, %v3427_v51  ;;  %vm7002_vm12 = vmmov %vm7000_vm0 }
 0xc15   : > { %v3425_v49 = vmul.f32 0.1, %v3417_v53  ;;  %5100 = vmatprep.mubr.msk.f32.mxu1 %vm904_vm10, %v3428_v23  ;;  %vm3421_vm15 = vcmp.ge.f32.partialorder %v3417_v53, 0.0  ;;  %5310 = vmatpush3.bf16.msra.mxu1 %v6019_v14 }
 0xc16   : > { %5312 = vmatprep.subr.bf16.mxu1 %v6031_v20 }
 0xc17   : > { %v3429_v37 = vsel %vm3421_vm15, %v3417_v53, %v3425_v49  ;;  %vm7003_vm15 = vmmov %vm7000_vm0 }
 0xc18   : > { %5101 = vmatmul.mubr.msk.f32.gmra.mrb[26].mxu1 %vm904_vm10, %v3429_v37 }
 0xc19   : > { %5314 = vmatpush3.bf16.msra.mxu1 %v6031_v20 }
 0xc1a   : > { %5324 = vmatprep.subr.bf16.mxu1 %v6088_v2 }
 0xce7   : > { %v5099_v58 = vpop.f32.mrb[24].mxu1 }
 0xce8   : > { %v3528_v26 = vadd.f32 %v5099_v58, %v6037_v22  ;;  %v3536_v17 = vrot.slane %v5099_v58, 1  ;;  %v3508_v32 = vpop.f32.mrb[25].mxu1 }
 0xce9   : > { %v3535_v31 = vrot.slane %v3508_v32, 1  ;;  %3551 = vrot.lane.b32.xlu0 %v3508_v32, %s5530_s28  ;;  %v3527_v14 = vadd.f32 %v3508_v32, %v6037_v22 }
 0xcea   : > { %3577 = vrot.lane.b32.xlu1 %v3528_v26, %s5529_s18 }
 0xceb   : > { %v5102_v42 = vpop.f32.mrb[26].mxu1  ;;  %v3537_v30 = vsel %vm6997_vm8, %v3535_v31, %v3536_v17  ;;  %vm7004_vm8 = vmmov %vm7000_vm0 }
 0xcec   : > { %v3540_v6 = vrot.slane %v5102_v42, 1  ;;  %v3518_v35 = vpop.f32.mrb[27].mxu1  ;;  %v3530_v60 = vadd.f32 %v5102_v42, %v6037_v22  ;;  %v3547_v5 = vsel %vm5752_vm2, 0.0, %v3537_v30 }
 0xced   : > { %v3529_v20 = vadd.f32 %v3518_v35, %v6037_v22  ;;  %v3538_v46 = vrot.slane %v3518_v35, 1  ;;  %3575 = vrot.lane.b32.xlu0 %v3527_v14, %s5529_s18 }
 0xcee   : > { %v3546_v62 = vsel %vm7000_vm0, %v3540_v6, 0.0 }
 0xcef   : > { %3579 = vrot.lane.b32.xlu1 %v3529_v20, %s5529_s18  ;;  %v3539_v0 = vsel %vm6998_vm9, %v3536_v17, %v3538_v46  ;;  %v3541_v40 = vsel %vm6999_vm11, %v3538_v46, %v3540_v6  ;;  %v3550_v39 = vsel %vm5789_vm5, 0.0, %v3546_v62  ;;  %v5515_v46 = vld [vmem:[%s6959_s10] ss:$0 sm:$0xff]  ;;  %vm7005_vm9 = vmmov %vm7000_vm0  ;;  %vm7008_vm11 = vcmask 1040384  }
 0xcf0   : > { %v3548_v11 = vsel %vm5766_vm3, 0.0, %v3539_v0  ;;  %v3549_v25 = vsel %vm5779_vm4, 0.0, %v3541_v40 }
 0xcf1   : > { %3553 = vrot.lane.b32.xlu0 %v5099_v58, %s5530_s28 }
 0xcf3   : > { %3581 = vrot.lane.b32.xlu1 %v3530_v60, %s5529_s18 }
 0xcf5   : > { %3555 = vrot.lane.b32.xlu0 %v3518_v35, %s5530_s28 }
 0xcf7   : > { %3557 = vrot.lane.b32.xlu1 %v5102_v42, %s5530_s28 }
 0xd5b   : > { %v3552_v45 = vpop.permute.xlu0 %3551 }
 0xd5c   : > { %v3563_v33 = vadd.f32 %v3552_v45, %v3547_v5  ;;  %v3578_v27 = vpop.permute.xlu1 %3577 }
 0xd5e   : > { %v3567_v19 = vadd.f32 %v5514_v1, %v3563_v33 }
 0xd5f   : > { %v3576_v22 = vpop.permute.xlu0 %3575 }
 0xd60   : > { %5111 = vmatprep.mubr.msk.f32.mxu0 %vm904_vm10, %v3576_v22  ;;  %5125 = vmatprep.mubr.msk.f32.mxu1 %vm904_vm10, %v3567_v19 }
 0xd61   : > { %v3580_v28 = vpop.permute.xlu1 %3579  ;;  %5112 = vmatmul.mubr.msk.f32.vlgmr.msra.gmra.mrb[28].mxu0 %vm904_vm10, %v3578_v27 }
 0xd62   : > { %5114 = vmatprep.mubr.msk.f32.mxu0 %vm904_vm10, %v3580_v28  ;;  %5318 = vmatpush3.bf16.msra.mxu0 %v6088_v2 }
 0xd63   : > { %v3554_v57 = vpop.permute.xlu0 %3553  ;;  %5320 = vmatprep.subr.bf16.mxu0 %v6100_v8 }
 0xd64   : > { %v3564_v12 = vadd.f32 %v3554_v57, %v3548_v11 }
 0xd65   : > { %v3582_v18 = vpop.permute.xlu1 %3581 }
 0xd66   : > { %v3568_v59 = vadd.f32 %v5514_v1, %v3564_v12  ;;  %5115 = vmatmul.mubr.msk.f32.gmra.mrb[30].mxu0 %vm904_vm10, %v3582_v18 }
 0xd67   : > { %v3556_v54 = vpop.permute.xlu0 %3555  ;;  %5322 = vmatpush3.bf16.msra.mxu0 %v6100_v8 }
 0xd68   : > { %v3565_v43 = vadd.f32 %v3556_v54, %v3549_v25  ;;  %5126 = vmatmul.mubr.msk.f32.vlgmr.msra.gmra.mrb[28].mxu1 %vm904_vm10, %v3568_v59  ;;  %5332 = vmatprep.subr.bf16.mxu0 %v6088_v2 }
 0xd69   : > { %v3558_v36 = vpop.permute.xlu1 %3557  ;;  %5326 = vmatpush3.bf16.msra.mxu1 %v6088_v2 }
 0xd6a   : > { %v3569_v48 = vadd.f32 %v5514_v1, %v3565_v43  ;;  %v3566_v47 = vadd.f32 %v3558_v36, %v3550_v39  ;;  %5328 = vmatprep.subr.bf16.mxu1 %v6100_v8 }
 0xd6c   : > { %v3570_v63 = vadd.f32 %v5514_v1, %v3566_v47  ;;  %5128 = vmatprep.mubr.msk.f32.mxu1 %vm904_vm10, %v3569_v48 }
 0xd6d   : > { %5330 = vmatpush3.bf16.msra.mxu1 %v6100_v8 }
 0xd6e   : > { %5129 = vmatmul.mubr.msk.f32.gmra.mrb[30].mxu1 %vm904_vm10, %v3570_v63  ;;  %5340 = vmatprep.subr.bf16.mxu1 %v6088_v2 }
 0xe34   : > { %v5113_v41 = vpop.f32.mrb[28].mxu0 }
 0xe35   : > { %v3806_v50 = vrot.slane %v5113_v41, 1  ;;  %3783 = vrot.lane.b32.xlu1 %v5113_v41, %s5530_s28  ;;  %v3657_v52 = vpop.f32.mrb[29].mxu0  ;;  %v3774_v38 = vadd.f32 %v5113_v41, %v6108_v10 }
 0xe36   : > { %v3805_v29 = vrot.slane %v3657_v52, 1  ;;  %3781 = vrot.lane.b32.xlu0 %v3657_v52, %s5530_s28  ;;  %v3773_v51 = vadd.f32 %v3657_v52, %v6108_v10 }
 0xe38   : > { %v3807_v55 = vsel %vm7001_vm1, %v3805_v29, %v3806_v50 }
 0xe39   : > { %v6690_v56 = vpop.f32.mrb[30].mxu0  ;;  %v3817_v19 = vsel %vm5752_vm2, 0.0, %v3807_v55 }
 0xe3a   : > { %v3810_v7 = vrot.slane %v6690_v56, 1  ;;  %3851 = vrot.lane.b32.xlu0 %v3774_v38, %s5529_s18  ;;  %v3667_v44 = vpop.f32.mrb[31].mxu0  ;;  %v3776_v17 = vadd.f32 %v6690_v56, %v6108_v10 }
 0xe3b   : > { %v3808_v16 = vrot.slane %v3667_v44, 1  ;;  %v5127_v13 = vpop.f32.mrb[28].mxu1  ;;  %v3775_v32 = vadd.f32 %v3667_v44, %v6108_v10 }
 0xe3c   : > { %3827 = vrot.lane.b32.xlu1 %v5127_v13, %s5530_s28  ;;  %v3754_v53 = vpop.f32.mrb[29].mxu1  ;;  %v3802_v31 = vadd.f32 %v5127_v13, %v6108_v10 }
 0xe3d   : > { %v3809_v23 = vsel %vm7002_vm12, %v3806_v50, %v3808_v16  ;;  %v6700_v49 = vsel %vm7003_vm15, %v3808_v16, %v3810_v7  ;;  %v3801_v37 = vadd.f32 %v3754_v53, %v6108_v10 }
 0xe3e   : > { %3849 = vrot.lane.b32.xlu0 %v3773_v51, %s5529_s18  ;;  %v3819_v47 = vsel %vm5779_vm4, 0.0, %v6700_v49 }
 0xe40   : > { %3825 = vrot.lane.b32.xlu1 %v3754_v53, %s5530_s28 }
 0xe41   : > { %v5130_v58 = vpop.f32.mrb[30].mxu1 }
 0xe42   : > { %4051 = vrot.lane.b32.xlu0 %v3801_v37, %s5529_s18  ;;  %v3764_v26 = vpop.f32.mrb[31].mxu1  ;;  %v3804_v42 = vadd.f32 %v5130_v58, %v6108_v10 }
 0xe43   : > { %v3803_v14 = vadd.f32 %v3764_v26, %v6108_v10 }
 0xe44   : > { %3787 = vrot.lane.b32.xlu1 %v6690_v56, %s5530_s28 }
 0xe46   : > { %3855 = vrot.lane.b32.xlu0 %v3776_v17, %s5529_s18 }
 0xe48   : > { %3785 = vrot.lane.b32.xlu1 %v3667_v44, %s5530_s28 }
 0xe4a   : > { %3853 = vrot.lane.b32.xlu0 %v3775_v32, %s5529_s18 }
 0xe4c   : > { %3831 = vrot.lane.b32.xlu1 %v5130_v58, %s5530_s28 }
 0xe4e   : > { %4053 = vrot.lane.b32.xlu0 %v3802_v31, %s5529_s18 }
 0xe50   : > { %3829 = vrot.lane.b32.xlu1 %v3764_v26, %s5530_s28  ;;  %s5535_s28 = smov 2  }
 0xe52   : > { %4055 = vrot.lane.b32.xlu0 %v3803_v14, %s5529_s18 }
 0xe54   : > { %4057 = vrot.lane.b32.xlu1 %v3804_v42, %s5529_s18  ;;  %s5534_s18 = smov 1  }
 0xea7   : > { %v3784_v30 = vpop.permute.xlu1 %3783 }
 0xea8   : > { %v3794_v6 = vadd.f32 %v5127_v13, %v3784_v30  ;;  %v3782_v35 = vpop.permute.xlu0 %3781 }
 0xea9   : > { %v3793_v20 = vadd.f32 %v3782_v35, %v3754_v53 }
 0xeaa   : > { %v3798_v40 = vadd.f32 %v5515_v46, %v3794_v6 }
 0xeab   : > { %v3797_v0 = vadd.f32 %v5515_v46, %v3793_v20 }
 0xeac   : > { %v3852_v60 = vpop.permute.xlu0 %3851 }
 0xead   : > { %5153 = vmatprep.mubr.msk.f32.mxu1 %vm904_vm10, %v3797_v0 }
 0xeae   : > { %v3828_v5 = vpop.permute.xlu1 %3827  ;;  %5154 = vmatmul.mubr.msk.f32.vlgmr.msra.gmra.mrb[32].mxu1 %vm904_vm10, %v3798_v40 }
 0xeaf   : > { %5342 = vmatpush3.bf16.msra.mxu1 %v6088_v2 }
 0xeb0   : > { %v3850_v10 = vpop.permute.xlu0 %3849  ;;  %5344 = vmatprep.subr.bf16.mxu1 %v6100_v8 }
 0xeb1   : > { %5139 = vmatprep.mubr.msk.f32.mxu0 %vm904_vm10, %v3850_v10 }
 0xeb2   : > { %v3826_v45 = vpop.permute.xlu1 %3825  ;;  %5140 = vmatmul.mubr.msk.f32.vlgmr.msra.gmra.mrb[32].mxu0 %vm904_vm10, %v3852_v60 }
 0xeb3   : > { %5334 = vmatpush3.bf16.msra.mxu0 %v6088_v2  ;;  %5346 = vmatpush3.bf16.msra.mxu1 %v6100_v8  ;;  %v3837_v11 = vadd.f32 %v3826_v45, %v3817_v19  ;;  %v3818_v2 = vsel %vm5766_vm3, 0.0, %v3809_v23 }
 0xeb4   : > { %v4052_v33 = vpop.permute.xlu0 %4051  ;;  %5336 = vmatprep.subr.bf16.mxu0 %v6100_v8  ;;  %v3838_v59 = vadd.f32 %v3828_v5, %v3818_v2 }
 0xeb5   : > { %v3841_v54 = vadd.f32 %v5515_v46, %v3837_v11 }
 0xeb6   : > { %v3788_v27 = vpop.permute.xlu1 %3787  ;;  %v3842_v36 = vadd.f32 %v5515_v46, %v3838_v59 }
 0xeb7   : > { %5338 = vmatpush3.bf16.msra.mxu0 %v6100_v8  ;;  %v3796_v22 = vadd.f32 %v5130_v58, %v3788_v27  ;;  %v3816_v8 = vsel %vm7004_vm8, %v3810_v7, 0.0 }
 0xeb8   : > { %v3856_v1 = vpop.permute.xlu0 %3855  ;;  %v3820_v39 = vsel %vm5789_vm5, 0.0, %v3816_v8 }
 0xeb9   : > { %v3800_v62 = vadd.f32 %v5515_v46, %v3796_v22 }
 0xeba   : > { %v3786_v28 = vpop.permute.xlu1 %3785 }
 0xebb   : > { %v3795_v57 = vadd.f32 %v3786_v28, %v3764_v26 }
 0xebc   : > { %v3854_v12 = vpop.permute.xlu0 %3853 }
 0xebd   : > { %v3799_v18 = vadd.f32 %v5515_v46, %v3795_v57  ;;  %5142 = vmatprep.mubr.msk.f32.mxu0 %vm904_vm10, %v3854_v12 }
 0xebe   : > { %v3832_v25 = vpop.permute.xlu1 %3831  ;;  %5143 = vmatmul.mubr.msk.f32.gmra.mrb[34].mxu0 %vm904_vm10, %v3856_v1 }
 0xebf   : > { %5156 = vmatprep.mubr.msk.f32.mxu1 %vm904_vm10, %v3799_v18  ;;  %5167 = vmatprep.mubr.msk.f32.mxu0 %vm904_vm10, %v4052_v33  ;;  %v3840_v48 = vadd.f32 %v3832_v25, %v3820_v39 }
 0xec0   : > { %5157 = vmatmul.mubr.msk.f32.gmra.mrb[34].mxu1 %vm904_vm10, %v3800_v62  ;;  %v4054_v43 = vpop.permute.xlu0 %4053 }
 0xec1   : > { %5181 = vmatprep.mubr.msk.f32.mxu1 %vm904_vm10, %v3841_v54  ;;  %v3844_v29 = vadd.f32 %v5515_v46, %v3840_v48  ;;  %v6869_v54 = vld [vmem:[#allocation2] ss:$0 sm:$0xff] }
 0xec2   : > { %v3830_v63 = vpop.permute.xlu1 %3829  ;;  %5168 = vmatmul.mubr.msk.f32.vlgmr.msra.gmra.mrb[36].mxu0 %vm904_vm10, %v4054_v43 }
 0xec3   : > { %v3839_v41 = vadd.f32 %v3830_v63, %v3819_v47 }
 0xec4   : > { %5182 = vmatmul.mubr.msk.f32.vlgmr.msra.gmra.mrb[36].mxu1 %vm904_vm10, %v3842_v36  ;;  %v4056_v50 = vpop.permute.xlu0 %4055 }
 0xec5   : > { %v3843_v52 = vadd.f32 %v5515_v46, %v3839_v41  ;;  %5170 = vmatprep.mubr.msk.f32.mxu0 %vm904_vm10, %v4056_v50 }
 0xec6   : > { %v4058_v38 = vpop.permute.xlu1 %4057 }
 0xec7   : > { %5171 = vmatmul.mubr.msk.f32.gmra.mrb[38].mxu0 %vm904_vm10, %v4058_v38  ;;  %5184 = vmatprep.mubr.msk.f32.mxu1 %vm904_vm10, %v3843_v52 }
 0xec8   : > { %5185 = vmatmul.mubr.msk.f32.gmra.mrb[38].mxu1 %vm904_vm10, %v3844_v29  ;;  %vm7007_vm10 = vmmov %vm7000_vm0 }
 0xf81   : > { %v6759_v55 = vpop.f32.mrb[32].mxu1 }
 0xf82   : > { %4315 = vrot.lane.b32.xlu1 %v6759_v55, %s5532_s17  ;;  %v6763_v56 = vpop.f32.mrb[33].mxu1 }
 0xf83   : > { %4313 = vrot.lane.b32.xlu0 %v6763_v56, %s5532_s17 }
 0xf85   : > { %v6767_v7 = vpop.f32.mrb[32].mxu0 }
 0xf86   : > { %v4390_v44 = vrot.slane %v6767_v7, 1  ;;  %v6770_v16 = vpop.f32.mrb[33].mxu0 }
 0xf87   : > { %v4389_v13 = vrot.slane %v6770_v16, 1 }
 0xf89   : > { %v4391_v51 = vsel %vm7005_vm9, %v4389_v13, %v4390_v44 }
 0xf8a   : > { %v4401_v53 = vsel %vm5752_vm2, 0.0, %v4391_v51  ;;  %vm7006_vm2 = vmmov %vm7000_vm0 }
 0xf8b   : > { %4425 = vrot.lane.b32.xlu0 %v4401_v53, %s5533_s19  ;;  %vm7009_vm0 = vmmov %vm7008_vm11 }
 0xf8c   : > { %vm7010_vm1 = vmmov %vm7009_vm0 }
 0xf91   : > { %v6777_v23 = vpop.f32.mrb[34].mxu0 }
 0xf92   : > { %v4394_v49 = vrot.slane %v6777_v23, 1  ;;  %v6780_v37 = vpop.f32.mrb[35].mxu0 }
 0xf93   : > { %v4392_v58 = vrot.slane %v6780_v37, 1  ;;  %v6783_v26 = vpop.f32.mrb[34].mxu1 }
 0xf94   : > { %4319 = vrot.lane.b32.xlu1 %v6783_v26, %s5532_s17  ;;  %v6787_v17 = vpop.f32.mrb[35].mxu1 }
 0xf95   : > { %4317 = vrot.lane.b32.xlu0 %v6787_v17, %s5532_s17  ;;  %v6791_v61 = vpop.f32.mrb[36].mxu0  ;;  %v4393_v32 = vsel %vm7006_vm2, %v4390_v44, %v4392_v58  ;;  %v4395_v31 = vsel %vm7007_vm10, %v4392_v58, %v4394_v49 }
 0xf96   : > { %v6795_v14 = vpop.f32.mrb[37].mxu0  ;;  %v4402_v45 = vsel %vm5766_vm3, 0.0, %v4393_v32  ;;  %v4403_v3 = vsel %vm5779_vm4, 0.0, %v4395_v31  ;;  %vm7011_vm3 = vmmov %vm7006_vm2 }
 0xf97   : > { %v5183_v42 = vpop.f32.mrb[36].mxu1  ;;  %v4400_v1 = vsel %vm7011_vm3, %v4394_v49, 0.0  ;;  %vm7012_vm4 = vmmov %vm7009_vm0 }
 0xf98   : > { %v4254_v30 = vrot.slane %v5183_v42, 7  ;;  %v6797_v6 = vpop.f32.mrb[37].mxu1  ;;  %4355 = vrot.lane.b32.xlu1 %v6791_v61, %s5532_s17  ;;  %v4404_v19 = vsel %vm5789_vm5, 0.0, %v4400_v1  ;;  %vm4525_vm5 = vcmask 7168  }
 0xf99   : > { %v4253_v35 = vrot.slane %v6797_v6, 7  ;;  %4353 = vrot.lane.b32.xlu0 %v6795_v14, %s5532_s17 }
 0xf9a   : > { %v6804_v20 = vpop.f32.mrb[38].mxu0 }
 0xf9b   : > { %v6806_v46 = vpop.f32.mrb[39].mxu0  ;;  %v5186_v0 = vpop.f32.mrb[38].mxu1  ;;  %v6811_v40 = vsel %vm7008_vm11, %v4253_v35, %v4254_v30 }
 0xf9c   : > { %v4258_v60 = vrot.slane %v5186_v0, 7  ;;  %v4240_v5 = vpop.f32.mrb[39].mxu1  ;;  %4335 = vrot.lane.b32.xlu1 %v6791_v61, %s5533_s19 }
 0xf9d   : > { %v4256_v10 = vrot.slane %v4240_v5, 7  ;;  %4333 = vrot.lane.b32.xlu0 %v6795_v14, %s5533_s19 }
 0xf9f   : > { %v6820_v33 = vsel %vm7009_vm0, %v4254_v30, %v4256_v10  ;;  %v6823_v27 = vsel %vm7010_vm1, %v4256_v10, %v4258_v60 }
 0xfa0   : > { %4427 = vrot.lane.b32.xlu1 %v4402_v45, %s5533_s19 }
 0xfa1   : > { %4405 = vrot.lane.b32.xlu0 %v6797_v6, %s5532_s17 }
 0xfa4   : > { %4407 = vrot.lane.b32.xlu1 %v5183_v42, %s5532_s17 }
 0xfa5   : > { %4369 = vrot.lane.b32.xlu0 %v6797_v6, %s5533_s19 }
 0xfa8   : > { %4371 = vrot.lane.b32.xlu1 %v5183_v42, %s5533_s19 }
 0xfa9   : > { %4357 = vrot.lane.b32.xlu0 %v6806_v46, %s5532_s17 }
 0xfac   : > { %4359 = vrot.lane.b32.xlu1 %v6804_v20, %s5532_s17 }
 0xfad   : > { %4337 = vrot.lane.b32.xlu0 %v6806_v46, %s5533_s19 }
 0xfb0   : > { %4339 = vrot.lane.b32.xlu1 %v6804_v20, %s5533_s19 }
 0xfb1   : > { %4409 = vrot.lane.b32.xlu0 %v4240_v5, %s5532_s17 }
 0xfb4   : > { %4411 = vrot.lane.b32.xlu1 %v5186_v0, %s5532_s17 }
 0xfb5   : > { %4373 = vrot.lane.b32.xlu0 %v4240_v5, %s5533_s19 }
 0xfb8   : > { %4375 = vrot.lane.b32.xlu1 %v5186_v0, %s5533_s19 }
 0xfb9   : > { %4429 = vrot.lane.b32.xlu0 %v4403_v3, %s5533_s19 }
 0xfbc   : > { %4431 = vrot.lane.b32.xlu1 %v4404_v19, %s5533_s19 }
 0xfbd   : > { %4273 = vrot.lane.b32.xlu0 %v6770_v16, %s5532_s17 }
 0xfc0   : > { %4275 = vrot.lane.b32.xlu1 %v6767_v7, %s5532_s17 }
 0xfc1   : > { %4277 = vrot.lane.b32.xlu0 %v6780_v37, %s5532_s17 }
 0xfc4   : > { %4279 = vrot.lane.b32.xlu1 %v6777_v23, %s5532_s17  ;;  %s5536_s17 = smov 3  }
 0xfc5   : > { %4293 = vrot.lane.b32.xlu0 %v6763_v56, %s5533_s19 }
 0xfc8   : > { %4295 = vrot.lane.b32.xlu1 %v6759_v55, %s5533_s19 }
 0xfc9   : > { %4297 = vrot.lane.b32.xlu0 %v6787_v17, %s5533_s19 }
 0xfcc   : > { %4299 = vrot.lane.b32.xlu1 %v6783_v26, %s5533_s19 }
 0xff4   : > { %v4316_v15 = vpop.permute.xlu1 %4315 }
 0xff5   : > { %v4314_v9 = vpop.permute.xlu0 %4313  ;;  %v4326_v2 = vadd.f32 %v6767_v7, %v4316_v15 }
 0xff6   : > { %v4325_v18 = vadd.f32 %v4314_v9, %v6770_v16 }
 0xffd   : > { %v4426_v22 = vpop.permute.xlu0 %4425 }
0x1006   : > { %v4320_v28 = vpop.permute.xlu1 %4319 }
0x1007   : > { %v4318_v11 = vpop.permute.xlu0 %4317  ;;  %v4328_v1 = vadd.f32 %v6777_v23, %v4320_v28 }
0x1008   : > { %v4327_v30 = vadd.f32 %v4318_v11, %v6780_v37 }
0x100a   : > { %v4356_v57 = vpop.permute.xlu1 %4355 }
0x100b   : > { %v4354_v12 = vpop.permute.xlu0 %4353  ;;  %v4366_v51 = vadd.f32 %v6759_v55, %v4356_v57 }
0x100c   : > { %v4365_v52 = vadd.f32 %v4354_v12, %v6763_v56 }
0x100e   : > { %v4336_v59 = vpop.permute.xlu1 %4335 }
0x100f   : > { %v4346_v62 = vadd.f32 %v4336_v59, %v4326_v2  ;;  %v4334_v8 = vpop.permute.xlu0 %4333 }
0x1010   : > { %v4345_v25 = vadd.f32 %v4334_v8, %v4325_v18 }
0x1011   : > { %v4350_v43 = vadd.f32 %v6869_v54, %v4346_v62 }
0x1012   : > { %v4349_v39 = vadd.f32 %v6869_v54, %v4345_v25  ;;  %v4428_v36 = vpop.permute.xlu1 %4427 }
0x1013   : > { %v4466_v48 = vsub.f32 0.0, %v4350_v43  ;;  %v4406_v47 = vpop.permute.xlu0 %4405 }
0x1014   : > { %v4465_v63 = vsub.f32 0.0, %v4349_v39  ;;  %v4417_v41 = vadd.f32 %v4406_v47, %v6795_v14 }
0x1015   : > { %v4471_v50 = vmul.f32 1.442695, %v4466_v48 }
0x1016   : > { %v4469_v29 = vmul.f32 1.442695, %v4465_v63  ;;  %v4437_v38 = vadd.f32 %v4426_v22, %v4417_v41  ;;  %v4408_v7 = vpop.permute.xlu1 %4407 }
0x1017   : > { %5446 = vpow2.f32 %v4471_v50  ;;  %v4418_v44 = vadd.f32 %v6791_v61, %v4408_v7  ;;  %v4370_v16 = vpop.permute.xlu0 %4369 }
0x1018   : > { %5448 = vpow2.f32 %v4469_v29  ;;  %v4381_v13 = vadd.f32 %v4370_v16, %v4365_v52  ;;  %v4441_v53 = vadd.f32 %v6869_v54, %v4437_v38 }
0x1019   : > { %v4438_v32 = vadd.f32 %v4428_v36, %v4418_v44 }
0x101a   : > { %v4385_v49 = vadd.f32 %v6869_v54, %v4381_v13  ;;  %v4372_v58 = vpop.permute.xlu1 %4371  ;;  %v4505_v0 = vsub.f32 0.0, %v4441_v53 }
0x101b   : > { %v4382_v31 = vadd.f32 %v4372_v58, %v4366_v51  ;;  %v4358_v14 = vpop.permute.xlu0 %4357  ;;  %v4442_v5 = vadd.f32 %v6869_v54, %v4438_v32 }
0x101c   : > { %v4485_v56 = vsub.f32 0.0, %v4385_v49  ;;  %v4509_v22 = vmul.f32 1.442695, %v4505_v0  ;;  %v4367_v8 = vadd.f32 %v4358_v14, %v6787_v17 }
0x101d   : > { %v4386_v42 = vadd.f32 %v6869_v54, %v4382_v31  ;;  %v4506_v11 = vsub.f32 0.0, %v4442_v5  ;;  %v4264_v5 = vsel %vm7012_vm4, 0.0, %v4253_v35 }
0x101e   : > { %v4489_v61 = vmul.f32 1.442695, %v4485_v56  ;;  %v4360_v60 = vpop.permute.xlu1 %4359 }
0x101f   : > { %v4486_v10 = vsub.f32 0.0, %v4386_v42  ;;  %v4338_v55 = vpop.permute.xlu0 %4337  ;;  %v4511_v25 = vmul.f32 1.442695, %v4506_v11  ;;  %v4368_v48 = vadd.f32 %v6783_v26, %v4360_v60  ;;  %v4266_v11 = vsel %vm5804_vm7, 0.0, %v6811_v40 }
0x1020   : > { %5450 = vpow2.f32 %v4489_v61  ;;  %v4347_v45 = vadd.f32 %v4338_v55, %v4327_v30  ;;  %vm4567_vm7 = vcmask 23568  }
0x1021   : > { %v5447_v3 = vpop.eup %5446  ;;  %v4491_v19 = vmul.f32 1.442695, %v4486_v10 }
0x1022   : > { %v5449_v9 = vpop.eup %5448  ;;  %v4478_v15 = vadd.f32 1.0, %v5447_v3  ;;  %v4351_v57 = vadd.f32 %v6869_v54, %v4347_v45  ;;  %v4340_v12 = vpop.permute.xlu1 %4339 }
0x1023   : > { %v4477_v37 = vadd.f32 1.0, %v5449_v9  ;;  %5452 = vpow2.f32 %v4491_v19  ;;  %v4348_v2 = vadd.f32 %v4340_v12, %v4328_v1  ;;  %v4410_v18 = vpop.permute.xlu0 %4409 }
0x1024   : > { %5454 = vrcp.f32 %v4478_v15  ;;  %v4467_v59 = vsub.f32 0.0, %v4351_v57  ;;  %v4419_v41 = vadd.f32 %v4410_v18, %v6806_v46  ;;  %v4265_v15 = vsel %vm5797_vm6, 0.0, %v4264_v5 }
0x1025   : > { %5456 = vrcp.f32 %v4477_v37  ;;  %v4352_v62 = vadd.f32 %v6869_v54, %v4348_v2  ;;  %vm4546_vm6 = vcmask 15368  }
0x1026   : > { %v4473_v23 = vmul.f32 1.442695, %v4467_v59  ;;  %v4412_v28 = vpop.permute.xlu1 %4411  ;;  %5458 = vpow2.f32 %v4509_v22  ;;  %v4267_v59 = vsel %vm5821_vm13, 0.0, %v6820_v33  ;;  %vm4588_vm13 = vcmask 31768  }
0x1027   : > { %v4468_v43 = vsub.f32 0.0, %v4352_v62  ;;  %v4374_v39 = vpop.permute.xlu0 %4373  ;;  %v4420_v13 = vadd.f32 %v6804_v20, %v4412_v28 }
0x1028   : > { %5460 = vpow2.f32 %v4473_v23  ;;  %v4383_v36 = vadd.f32 %v4374_v39, %v4367_v8  ;;  %v4268_v39 = vsel %vm5830_vm14, 0.0, %v6823_v27 }
0x1029   : > { %v4475_v47 = vmul.f32 1.442695, %v4468_v43  ;;  %5462 = vpow2.f32 %v4511_v25 }
0x102a   : > { %v5451_v63 = vpop.eup %5450  ;;  %v4387_v50 = vadd.f32 %v6869_v54, %v4383_v36  ;;  %v4376_v52 = vpop.permute.xlu1 %4375 }
0x102b   : > { %v4497_v29 = vadd.f32 1.0, %v5451_v63  ;;  %v4384_v17 = vadd.f32 %v4376_v52, %v4368_v48  ;;  %v4430_v38 = vpop.permute.xlu0 %4429  ;;  %5464 = vpow2.f32 %v4475_v47 }
0x102c   : > { %v4487_v7 = vsub.f32 0.0, %v4387_v50  ;;  %v4439_v44 = vadd.f32 %v4430_v38, %v4419_v41 }
0x102d   : > { %v5453_v16 = vpop.eup %5452  ;;  %5466 = vrcp.f32 %v4497_v29  ;;  %v4388_v26 = vadd.f32 %v6869_v54, %v4384_v17 }
0x102e   : > { %v5455_v51 = vpop.eup %5454  ;;  %v4498_v53 = vadd.f32 1.0, %v5453_v16  ;;  %v4493_v49 = vmul.f32 1.442695, %v4487_v7  ;;  %v4443_v46 = vadd.f32 %v6869_v54, %v4439_v44  ;;  %v4432_v58 = vpop.permute.xlu1 %4431 }
0x102f   : > { %v5457_v32 = vpop.eup %5456  ;;  %v4488_v31 = vsub.f32 0.0, %v4388_v26  ;;  %v4440_v14 = vadd.f32 %v4432_v58, %v4420_v13  ;;  %4536 = vrot.lane.b32.xlu1 %v5455_v51, %s5534_s18  ;;  %v4274_v56 = vpop.permute.xlu0 %4273 }
0x1030   : > { %5468 = vrcp.f32 %v4498_v53  ;;  %v4507_v42 = vsub.f32 0.0, %v4443_v46  ;;  %4534 = vrot.lane.b32.xlu0 %v5457_v32, %s5534_s18  ;;  %v5459_v20 = vpop.eup %5458  ;;  %v4285_v57 = vadd.f32 %v4274_v56, %v4265_v15 }
0x1031   : > { %5470 = vpow2.f32 %v4493_v49  ;;  %v4495_v30 = vmul.f32 1.442695, %v4488_v31  ;;  %v4444_v0 = vadd.f32 %v6869_v54, %v4440_v14  ;;  %v4517_v1 = vadd.f32 1.0, %v5459_v20 }
0x1032   : > { %v5461_v61 = vpop.eup %5460  ;;  %v4513_v60 = vmul.f32 1.442695, %v4507_v42  ;;  %v4276_v10 = vpop.permute.xlu1 %4275 }
0x1033   : > { %v4479_v55 = vadd.f32 1.0, %v5461_v61  ;;  %5472 = vpow2.f32 %v4495_v30  ;;  %v4508_v45 = vsub.f32 0.0, %v4444_v0  ;;  %v4278_v3 = vpop.permute.xlu0 %4277  ;;  %v5463_v19 = vpop.eup %5462  ;;  %v4286_v21 = vadd.f32 %v4276_v10, %v4266_v11 }
0x1034   : > { %5474 = vpow2.f32 %v4513_v60  ;;  %v4518_v18 = vadd.f32 1.0, %v5463_v19  ;;  %v4287_v8 = vadd.f32 %v4278_v3, %v4267_v59 }
0x1035   : > { %5476 = vrcp.f32 %v4479_v55  ;;  %v4515_v9 = vmul.f32 1.442695, %v4508_v45  ;;  %v5465_v22 = vpop.eup %5464 }
0x1036   : > { %v4280_v12 = vpop.permute.xlu1 %4279  ;;  %v4480_v6 = vadd.f32 1.0, %v5465_v22 }
0x1037   : > { %v5467_v37 = vpop.eup %5466  ;;  %5478 = vpow2.f32 %v4515_v9  ;;  %v4294_v35 = vpop.permute.xlu0 %4293  ;;  %v4288_v4 = vadd.f32 %v4280_v12, %v4268_v39 }
0x1038   : > { %5480 = vrcp.f32 %v4517_v1  ;;  %v4305_v2 = vadd.f32 %v4294_v35, %v4285_v57  ;;  %4555 = vrot.lane.b32.xlu0 %v5467_v37, %s5535_s28 }
0x1039   : > { %5482 = vrcp.f32 %v4480_v6 }
0x103a   : > { %v5469_v62 = vpop.eup %5468  ;;  %v4309_v23 = vadd.f32 %v6869_v54, %v4305_v2  ;;  %v4296_v28 = vpop.permute.xlu1 %4295  ;;  %5484 = vrcp.f32 %v4518_v18 }
0x103b   : > { %v5471_v25 = vpop.eup %5470  ;;  %v4306_v43 = vadd.f32 %v4296_v28, %v4286_v21  ;;  %4557 = vrot.lane.b32.xlu1 %v5469_v62, %s5535_s28  ;;  %v4298_v34 = vpop.permute.xlu0 %4297 }
0x103c   : > { %v4499_v40 = vadd.f32 1.0, %v5471_v25  ;;  %v4445_v36 = vsub.f32 0.0, %v4309_v23  ;;  %v4307_v48 = vadd.f32 %v4298_v34, %v4287_v8 }
0x103d   : > { %v5473_v47 = vpop.eup %5472  ;;  %v4310_v33 = vadd.f32 %v6869_v54, %v4306_v43 }
0x103e   : > { %v5475_v63 = vpop.eup %5474  ;;  %5486 = vrcp.f32 %v4499_v40  ;;  %v4500_v41 = vadd.f32 1.0, %v5473_v47  ;;  %v4449_v50 = vmul.f32 1.442695, %v4445_v36  ;;  %v4311_v52 = vadd.f32 %v6869_v54, %v4307_v48  ;;  %v4300_v29 = vpop.permute.xlu1 %4299 }
0x103f   : > { %v5477_v17 = vpop.eup %5476  ;;  %v4519_v38 = vadd.f32 1.0, %v5475_v63  ;;  %v4446_v7 = vsub.f32 0.0, %v4310_v33  ;;  %v4308_v44 = vadd.f32 %v4300_v29, %v4288_v4 }
0x1040   : > { %5488 = vrcp.f32 %v4500_v41  ;;  %v4447_v24 = vsub.f32 0.0, %v4311_v52  ;;  %4538 = vrot.lane.b32.xlu0 %v5477_v17, %s5534_s18 }
0x1041   : > { %v5479_v27 = vpop.eup %5478  ;;  %5490 = vrcp.f32 %v4519_v38  ;;  %v4451_v16 = vmul.f32 1.442695, %v4446_v7  ;;  %v4312_v13 = vadd.f32 %v6869_v54, %v4308_v44 }
0x1042   : > { %v5481_v26 = vpop.eup %5480  ;;  %v4520_v51 = vadd.f32 1.0, %v5479_v27  ;;  %5492 = vpow2.f32 %v4449_v50  ;;  %v4453_v53 = vmul.f32 1.442695, %v4447_v24 }
0x1043   : > { %v5483_v49 = vpop.eup %5482  ;;  %5494 = vpow2.f32 %v4451_v16  ;;  %v4448_v46 = vsub.f32 0.0, %v4312_v13 }
0x1044   : > { %5496 = vrcp.f32 %v4520_v51  ;;  %4540 = vrot.lane.b32.xlu1 %v5483_v49, %s5534_s18  ;;  %4576 = vrot.lane.b32.xlu0 %v5481_v26, %s5536_s17  ;;  %v5485_v32 = vpop.eup %5484 }
0x1045   : > { %5498 = vpow2.f32 %v4453_v53  ;;  %v4455_v58 = vmul.f32 1.442695, %v4448_v46 }
0x1047   : > { %5500 = vpow2.f32 %v4455_v58 }
0x1048   : > { %v5487_v31 = vpop.eup %5486  ;;  %4578 = vrot.lane.b32.xlu1 %v5485_v32, %s5536_s17 }
0x1049   : > { %4559 = vrot.lane.b32.xlu0 %v5487_v31, %s5535_s28 }
0x104a   : > { %v5489_v54 = vpop.eup %5488 }
0x104b   : > { %v5491_v14 = vpop.eup %5490 }
0x104c   : > { %v5493_v56 = vpop.eup %5492  ;;  %4561 = vrot.lane.b32.xlu1 %v5489_v54, %s5535_s28 }
0x104d   : > { %v5495_v42 = vpop.eup %5494  ;;  %v4457_v20 = vadd.f32 1.0, %v5493_v56  ;;  %4580 = vrot.lane.b32.xlu0 %v5491_v14, %s5536_s17 }
0x104e   : > { %v5497_v30 = vpop.eup %5496  ;;  %v4458_v0 = vadd.f32 1.0, %v5495_v42 }
0x104f   : > { %v5499_v61 = vpop.eup %5498  ;;  %5502 = vrcp.f32 %v4457_v20 }
0x1050   : > { %5504 = vrcp.f32 %v4458_v0  ;;  %v4459_v60 = vadd.f32 1.0, %v5499_v61  ;;  %4582 = vrot.lane.b32.xlu1 %v5497_v30, %s5536_s17 }
0x1051   : > { %v5501_v5 = vpop.eup %5500 }
0x1052   : > { %5506 = vrcp.f32 %v4459_v60  ;;  %v4460_v10 = vadd.f32 1.0, %v5501_v5 }
0x1054   : > { %5508 = vrcp.f32 %v4460_v10 }
0x1059   : > { %v5503_v55 = vpop.eup %5502 }
0x105a   : > { %v5505_v45 = vpop.eup %5504  ;;  %4526 = vst.msk [vmem:[%s6924_s22] sm:$0xff] %vm4525_vm5, %v5503_v55 }
0x105b   : > { %4527 = vst.msk [vmem:[%s6924_s22 + $0x8] sm:$0xff] %vm4525_vm5, %v5505_v45 }
0x105c   : > { %v5507_v3 = vpop.eup %5506 }
0x105d   : > { %4528 = vst.msk [vmem:[%s6924_s22 + $0x10] sm:$0xff] %vm4525_vm5, %v5507_v3 }
0x105e   : > { %v5509_v1 = vpop.eup %5508 }
0x105f   : > { %4529 = vst.msk [vmem:[%s6924_s22 + $0x18] sm:$0xff] %vm4525_vm5, %v5509_v1 }
0x10a1   : > { %v4537_v19 = vpop.permute.xlu1 %4536 }
0x10a2   : > { %4548 = vst.msk [vmem:[%s6924_s22 + $0x8] sm:$0xff] %vm4546_vm6, %v4537_v19  ;;  %v4535_v9 = vpop.permute.xlu0 %4534 }
0x10a3   : > { %4547 = vst.msk [vmem:[%s6924_s22] sm:$0xff] %vm4546_vm6, %v4535_v9 }
0x10aa   : > { %v4556_v15 = vpop.permute.xlu0 %4555 }
0x10ab   : > { %4568 = vst.msk [vmem:[%s6924_s22] sm:$0xff] %vm4567_vm7, %v4556_v15 }
0x10ad   : > { %v4558_v22 = vpop.permute.xlu1 %4557 }
0x10ae   : > { %4569 = vst.msk [vmem:[%s6924_s22 + $0x8] sm:$0xff] %vm4567_vm7, %v4558_v22 }
0x10b2   : > { %v4539_v57 = vpop.permute.xlu0 %4538 }
0x10b3   : > { %4549 = vst.msk [vmem:[%s6924_s22 + $0x10] sm:$0xff] %vm4546_vm6, %v4539_v57 }
0x10b6   : > { %v4541_v12 = vpop.permute.xlu1 %4540  ;;  %v4577_v37 = vpop.permute.xlu0 %4576 }
0x10b7   : > { %4550 = vst.msk [vmem:[%s6924_s22 + $0x18] sm:$0xff] %vm4546_vm6, %v4541_v12 }
0x10b8   : > { %4589 = vst.msk [vmem:[%s6924_s22] sm:$0xff] %vm4588_vm13, %v4577_v37 }
0x10ba   : > { %v4579_v6 = vpop.permute.xlu1 %4578 }
0x10bb   : > { %4590 = vst.msk [vmem:[%s6924_s22 + $0x8] sm:$0xff] %vm4588_vm13, %v4579_v6  ;;  %v4560_v35 = vpop.permute.xlu0 %4559 }
0x10bc   : > { %4570 = vst.msk [vmem:[%s6924_s22 + $0x10] sm:$0xff] %vm4567_vm7, %v4560_v35 }
0x10be   : > { %v4562_v11 = vpop.permute.xlu1 %4561 }
0x10bf   : > { %4571 = vst.msk [vmem:[%s6924_s22 + $0x18] sm:$0xff] %vm4567_vm7, %v4562_v11  ;;  %v4581_v2 = vpop.permute.xlu0 %4580 }
0x10c0   : > { %4591 = vst.msk [vmem:[%s6924_s22 + $0x10] sm:$0xff] %vm4588_vm13, %v4581_v2 }
0x10c2   : > { %v4583_v18 = vpop.permute.xlu1 %4582 }
0x10c3   : > { %4592 = vst.msk [vmem:[%s6924_s22 + $0x18] sm:$0xff] %vm4588_vm13, %v4583_v18 }
0x10c4 PF: > { %s25_s27 = sadd.s32 1, %s5523_s27  }
0x10c5   : > { %p22_p4 = scmp.ge.s32.totalorder %s25_s27, 6  }
0x10c7   :  { %24 = sbr.rel (!%p22_p4) target bundleno = 3 (0x3), region = 102 }

</bundles_post_ra>
